<compile_context>
chip_gen: v6e
topology: v6e:2x2x1
jax: 0.10.0
libtpu: 0.0.40
codegen_flags: <defaults>
</compile_context>

<pallas_src>
import functools
import math

import jax
import jax.numpy as jnp
from jax import lax
from jax.experimental import pallas as pl
from jax.experimental.pallas import tpu as pltpu


def _make_lstm_kernel(num_layers, hidden_size, seq_len, batch_p, out_pad,
                      compute_dtype):
    H = hidden_size
    L = num_layers
    T = seq_len
    Bp = batch_p

    def kernel(x_ref, w_ih0_ref, b0_ref, w_cat_ref, b_cat_ref,
               w_fc_ref, b_fc_ref, out_ref, gates0_ref):
        # ---- hoisted layer-0 input projection: one (T*Bp, I) @ (I, 4H) ----
        x_all = x_ref[...]                                   # (T, Bp, I) f32
        in_feat = x_all.shape[-1]
        gx = jnp.dot(
            x_all.reshape(T * Bp, in_feat).astype(compute_dtype),
            w_ih0_ref[...],
            preferred_element_type=jnp.float32,
        ) + b0_ref[...]                                       # (T*Bp, 4H) f32
        gates0_ref[...] = gx.reshape(T, Bp, 4 * H)

        w_cat = w_cat_ref[...]                                # (L*H, L*4H)
        b_cat = b_cat_ref[...]                                # (1, L*4H) f32

        # Lane mask for the g-gate block (lanes [3H:4H)) of the packed
        # (i, f, o, g) gate vector: one sigmoid push + one tanh push + one
        # select instead of offset slices before the activations.
        lane = lax.broadcasted_iota(jnp.int32, (Bp, 4 * H), 1)
        g_lane = lane >= 3 * H

        def cell(gates, c_prev, first_step):
            act = jnp.where(g_lane, jnp.tanh(gates), jax.nn.sigmoid(gates))
            i_g = act[:, 0:H]
            f_g = act[:, H:2 * H]
            o_g = act[:, 2 * H:3 * H]
            g_g = act[:, 3 * H:4 * H]
            if first_step:                     # c_prev == 0: peel f*c term
                c_new = i_g * g_g
            else:
                c_new = f_g * c_prev + i_g * g_g
            h_new = o_g * jnp.tanh(c_new)
            return h_new, c_new

        h = [jnp.zeros((Bp, H), jnp.float32) for _ in range(L)]
        c = [jnp.zeros((Bp, H), jnp.float32) for _ in range(L)]

        # ---- wavefront over layers: at wave w, layer l runs step t = w - l.
        # Every input the wave needs (layer l-1's h at step t, layer l's h at
        # step t-1) was produced at wave w-1, so one fused matmul per wave
        # against the block-structured w_cat covers all layers.
        for w in range(T + L - 1):
            if w > 0:
                h_cat = jnp.concatenate(h, axis=-1)           # (Bp, L*H)
                gates_cat = jnp.dot(
                    h_cat.astype(compute_dtype), w_cat,
                    preferred_element_type=jnp.float32,
                ) + b_cat                                      # (Bp, L*4H)
            for l in range(L):
                t = w - l
                if t < 0 or t >= T:
                    continue                                   # layer idle
                if l == 0:
                    gates = gates0_ref[t]                      # bias included
                    if w > 0:
                        gates = gates + gates_cat[:, 0:4 * H]
                else:
                    gates = gates_cat[:, l * 4 * H:(l + 1) * 4 * H]
                h[l], c[l] = cell(gates, c[l], first_step=(t == 0))

        # ---- fc on last hidden of the top layer + softmax (lane-dense).
        # Padded logit columns are forced to -1e30 via the padded bias so they
        # vanish from max/exp/sum; padded batch rows are sliced off outside.
        logits = (jnp.dot(h[L - 1].astype(compute_dtype), w_fc_ref[...],
                          preferred_element_type=jnp.float32)
                  + b_fc_ref[...])                             # (Bp, out_pad)
        m = jnp.max(logits, axis=-1, keepdims=True)
        e = jnp.exp(logits - m)
        out_ref[...] = e / jnp.sum(e, axis=-1, keepdims=True)

    return kernel


def _reorder_gate_rows(w):
    """PyTorch packs gates as (i, f, g, o) along dim 0; repack as (i, f, o, g)."""
    i, f, g, o = jnp.split(w, 4, axis=0)
    return jnp.concatenate([i, f, o, g], axis=0)


def init_params(key, input_size, hidden_size, num_layers, output_size):
    """Deterministic PyTorch-like uniform(-1/sqrt(H), 1/sqrt(H)) init."""
    bound = 1.0 / math.sqrt(hidden_size)
    params = {"lstm": []}
    for layer in range(num_layers):
        in_feat = input_size if layer == 0 else hidden_size
        key, k1, k2, k3, k4 = jax.random.split(key, 5)
        params["lstm"].append({
            "w_ih": jax.random.uniform(k1, (4 * hidden_size, in_feat),
                                       jnp.float32, -bound, bound),
            "w_hh": jax.random.uniform(k2, (4 * hidden_size, hidden_size),
                                       jnp.float32, -bound, bound),
            "b_ih": jax.random.uniform(k3, (4 * hidden_size,),
                                       jnp.float32, -bound, bound),
            "b_hh": jax.random.uniform(k4, (4 * hidden_size,),
                                       jnp.float32, -bound, bound),
        })
    key, k5, k6 = jax.random.split(key, 3)
    fc_bound = 1.0 / math.sqrt(hidden_size)
    params["w_fc"] = jax.random.uniform(k5, (output_size, hidden_size),
                                        jnp.float32, -fc_bound, fc_bound)
    params["b_fc"] = jax.random.uniform(k6, (output_size,),
                                        jnp.float32, -fc_bound, fc_bound)
    return params


@functools.partial(jax.jit, static_argnames=("hidden_size", "num_layers",
                                             "output_size", "use_bf16_weights"))
def lstm_classifier_forward(x, params, *, hidden_size, num_layers, output_size,
                            use_bf16_weights=True):
    # Mirror: if 4D, take x[0]; then x.mT -> (B, T, input_size)
    if x.ndim == 4:
        x = x[0]
    B, input_size, T = x.shape
    H = hidden_size
    L = num_layers
    w_dtype = jnp.bfloat16 if use_bf16_weights else jnp.float32
    compute_dtype = w_dtype

    # time-major (T, Bp, I); pad batch to the f32 sublane tile (8).
    Bp = max(8, -(-B // 8) * 8)
    x_tm = jnp.transpose(x, (2, 0, 1)).astype(jnp.float32)
    if Bp != B:
        x_tm = jnp.pad(x_tm, ((0, 0), (0, Bp - B), (0, 0)))

    lstm = params["lstm"]
    # Layer-0 input projection (hoisted in-kernel); gate cols packed (i,f,o,g).
    w_ih0 = jnp.transpose(_reorder_gate_rows(lstm[0]["w_ih"])).astype(w_dtype)
    b0 = _reorder_gate_rows(lstm[0]["b_ih"] + lstm[0]["b_hh"])[None, :]

    # Fused block-structured recurrent weight for the wavefront:
    #   rows [l*H:(l+1)*H]      <- hidden state of layer l
    #   cols [l*4H:(l+1)*4H]    <- gates of layer l
    # Layer l's gate columns get w_hh_l from its own h and (for l>0) w_ih_l
    # from layer l-1's h; every other block is exactly zero.
    w_cat = jnp.zeros((L * H, L * 4 * H), jnp.float32)
    b_cat = jnp.zeros((1, L * 4 * H), jnp.float32)   # layer-0 bias lives in b0
    for l in range(L):
        w_hh = jnp.transpose(_reorder_gate_rows(lstm[l]["w_hh"]))   # (H, 4H)
        w_cat = w_cat.at[l * H:(l + 1) * H,
                         l * 4 * H:(l + 1) * 4 * H].set(w_hh)
        if l > 0:
            w_ih = jnp.transpose(_reorder_gate_rows(lstm[l]["w_ih"]))  # (H, 4H)
            w_cat = w_cat.at[(l - 1) * H:l * H,
                             l * 4 * H:(l + 1) * 4 * H].set(w_ih)
            b_l = _reorder_gate_rows(lstm[l]["b_ih"] + lstm[l]["b_hh"])
            b_cat = b_cat.at[0, l * 4 * H:(l + 1) * 4 * H].set(b_l)
    w_cat = w_cat.astype(w_dtype)

    # fc padded to a lane-dense width: padded weight cols 0, padded bias -1e30
    # (softmax-neutral), so the output store is a full-vreg (Bp, 128) slab.
    Opad = max(128, -(-output_size // 128) * 128)
    w_fc = (jnp.zeros((H, Opad), jnp.float32)
            .at[:, :output_size].set(jnp.transpose(params["w_fc"]))
            .astype(w_dtype))
    b_fc = (jnp.full((1, Opad), -1e30, jnp.float32)
            .at[0, :output_size].set(params["b_fc"]))

    kernel = _make_lstm_kernel(L, H, T, Bp, Opad, compute_dtype)

    out = pl.pallas_call(
        kernel,
        out_shape=jax.ShapeDtypeStruct((Bp, Opad), jnp.float32),
        in_specs=[pl.BlockSpec(memory_space=pltpu.MemorySpace.VMEM)] * 7,
        out_specs=pl.BlockSpec(memory_space=pltpu.MemorySpace.VMEM),
        scratch_shapes=[
            pltpu.VMEM((T, Bp, 4 * H), jnp.float32),   # layer-0 input gates
        ],
        compiler_params=pltpu.CompilerParams(
            vmem_limit_bytes=32 * 1024 * 1024),
    )(x_tm, w_ih0, b0, w_cat, b_cat, w_fc, b_fc)
    return out[:B, :output_size]


def reference_forward(x, params, *, hidden_size, num_layers, output_size):
    """Pure-JAX reference mirroring torch.nn.LSTM + Linear + Softmax (f32)."""
    if x.ndim == 4:
        x = x[0]
    seq = jnp.transpose(x, (0, 2, 1)).astype(jnp.float32)  # (B, T, I)
    B = seq.shape[0]
    H = hidden_size
    layer_in = seq
    for layer in range(num_layers):
        lp = params["lstm"][layer]
        w_ih, w_hh = lp["w_ih"], lp["w_hh"]
        b = lp["b_ih"] + lp["b_hh"]

        def step(carry, x_t):
            h, c = carry
            gates = x_t @ w_ih.T + h @ w_hh.T + b
            i_g = jax.nn.sigmoid(gates[:, 0:H])
            f_g = jax.nn.sigmoid(gates[:, H:2 * H])
            g_g = jnp.tanh(gates[:, 2 * H:3 * H])
            o_g = jax.nn.sigmoid(gates[:, 3 * H:4 * H])
            c_new = f_g * c + i_g * g_g
            h_new = o_g * jnp.tanh(c_new)
            return (h_new, c_new), h_new

        init = (jnp.zeros((B, H), jnp.float32), jnp.zeros((B, H), jnp.float32))
        _, hs = lax.scan(step, init, jnp.swapaxes(layer_in, 0, 1))
        layer_in = jnp.swapaxes(hs, 0, 1)
    logits = layer_in[:, -1, :] @ params["w_fc"].T + params["b_fc"]
    return jax.nn.softmax(logits, axis=-1)


if __name__ == "__main__":
    input_size = 8
    hidden_size = 32
    num_layers = 2
    output_size = 4
    batch = 2
    seq_len = 16

    key = jax.random.PRNGKey(0)
    kx, kp = jax.random.split(key)
    # 4D input as the module expects: x[0] -> (B, input_size, seq_len)
    x = jax.random.normal(kx, (1, batch, input_size, seq_len), jnp.float32)
    params = init_params(kp, input_size, hidden_size, num_layers, output_size)

    ref = reference_forward(x, params, hidden_size=hidden_size,
                            num_layers=num_layers, output_size=output_size)

    # f32-weight path: tight check against the f32 reference (fused block
    # matmul changes accumulation order slightly -> 1e-4, not bitwise).
    out_f32 = lstm_classifier_forward(x, params, hidden_size=hidden_size,
                                      num_layers=num_layers,
                                      output_size=output_size,
                                      use_bf16_weights=False)
    out_f32 = jax.block_until_ready(out_f32)
    assert out_f32.shape == (batch, output_size)
    assert jnp.allclose(out_f32, ref, atol=1e-4, rtol=1e-4), (out_f32, ref)

    # Default (bf16-weight) path: native MXU bf16, f32 accumulation and gate
    # math; looser tolerance for the rounding of the weight operands.
    out = lstm_classifier_forward(x, params, hidden_size=hidden_size,
                                  num_layers=num_layers,
                                  output_size=output_size)
    out = jax.block_until_ready(out)
    assert out.shape == (batch, output_size)
    assert jnp.allclose(out, ref, atol=5e-2), (out, ref)

    print("KERNEL_OK")
</pallas_src>

<mosaic_0001>
module attributes {stable_mosaic.version = 11 : i64} {
  func.func @kernel(%arg0: memref<16x8x8xf32, #tpu.memory_space<vmem>>, %arg1: memref<8x128xf32, #tpu.memory_space<vmem>>, %arg2: memref<1x128xf32, #tpu.memory_space<vmem>>, %arg3: memref<64x256xf32, #tpu.memory_space<vmem>>, %arg4: memref<1x256xf32, #tpu.memory_space<vmem>>, %arg5: memref<32x128xf32, #tpu.memory_space<vmem>>, %arg6: memref<1x128xf32, #tpu.memory_space<vmem>>, %arg7: memref<8x128xf32, #tpu.memory_space<vmem>>, %arg8: memref<16x8x128xf32, #tpu.memory_space<vmem>>) attributes {dimension_semantics = [], scalar_prefetch = 0 : i64, scratch_operands = 1 : i64, tpu.core_type = #tpu.core_type<tc>} {
    %c0 = arith.constant 0 : index
    %c0_0 = arith.constant 0 : index
    %c0_1 = arith.constant 0 : index
    %0 = vector.load %arg0[%c0, %c0_0, %c0_1] : memref<16x8x8xf32, #tpu.memory_space<vmem>>, vector<16x8x8xf32>
    %1 = vector.shape_cast %0 : vector<16x8x8xf32> to vector<128x8xf32>
    %c0_2 = arith.constant 0 : index
    %c0_3 = arith.constant 0 : index
    %2 = vector.load %arg1[%c0_2, %c0_3] : memref<8x128xf32, #tpu.memory_space<vmem>>, vector<8x128xf32>
    %cst = arith.constant dense<0.000000e+00> : vector<128x128xf32>
    %3 = tpu.matmul %1, %2, %cst {dimension_numbers = #tpu.dot_dimension_numbers<[1], [0], [0], [1], [0, 0, 1, 1], [], []>} : vector<128x8xf32>, vector<8x128xf32>, vector<128x128xf32> -> vector<128x128xf32>
    %c0_4 = arith.constant 0 : index
    %c0_5 = arith.constant 0 : index
    %4 = vector.load %arg2[%c0_4, %c0_5] : memref<1x128xf32, #tpu.memory_space<vmem>>, vector<1x128xf32>
    %5 = vector.broadcast %4 : vector<1x128xf32> to vector<128x128xf32>
    %6 = arith.addf %3, %5 : vector<128x128xf32>
    %7 = vector.shape_cast %6 : vector<128x128xf32> to vector<16x8x128xf32>
    %c0_6 = arith.constant 0 : index
    %c0_7 = arith.constant 0 : index
    %c0_8 = arith.constant 0 : index
    %8 = vector.load %arg8[%c0_6, %c0_7, %c0_8] : memref<16x8x128xf32, #tpu.memory_space<vmem>>, vector<16x8x128xf32>
    tpu.vector_store %arg8[%c0_6, %c0_7, %c0_8], %7 {strides = array<i32>} : memref<16x8x128xf32, #tpu.memory_space<vmem>>, vector<16x8x128xf32>,
    %c0_9 = arith.constant 0 : index
    %c0_10 = arith.constant 0 : index
    %9 = vector.load %arg3[%c0_9, %c0_10] : memref<64x256xf32, #tpu.memory_space<vmem>>, vector<64x256xf32>
    %c0_11 = arith.constant 0 : index
    %c0_12 = arith.constant 0 : index
    %10 = vector.load %arg4[%c0_11, %c0_12] : memref<1x256xf32, #tpu.memory_space<vmem>>, vector<1x256xf32>
    %11 = tpu.iota {dimensions = array<i32: 1>} : vector<8x128xi32>
    %c96_i32 = arith.constant 96 : i32
    %12 = vector.broadcast %c96_i32 : i32 to vector<8x128xi32>
    %13 = arith.cmpi sge, %11, %12 : vector<8x128xi32>
    %cst_13 = arith.constant 0.000000e+00 : f32
    %14 = vector.broadcast %cst_13 : f32 to vector<8x32xf32>
    %c0_14 = arith.constant 0 : index
    %c0_15 = arith.constant 0 : index
    %c0_16 = arith.constant 0 : index
    %15 = vector.load %arg8[%c0_14, %c0_15, %c0_16] : memref<16x8x128xf32, #tpu.memory_space<vmem>>, vector<1x8x128xf32>
    %16 = vector.shape_cast %15 : vector<1x8x128xf32> to vector<8x128xf32>
    %17 = math.tanh %16 : vector<8x128xf32>
    %18 = arith.negf %16 : vector<8x128xf32>
    %19 = math.exp %18 : vector<8x128xf32>
    %cst_17 = arith.constant 1.000000e+00 : f32
    %20 = vector.broadcast %cst_17 : f32 to vector<8x128xf32>
    %21 = arith.addf %20, %19 : vector<8x128xf32>
    %22 = arith.divf %20, %21 : vector<8x128xf32>
    %23 = arith.select %13, %17, %22 : vector<8x128xi1>, vector<8x128xf32>
    %24 = vector.extract_strided_slice %23 {offsets = [0, 0], sizes = [8, 32], strides = [1, 1]} : vector<8x128xf32> to vector<8x32xf32>
    %25 = vector.extract_strided_slice %23 {offsets = [0, 64], sizes = [8, 32], strides = [1, 1]} : vector<8x128xf32> to vector<8x32xf32>
    %26 = vector.extract_strided_slice %23 {offsets = [0, 96], sizes = [8, 32], strides = [1, 1]} : vector<8x128xf32> to vector<8x32xf32>
    %27 = arith.mulf %24, %26 : vector<8x32xf32>
    %28 = math.tanh %27 : vector<8x32xf32>
    %29 = arith.mulf %25, %28 : vector<8x32xf32>
    %30 = tpu.concatenate %29, %14 in 1 : vector<8x32xf32>, vector<8x32xf32> -> vector<8x64xf32>
    %cst_18 = arith.constant dense<0.000000e+00> : vector<8x256xf32>
    %31 = tpu.matmul %30, %9, %cst_18 {dimension_numbers = #tpu.dot_dimension_numbers<[1], [0], [0], [1], [0, 0, 1, 1], [], []>} : vector<8x64xf32>, vector<64x256xf32>, vector<8x256xf32> -> vector<8x256xf32>
    %32 = vector.broadcast %10 : vector<1x256xf32> to vector<8x256xf32>
    %33 = arith.addf %31, %32 : vector<8x256xf32>
    %c1 = arith.constant 1 : index
    %c0_19 = arith.constant 0 : index
    %c0_20 = arith.constant 0 : index
    %34 = vector.load %arg8[%c1, %c0_19, %c0_20] : memref<16x8x128xf32, #tpu.memory_space<vmem>>, vector<1x8x128xf32>
    %35 = vector.shape_cast %34 : vector<1x8x128xf32> to vector<8x128xf32>
    %36 = vector.extract_strided_slice %33 {offsets = [0, 0], sizes = [8, 128], strides = [1, 1]} : vector<8x256xf32> to vector<8x128xf32>
    %37 = arith.addf %35, %36 : vector<8x128xf32>
    %38 = math.tanh %37 : vector<8x128xf32>
    %39 = arith.negf %37 : vector<8x128xf32>
    %40 = math.exp %39 : vector<8x128xf32>
    %cst_21 = arith.constant 1.000000e+00 : f32
    %41 = vector.broadcast %cst_21 : f32 to vector<8x128xf32>
    %42 = arith.addf %41, %40 : vector<8x128xf32>
    %43 = arith.divf %41, %42 : vector<8x128xf32>
    %44 = arith.select %13, %38, %43 : vector<8x128xi1>, vector<8x128xf32>
    %45 = vector.extract_strided_slice %44 {offsets = [0, 0], sizes = [8, 32], strides = [1, 1]} : vector<8x128xf32> to vector<8x32xf32>
    %46 = vector.extract_strided_slice %44 {offsets = [0, 32], sizes = [8, 32], strides = [1, 1]} : vector<8x128xf32> to vector<8x32xf32>
    %47 = vector.extract_strided_slice %44 {offsets = [0, 64], sizes = [8, 32], strides = [1, 1]} : vector<8x128xf32> to vector<8x32xf32>
    %48 = vector.extract_strided_slice %44 {offsets = [0, 96], sizes = [8, 32], strides = [1, 1]} : vector<8x128xf32> to vector<8x32xf32>
    %49 = arith.mulf %46, %27 : vector<8x32xf32>
    %50 = arith.mulf %45, %48 : vector<8x32xf32>
    %51 = arith.addf %49, %50 : vector<8x32xf32>
    %52 = math.tanh %51 : vector<8x32xf32>
    %53 = arith.mulf %47, %52 : vector<8x32xf32>
    %54 = vector.extract_strided_slice %33 {offsets = [0, 128], sizes = [8, 128], strides = [1, 1]} : vector<8x256xf32> to vector<8x128xf32>
    %55 = math.tanh %54 : vector<8x128xf32>
    %56 = arith.negf %54 : vector<8x128xf32>
    %57 = math.exp %56 : vector<8x128xf32>
    %cst_22 = arith.constant 1.000000e+00 : f32
    %58 = vector.broadcast %cst_22 : f32 to vector<8x128xf32>
    %59 = arith.addf %58, %57 : vector<8x128xf32>
    %60 = arith.divf %58, %59 : vector<8x128xf32>
    %61 = arith.select %13, %55, %60 : vector<8x128xi1>, vector<8x128xf32>
    %62 = vector.extract_strided_slice %61 {offsets = [0, 0], sizes = [8, 32], strides = [1, 1]} : vector<8x128xf32> to vector<8x32xf32>
    %63 = vector.extract_strided_slice %61 {offsets = [0, 64], sizes = [8, 32], strides = [1, 1]} : vector<8x128xf32> to vector<8x32xf32>
    %64 = vector.extract_strided_slice %61 {offsets = [0, 96], sizes = [8, 32], strides = [1, 1]} : vector<8x128xf32> to vector<8x32xf32>
    %65 = arith.mulf %62, %64 : vector<8x32xf32>
    %66 = math.tanh %65 : vector<8x32xf32>
    %67 = arith.mulf %63, %66 : vector<8x32xf32>
    %68 = tpu.concatenate %53, %67 in 1 : vector<8x32xf32>, vector<8x32xf32> -> vector<8x64xf32>
    %cst_23 = arith.constant dense<0.000000e+00> : vector<8x256xf32>
    %69 = tpu.matmul %68, %9, %cst_23 {dimension_numbers = #tpu.dot_dimension_numbers<[1], [0], [0], [1], [0, 0, 1, 1], [], []>} : vector<8x64xf32>, vector<64x256xf32>, vector<8x256xf32> -> vector<8x256xf32>
    %70 = vector.broadcast %10 : vector<1x256xf32> to vector<8x256xf32>
    %71 = arith.addf %69, %70 : vector<8x256xf32>
    %c2 = arith.constant 2 : index
    %c0_24 = arith.constant 0 : index
    %c0_25 = arith.constant 0 : index
    %72 = vector.load %arg8[%c2, %c0_24, %c0_25] : memref<16x8x128xf32, #tpu.memory_space<vmem>>, vector<1x8x128xf32>
    %73 = vector.shape_cast %72 : vector<1x8x128xf32> to vector<8x128xf32>
    %74 = vector.extract_strided_slice %71 {offsets = [0, 0], sizes = [8, 128], strides = [1, 1]} : vector<8x256xf32> to vector<8x128xf32>
    %75 = arith.addf %73, %74 : vector<8x128xf32>
    %76 = math.tanh %75 : vector<8x128xf32>
    %77 = arith.negf %75 : vector<8x128xf32>
    %78 = math.exp %77 : vector<8x128xf32>
    %cst_26 = arith.constant 1.000000e+00 : f32
    %79 = vector.broadcast %cst_26 : f32 to vector<8x128xf32>
    %80 = arith.addf %79, %78 : vector<8x128xf32>
    %81 = arith.divf %79, %80 : vector<8x128xf32>
    %82 = arith.select %13, %76, %81 : vector<8x128xi1>, vector<8x128xf32>
    %83 = vector.extract_strided_slice %82 {offsets = [0, 0], sizes = [8, 32], strides = [1, 1]} : vector<8x128xf32> to vector<8x32xf32>
    %84 = vector.extract_strided_slice %82 {offsets = [0, 32], sizes = [8, 32], strides = [1, 1]} : vector<8x128xf32> to vector<8x32xf32>
    %85 = vector.extract_strided_slice %82 {offsets = [0, 64], sizes = [8, 32], strides = [1, 1]} : vector<8x128xf32> to vector<8x32xf32>
    %86 = vector.extract_strided_slice %82 {offsets = [0, 96], sizes = [8, 32], strides = [1, 1]} : vector<8x128xf32> to vector<8x32xf32>
    %87 = arith.mulf %84, %51 : vector<8x32xf32>
    %88 = arith.mulf %83, %86 : vector<8x32xf32>
    %89 = arith.addf %87, %88 : vector<8x32xf32>
    %90 = math.tanh %89 : vector<8x32xf32>
    %91 = arith.mulf %85, %90 : vector<8x32xf32>
    %92 = vector.extract_strided_slice %71 {offsets = [0, 128], sizes = [8, 128], strides = [1, 1]} : vector<8x256xf32> to vector<8x128xf32>
    %93 = math.tanh %92 : vector<8x128xf32>
    %94 = arith.negf %92 : vector<8x128xf32>
    %95 = math.exp %94 : vector<8x128xf32>
    %cst_27 = arith.constant 1.000000e+00 : f32
    %96 = vector.broadcast %cst_27 : f32 to vector<8x128xf32>
    %97 = arith.addf %96, %95 : vector<8x128xf32>
    %98 = arith.divf %96, %97 : vector<8x128xf32>
    %99 = arith.select %13, %93, %98 : vector<8x128xi1>, vector<8x128xf32>
    %100 = vector.extract_strided_slice %99 {offsets = [0, 0], sizes = [8, 32], strides = [1, 1]} : vector<8x128xf32> to vector<8x32xf32>
    %101 = vector.extract_strided_slice %99 {offsets = [0, 32], sizes = [8, 32], strides = [1, 1]} : vector<8x128xf32> to vector<8x32xf32>
    %102 = vector.extract_strided_slice %99 {offsets = [0, 64], sizes = [8, 32], strides = [1, 1]} : vector<8x128xf32> to vector<8x32xf32>
    %103 = vector.extract_strided_slice %99 {offsets = [0, 96], sizes = [8, 32], strides = [1, 1]} : vector<8x128xf32> to vector<8x32xf32>
    %104 = arith.mulf %101, %65 : vector<8x32xf32>
    %105 = arith.mulf %100, %103 : vector<8x32xf32>
    %106 = arith.addf %104, %105 : vector<8x32xf32>
    %107 = math.tanh %106 : vector<8x32xf32>
    %108 = arith.mulf %102, %107 : vector<8x32xf32>
    %109 = tpu.concatenate %91, %108 in 1 : vector<8x32xf32>, vector<8x32xf32> -> vector<8x64xf32>
    %cst_28 = arith.constant dense<0.000000e+00> : vector<8x256xf32>
    %110 = tpu.matmul %109, %9, %cst_28 {dimension_numbers = #tpu.dot_dimension_numbers<[1], [0], [0], [1], [0, 0, 1, 1], [], []>} : vector<8x64xf32>, vector<64x256xf32>, vector<8x256xf32> -> vector<8x256xf32>
    %111 = vector.broadcast %10 : vector<1x256xf32> to vector<8x256xf32>
    %112 = arith.addf %110, %111 : vector<8x256xf32>
    %c3 = arith.constant 3 : index
    %c0_29 = arith.constant 0 : index
    %c0_30 = arith.constant 0 : index
    %113 = vector.load %arg8[%c3, %c0_29, %c0_30] : memref<16x8x128xf32, #tpu.memory_space<vmem>>, vector<1x8x128xf32>
    %114 = vector.shape_cast %113 : vector<1x8x128xf32> to vector<8x128xf32>
    %115 = vector.extract_strided_slice %112 {offsets = [0, 0], sizes = [8, 128], strides = [1, 1]} : vector<8x256xf32> to vector<8x128xf32>
    %116 = arith.addf %114, %115 : vector<8x128xf32>
    %117 = math.tanh %116 : vector<8x128xf32>
    %118 = arith.negf %116 : vector<8x128xf32>
    %119 = math.exp %118 : vector<8x128xf32>
    %cst_31 = arith.constant 1.000000e+00 : f32
    %120 = vector.broadcast %cst_31 : f32 to vector<8x128xf32>
    %121 = arith.addf %120, %119 : vector<8x128xf32>
    %122 = arith.divf %120, %121 : vector<8x128xf32>
    %123 = arith.select %13, %117, %122 : vector<8x128xi1>, vector<8x128xf32>
    %124 = vector.extract_strided_slice %123 {offsets = [0, 0], sizes = [8, 32], strides = [1, 1]} : vector<8x128xf32> to vector<8x32xf32>
    %125 = vector.extract_strided_slice %123 {offsets = [0, 32], sizes = [8, 32], strides = [1, 1]} : vector<8x128xf32> to vector<8x32xf32>
    %126 = vector.extract_strided_slice %123 {offsets = [0, 64], sizes = [8, 32], strides = [1, 1]} : vector<8x128xf32> to vector<8x32xf32>
    %127 = vector.extract_strided_slice %123 {offsets = [0, 96], sizes = [8, 32], strides = [1, 1]} : vector<8x128xf32> to vector<8x32xf32>
    %128 = arith.mulf %125, %89 : vector<8x32xf32>
    %129 = arith.mulf %124, %127 : vector<8x32xf32>
    %130 = arith.addf %128, %129 : vector<8x32xf32>
    %131 = math.tanh %130 : vector<8x32xf32>
    %132 = arith.mulf %126, %131 : vector<8x32xf32>
    %133 = vector.extract_strided_slice %112 {offsets = [0, 128], sizes = [8, 128], strides = [1, 1]} : vector<8x256xf32> to vector<8x128xf32>
    %134 = math.tanh %133 : vector<8x128xf32>
    %135 = arith.negf %133 : vector<8x128xf32>
    %136 = math.exp %135 : vector<8x128xf32>
    %cst_32 = arith.constant 1.000000e+00 : f32
    %137 = vector.broadcast %cst_32 : f32 to vector<8x128xf32>
    %138 = arith.addf %137, %136 : vector<8x128xf32>
    %139 = arith.divf %137, %138 : vector<8x128xf32>
    %140 = arith.select %13, %134, %139 : vector<8x128xi1>, vector<8x128xf32>
    %141 = vector.extract_strided_slice %140 {offsets = [0, 0], sizes = [8, 32], strides = [1, 1]} : vector<8x128xf32> to vector<8x32xf32>
    %142 = vector.extract_strided_slice %140 {offsets = [0, 32], sizes = [8, 32], strides = [1, 1]} : vector<8x128xf32> to vector<8x32xf32>
    %143 = vector.extract_strided_slice %140 {offsets = [0, 64], sizes = [8, 32], strides = [1, 1]} : vector<8x128xf32> to vector<8x32xf32>
    %144 = vector.extract_strided_slice %140 {offsets = [0, 96], sizes = [8, 32], strides = [1, 1]} : vector<8x128xf32> to vector<8x32xf32>
    %145 = arith.mulf %142, %106 : vector<8x32xf32>
    %146 = arith.mulf %141, %144 : vector<8x32xf32>
    %147 = arith.addf %145, %146 : vector<8x32xf32>
    %148 = math.tanh %147 : vector<8x32xf32>
    %149 = arith.mulf %143, %148 : vector<8x32xf32>
    %150 = tpu.concatenate %132, %149 in 1 : vector<8x32xf32>, vector<8x32xf32> -> vector<8x64xf32>
    %cst_33 = arith.constant dense<0.000000e+00> : vector<8x256xf32>
    %151 = tpu.matmul %150, %9, %cst_33 {dimension_numbers = #tpu.dot_dimension_numbers<[1], [0], [0], [1], [0, 0, 1, 1], [], []>} : vector<8x64xf32>, vector<64x256xf32>, vector<8x256xf32> -> vector<8x256xf32>
    %152 = vector.broadcast %10 : vector<1x256xf32> to vector<8x256xf32>
    %153 = arith.addf %151, %152 : vector<8x256xf32>
    %c4 = arith.constant 4 : index
    %c0_34 = arith.constant 0 : index
    %c0_35 = arith.constant 0 : index
    %154 = vector.load %arg8[%c4, %c0_34, %c0_35] : memref<16x8x128xf32, #tpu.memory_space<vmem>>, vector<1x8x128xf32>
    %155 = vector.shape_cast %154 : vector<1x8x128xf32> to vector<8x128xf32>
    %156 = vector.extract_strided_slice %153 {offsets = [0, 0], sizes = [8, 128], strides = [1, 1]} : vector<8x256xf32> to vector<8x128xf32>
    %157 = arith.addf %155, %156 : vector<8x128xf32>
    %158 = math.tanh %157 : vector<8x128xf32>
    %159 = arith.negf %157 : vector<8x128xf32>
    %160 = math.exp %159 : vector<8x128xf32>
    %cst_36 = arith.constant 1.000000e+00 : f32
    %161 = vector.broadcast %cst_36 : f32 to vector<8x128xf32>
    %162 = arith.addf %161, %160 : vector<8x128xf32>
    %163 = arith.divf %161, %162 : vector<8x128xf32>
    %164 = arith.select %13, %158, %163 : vector<8x128xi1>, vector<8x128xf32>
    %165 = vector.extract_strided_slice %164 {offsets = [0, 0], sizes = [8, 32], strides = [1, 1]} : vector<8x128xf32> to vector<8x32xf32>
    %166 = vector.extract_strided_slice %164 {offsets = [0, 32], sizes = [8, 32], strides = [1, 1]} : vector<8x128xf32> to vector<8x32xf32>
    %167 = vector.extract_strided_slice %164 {offsets = [0, 64], sizes = [8, 32], strides = [1, 1]} : vector<8x128xf32> to vector<8x32xf32>
    %168 = vector.extract_strided_slice %164 {offsets = [0, 96], sizes = [8, 32], strides = [1, 1]} : vector<8x128xf32> to vector<8x32xf32>
    %169 = arith.mulf %166, %130 : vector<8x32xf32>
    %170 = arith.mulf %165, %168 : vector<8x32xf32>
    %171 = arith.addf %169, %170 : vector<8x32xf32>
    %172 = math.tanh %171 : vector<8x32xf32>
    %173 = arith.mulf %167, %172 : vector<8x32xf32>
    %174 = vector.extract_strided_slice %153 {offsets = [0, 128], sizes = [8, 128], strides = [1, 1]} : vector<8x256xf32> to vector<8x128xf32>
    %175 = math.tanh %174 : vector<8x128xf32>
    %176 = arith.negf %174 : vector<8x128xf32>
    %177 = math.exp %176 : vector<8x128xf32>
    %cst_37 = arith.constant 1.000000e+00 : f32
    %178 = vector.broadcast %cst_37 : f32 to vector<8x128xf32>
    %179 = arith.addf %178, %177 : vector<8x128xf32>
    %180 = arith.divf %178, %179 : vector<8x128xf32>
    %181 = arith.select %13, %175, %180 : vector<8x128xi1>, vector<8x128xf32>
    %182 = vector.extract_strided_slice %181 {offsets = [0, 0], sizes = [8, 32], strides = [1, 1]} : vector<8x128xf32> to vector<8x32xf32>
    %183 = vector.extract_strided_slice %181 {offsets = [0, 32], sizes = [8, 32], strides = [1, 1]} : vector<8x128xf32> to vector<8x32xf32>
    %184 = vector.extract_strided_slice %181 {offsets = [0, 64], sizes = [8, 32], strides = [1, 1]} : vector<8x128xf32> to vector<8x32xf32>
    %185 = vector.extract_strided_slice %181 {offsets = [0, 96], sizes = [8, 32], strides = [1, 1]} : vector<8x128xf32> to vector<8x32xf32>
    %186 = arith.mulf %183, %147 : vector<8x32xf32>
    %187 = arith.mulf %182, %185 : vector<8x32xf32>
    %188 = arith.addf %186, %187 : vector<8x32xf32>
    %189 = math.tanh %188 : vector<8x32xf32>
    %190 = arith.mulf %184, %189 : vector<8x32xf32>
    %191 = tpu.concatenate %173, %190 in 1 : vector<8x32xf32>, vector<8x32xf32> -> vector<8x64xf32>
    %cst_38 = arith.constant dense<0.000000e+00> : vector<8x256xf32>
    %192 = tpu.matmul %191, %9, %cst_38 {dimension_numbers = #tpu.dot_dimension_numbers<[1], [0], [0], [1], [0, 0, 1, 1], [], []>} : vector<8x64xf32>, vector<64x256xf32>, vector<8x256xf32> -> vector<8x256xf32>
    %193 = vector.broadcast %10 : vector<1x256xf32> to vector<8x256xf32>
    %194 = arith.addf %192, %193 : vector<8x256xf32>
    %c5 = arith.constant 5 : index
    %c0_39 = arith.constant 0 : index
    %c0_40 = arith.constant 0 : index
    %195 = vector.load %arg8[%c5, %c0_39, %c0_40] : memref<16x8x128xf32, #tpu.memory_space<vmem>>, vector<1x8x128xf32>
    %196 = vector.shape_cast %195 : vector<1x8x128xf32> to vector<8x128xf32>
    %197 = vector.extract_strided_slice %194 {offsets = [0, 0], sizes = [8, 128], strides = [1, 1]} : vector<8x256xf32> to vector<8x128xf32>
    %198 = arith.addf %196, %197 : vector<8x128xf32>
    %199 = math.tanh %198 : vector<8x128xf32>
    %200 = arith.negf %198 : vector<8x128xf32>
    %201 = math.exp %200 : vector<8x128xf32>
    %cst_41 = arith.constant 1.000000e+00 : f32
    %202 = vector.broadcast %cst_41 : f32 to vector<8x128xf32>
    %203 = arith.addf %202, %201 : vector<8x128xf32>
    %204 = arith.divf %202, %203 : vector<8x128xf32>
    %205 = arith.select %13, %199, %204 : vector<8x128xi1>, vector<8x128xf32>
    %206 = vector.extract_strided_slice %205 {offsets = [0, 0], sizes = [8, 32], strides = [1, 1]} : vector<8x128xf32> to vector<8x32xf32>
    %207 = vector.extract_strided_slice %205 {offsets = [0, 32], sizes = [8, 32], strides = [1, 1]} : vector<8x128xf32> to vector<8x32xf32>
    %208 = vector.extract_strided_slice %205 {offsets = [0, 64], sizes = [8, 32], strides = [1, 1]} : vector<8x128xf32> to vector<8x32xf32>
    %209 = vector.extract_strided_slice %205 {offsets = [0, 96], sizes = [8, 32], strides = [1, 1]} : vector<8x128xf32> to vector<8x32xf32>
    %210 = arith.mulf %207, %171 : vector<8x32xf32>
    %211 = arith.mulf %206, %209 : vector<8x32xf32>
    %212 = arith.addf %210, %211 : vector<8x32xf32>
    %213 = math.tanh %212 : vector<8x32xf32>
    %214 = arith.mulf %208, %213 : vector<8x32xf32>
    %215 = vector.extract_strided_slice %194 {offsets = [0, 128], sizes = [8, 128], strides = [1, 1]} : vector<8x256xf32> to vector<8x128xf32>
    %216 = math.tanh %215 : vector<8x128xf32>
    %217 = arith.negf %215 : vector<8x128xf32>
    %218 = math.exp %217 : vector<8x128xf32>
    %cst_42 = arith.constant 1.000000e+00 : f32
    %219 = vector.broadcast %cst_42 : f32 to vector<8x128xf32>
    %220 = arith.addf %219, %218 : vector<8x128xf32>
    %221 = arith.divf %219, %220 : vector<8x128xf32>
    %222 = arith.select %13, %216, %221 : vector<8x128xi1>, vector<8x128xf32>
    %223 = vector.extract_strided_slice %222 {offsets = [0, 0], sizes = [8, 32], strides = [1, 1]} : vector<8x128xf32> to vector<8x32xf32>
    %224 = vector.extract_strided_slice %222 {offsets = [0, 32], sizes = [8, 32], strides = [1, 1]} : vector<8x128xf32> to vector<8x32xf32>
    %225 = vector.extract_strided_slice %222 {offsets = [0, 64], sizes = [8, 32], strides = [1, 1]} : vector<8x128xf32> to vector<8x32xf32>
    %226 = vector.extract_strided_slice %222 {offsets = [0, 96], sizes = [8, 32], strides = [1, 1]} : vector<8x128xf32> to vector<8x32xf32>
    %227 = arith.mulf %224, %188 : vector<8x32xf32>
    %228 = arith.mulf %223, %226 : vector<8x32xf32>
    %229 = arith.addf %227, %228 : vector<8x32xf32>
    %230 = math.tanh %229 : vector<8x32xf32>
    %231 = arith.mulf %225, %230 : vector<8x32xf32>
    %232 = tpu.concatenate %214, %231 in 1 : vector<8x32xf32>, vector<8x32xf32> -> vector<8x64xf32>
    %cst_43 = arith.constant dense<0.000000e+00> : vector<8x256xf32>
    %233 = tpu.matmul %232, %9, %cst_43 {dimension_numbers = #tpu.dot_dimension_numbers<[1], [0], [0], [1], [0, 0, 1, 1], [], []>} : vector<8x64xf32>, vector<64x256xf32>, vector<8x256xf32> -> vector<8x256xf32>
    %234 = vector.broadcast %10 : vector<1x256xf32> to vector<8x256xf32>
    %235 = arith.addf %233, %234 : vector<8x256xf32>
    %c6 = arith.constant 6 : index
    %c0_44 = arith.constant 0 : index
    %c0_45 = arith.constant 0 : index
    %236 = vector.load %arg8[%c6, %c0_44, %c0_45] : memref<16x8x128xf32, #tpu.memory_space<vmem>>, vector<1x8x128xf32>
    %237 = vector.shape_cast %236 : vector<1x8x128xf32> to vector<8x128xf32>
    %238 = vector.extract_strided_slice %235 {offsets = [0, 0], sizes = [8, 128], strides = [1, 1]} : vector<8x256xf32> to vector<8x128xf32>
    %239 = arith.addf %237, %238 : vector<8x128xf32>
    %240 = math.tanh %239 : vector<8x128xf32>
    %241 = arith.negf %239 : vector<8x128xf32>
    %242 = math.exp %241 : vector<8x128xf32>
    %cst_46 = arith.constant 1.000000e+00 : f32
    %243 = vector.broadcast %cst_46 : f32 to vector<8x128xf32>
    %244 = arith.addf %243, %242 : vector<8x128xf32>
    %245 = arith.divf %243, %244 : vector<8x128xf32>
    %246 = arith.select %13, %240, %245 : vector<8x128xi1>, vector<8x128xf32>
    %247 = vector.extract_strided_slice %246 {offsets = [0, 0], sizes = [8, 32], strides = [1, 1]} : vector<8x128xf32> to vector<8x32xf32>
    %248 = vector.extract_strided_slice %246 {offsets = [0, 32], sizes = [8, 32], strides = [1, 1]} : vector<8x128xf32> to vector<8x32xf32>
    %249 = vector.extract_strided_slice %246 {offsets = [0, 64], sizes = [8, 32], strides = [1, 1]} : vector<8x128xf32> to vector<8x32xf32>
    %250 = vector.extract_strided_slice %246 {offsets = [0, 96], sizes = [8, 32], strides = [1, 1]} : vector<8x128xf32> to vector<8x32xf32>
    %251 = arith.mulf %248, %212 : vector<8x32xf32>
    %252 = arith.mulf %247, %250 : vector<8x32xf32>
    %253 = arith.addf %251, %252 : vector<8x32xf32>
    %254 = math.tanh %253 : vector<8x32xf32>
    %255 = arith.mulf %249, %254 : vector<8x32xf32>
    %256 = vector.extract_strided_slice %235 {offsets = [0, 128], sizes = [8, 128], strides = [1, 1]} : vector<8x256xf32> to vector<8x128xf32>
    %257 = math.tanh %256 : vector<8x128xf32>
    %258 = arith.negf %256 : vector<8x128xf32>
    %259 = math.exp %258 : vector<8x128xf32>
    %cst_47 = arith.constant 1.000000e+00 : f32
    %260 = vector.broadcast %cst_47 : f32 to vector<8x128xf32>
    %261 = arith.addf %260, %259 : vector<8x128xf32>
    %262 = arith.divf %260, %261 : vector<8x128xf32>
    %263 = arith.select %13, %257, %262 : vector<8x128xi1>, vector<8x128xf32>
    %264 = vector.extract_strided_slice %263 {offsets = [0, 0], sizes = [8, 32], strides = [1, 1]} : vector<8x128xf32> to vector<8x32xf32>
    %265 = vector.extract_strided_slice %263 {offsets = [0, 32], sizes = [8, 32], strides = [1, 1]} : vector<8x128xf32> to vector<8x32xf32>
    %266 = vector.extract_strided_slice %263 {offsets = [0, 64], sizes = [8, 32], strides = [1, 1]} : vector<8x128xf32> to vector<8x32xf32>
    %267 = vector.extract_strided_slice %263 {offsets = [0, 96], sizes = [8, 32], strides = [1, 1]} : vector<8x128xf32> to vector<8x32xf32>
    %268 = arith.mulf %265, %229 : vector<8x32xf32>
    %269 = arith.mulf %264, %267 : vector<8x32xf32>
    %270 = arith.addf %268, %269 : vector<8x32xf32>
    %271 = math.tanh %270 : vector<8x32xf32>
    %272 = arith.mulf %266, %271 : vector<8x32xf32>
    %273 = tpu.concatenate %255, %272 in 1 : vector<8x32xf32>, vector<8x32xf32> -> vector<8x64xf32>
    %cst_48 = arith.constant dense<0.000000e+00> : vector<8x256xf32>
    %274 = tpu.matmul %273, %9, %cst_48 {dimension_numbers = #tpu.dot_dimension_numbers<[1], [0], [0], [1], [0, 0, 1, 1], [], []>} : vector<8x64xf32>, vector<64x256xf32>, vector<8x256xf32> -> vector<8x256xf32>
    %275 = vector.broadcast %10 : vector<1x256xf32> to vector<8x256xf32>
    %276 = arith.addf %274, %275 : vector<8x256xf32>
    %c7 = arith.constant 7 : index
    %c0_49 = arith.constant 0 : index
    %c0_50 = arith.constant 0 : index
    %277 = vector.load %arg8[%c7, %c0_49, %c0_50] : memref<16x8x128xf32, #tpu.memory_space<vmem>>, vector<1x8x128xf32>
    %278 = vector.shape_cast %277 : vector<1x8x128xf32> to vector<8x128xf32>
    %279 = vector.extract_strided_slice %276 {offsets = [0, 0], sizes = [8, 128], strides = [1, 1]} : vector<8x256xf32> to vector<8x128xf32>
    %280 = arith.addf %278, %279 : vector<8x128xf32>
    %281 = math.tanh %280 : vector<8x128xf32>
    %282 = arith.negf %280 : vector<8x128xf32>
    %283 = math.exp %282 : vector<8x128xf32>
    %cst_51 = arith.constant 1.000000e+00 : f32
    %284 = vector.broadcast %cst_51 : f32 to vector<8x128xf32>
    %285 = arith.addf %284, %283 : vector<8x128xf32>
    %286 = arith.divf %284, %285 : vector<8x128xf32>
    %287 = arith.select %13, %281, %286 : vector<8x128xi1>, vector<8x128xf32>
    %288 = vector.extract_strided_slice %287 {offsets = [0, 0], sizes = [8, 32], strides = [1, 1]} : vector<8x128xf32> to vector<8x32xf32>
    %289 = vector.extract_strided_slice %287 {offsets = [0, 32], sizes = [8, 32], strides = [1, 1]} : vector<8x128xf32> to vector<8x32xf32>
    %290 = vector.extract_strided_slice %287 {offsets = [0, 64], sizes = [8, 32], strides = [1, 1]} : vector<8x128xf32> to vector<8x32xf32>
    %291 = vector.extract_strided_slice %287 {offsets = [0, 96], sizes = [8, 32], strides = [1, 1]} : vector<8x128xf32> to vector<8x32xf32>
    %292 = arith.mulf %289, %253 : vector<8x32xf32>
    %293 = arith.mulf %288, %291 : vector<8x32xf32>
    %294 = arith.addf %292, %293 : vector<8x32xf32>
    %295 = math.tanh %294 : vector<8x32xf32>
    %296 = arith.mulf %290, %295 : vector<8x32xf32>
    %297 = vector.extract_strided_slice %276 {offsets = [0, 128], sizes = [8, 128], strides = [1, 1]} : vector<8x256xf32> to vector<8x128xf32>
    %298 = math.tanh %297 : vector<8x128xf32>
    %299 = arith.negf %297 : vector<8x128xf32>
    %300 = math.exp %299 : vector<8x128xf32>
    %cst_52 = arith.constant 1.000000e+00 : f32
    %301 = vector.broadcast %cst_52 : f32 to vector<8x128xf32>
    %302 = arith.addf %301, %300 : vector<8x128xf32>
    %303 = arith.divf %301, %302 : vector<8x128xf32>
    %304 = arith.select %13, %298, %303 : vector<8x128xi1>, vector<8x128xf32>
    %305 = vector.extract_strided_slice %304 {offsets = [0, 0], sizes = [8, 32], strides = [1, 1]} : vector<8x128xf32> to vector<8x32xf32>
    %306 = vector.extract_strided_slice %304 {offsets = [0, 32], sizes = [8, 32], strides = [1, 1]} : vector<8x128xf32> to vector<8x32xf32>
    %307 = vector.extract_strided_slice %304 {offsets = [0, 64], sizes = [8, 32], strides = [1, 1]} : vector<8x128xf32> to vector<8x32xf32>
    %308 = vector.extract_strided_slice %304 {offsets = [0, 96], sizes = [8, 32], strides = [1, 1]} : vector<8x128xf32> to vector<8x32xf32>
    %309 = arith.mulf %306, %270 : vector<8x32xf32>
    %310 = arith.mulf %305, %308 : vector<8x32xf32>
    %311 = arith.addf %309, %310 : vector<8x32xf32>
    %312 = math.tanh %311 : vector<8x32xf32>
    %313 = arith.mulf %307, %312 : vector<8x32xf32>
    %314 = tpu.concatenate %296, %313 in 1 : vector<8x32xf32>, vector<8x32xf32> -> vector<8x64xf32>
    %cst_53 = arith.constant dense<0.000000e+00> : vector<8x256xf32>
    %315 = tpu.matmul %314, %9, %cst_53 {dimension_numbers = #tpu.dot_dimension_numbers<[1], [0], [0], [1], [0, 0, 1, 1], [], []>} : vector<8x64xf32>, vector<64x256xf32>, vector<8x256xf32> -> vector<8x256xf32>
    %316 = vector.broadcast %10 : vector<1x256xf32> to vector<8x256xf32>
    %317 = arith.addf %315, %316 : vector<8x256xf32>
    %c8 = arith.constant 8 : index
    %c0_54 = arith.constant 0 : index
    %c0_55 = arith.constant 0 : index
    %318 = vector.load %arg8[%c8, %c0_54, %c0_55] : memref<16x8x128xf32, #tpu.memory_space<vmem>>, vector<1x8x128xf32>
    %319 = vector.shape_cast %318 : vector<1x8x128xf32> to vector<8x128xf32>
    %320 = vector.extract_strided_slice %317 {offsets = [0, 0], sizes = [8, 128], strides = [1, 1]} : vector<8x256xf32> to vector<8x128xf32>
    %321 = arith.addf %319, %320 : vector<8x128xf32>
    %322 = math.tanh %321 : vector<8x128xf32>
    %323 = arith.negf %321 : vector<8x128xf32>
    %324 = math.exp %323 : vector<8x128xf32>
    %cst_56 = arith.constant 1.000000e+00 : f32
    %325 = vector.broadcast %cst_56 : f32 to vector<8x128xf32>
    %326 = arith.addf %325, %324 : vector<8x128xf32>
    %327 = arith.divf %325, %326 : vector<8x128xf32>
    %328 = arith.select %13, %322, %327 : vector<8x128xi1>, vector<8x128xf32>
    %329 = vector.extract_strided_slice %328 {offsets = [0, 0], sizes = [8, 32], strides = [1, 1]} : vector<8x128xf32> to vector<8x32xf32>
    %330 = vector.extract_strided_slice %328 {offsets = [0, 32], sizes = [8, 32], strides = [1, 1]} : vector<8x128xf32> to vector<8x32xf32>
    %331 = vector.extract_strided_slice %328 {offsets = [0, 64], sizes = [8, 32], strides = [1, 1]} : vector<8x128xf32> to vector<8x32xf32>
    %332 = vector.extract_strided_slice %328 {offsets = [0, 96], sizes = [8, 32], strides = [1, 1]} : vector<8x128xf32> to vector<8x32xf32>
    %333 = arith.mulf %330, %294 : vector<8x32xf32>
    %334 = arith.mulf %329, %332 : vector<8x32xf32>
    %335 = arith.addf %333, %334 : vector<8x32xf32>
    %336 = math.tanh %335 : vector<8x32xf32>
    %337 = arith.mulf %331, %336 : vector<8x32xf32>
    %338 = vector.extract_strided_slice %317 {offsets = [0, 128], sizes = [8, 128], strides = [1, 1]} : vector<8x256xf32> to vector<8x128xf32>
    %339 = math.tanh %338 : vector<8x128xf32>
    %340 = arith.negf %338 : vector<8x128xf32>
    %341 = math.exp %340 : vector<8x128xf32>
    %cst_57 = arith.constant 1.000000e+00 : f32
    %342 = vector.broadcast %cst_57 : f32 to vector<8x128xf32>
    %343 = arith.addf %342, %341 : vector<8x128xf32>
    %344 = arith.divf %342, %343 : vector<8x128xf32>
    %345 = arith.select %13, %339, %344 : vector<8x128xi1>, vector<8x128xf32>
    %346 = vector.extract_strided_slice %345 {offsets = [0, 0], sizes = [8, 32], strides = [1, 1]} : vector<8x128xf32> to vector<8x32xf32>
    %347 = vector.extract_strided_slice %345 {offsets = [0, 32], sizes = [8, 32], strides = [1, 1]} : vector<8x128xf32> to vector<8x32xf32>
    %348 = vector.extract_strided_slice %345 {offsets = [0, 64], sizes = [8, 32], strides = [1, 1]} : vector<8x128xf32> to vector<8x32xf32>
    %349 = vector.extract_strided_slice %345 {offsets = [0, 96], sizes = [8, 32], strides = [1, 1]} : vector<8x128xf32> to vector<8x32xf32>
    %350 = arith.mulf %347, %311 : vector<8x32xf32>
    %351 = arith.mulf %346, %349 : vector<8x32xf32>
    %352 = arith.addf %350, %351 : vector<8x32xf32>
    %353 = math.tanh %352 : vector<8x32xf32>
    %354 = arith.mulf %348, %353 : vector<8x32xf32>
    %355 = tpu.concatenate %337, %354 in 1 : vector<8x32xf32>, vector<8x32xf32> -> vector<8x64xf32>
    %cst_58 = arith.constant dense<0.000000e+00> : vector<8x256xf32>
    %356 = tpu.matmul %355, %9, %cst_58 {dimension_numbers = #tpu.dot_dimension_numbers<[1], [0], [0], [1], [0, 0, 1, 1], [], []>} : vector<8x64xf32>, vector<64x256xf32>, vector<8x256xf32> -> vector<8x256xf32>
    %357 = vector.broadcast %10 : vector<1x256xf32> to vector<8x256xf32>
    %358 = arith.addf %356, %357 : vector<8x256xf32>
    %c9 = arith.constant 9 : index
    %c0_59 = arith.constant 0 : index
    %c0_60 = arith.constant 0 : index
    %359 = vector.load %arg8[%c9, %c0_59, %c0_60] : memref<16x8x128xf32, #tpu.memory_space<vmem>>, vector<1x8x128xf32>
    %360 = vector.shape_cast %359 : vector<1x8x128xf32> to vector<8x128xf32>
    %361 = vector.extract_strided_slice %358 {offsets = [0, 0], sizes = [8, 128], strides = [1, 1]} : vector<8x256xf32> to vector<8x128xf32>
    %362 = arith.addf %360, %361 : vector<8x128xf32>
    %363 = math.tanh %362 : vector<8x128xf32>
    %364 = arith.negf %362 : vector<8x128xf32>
    %365 = math.exp %364 : vector<8x128xf32>
    %cst_61 = arith.constant 1.000000e+00 : f32
    %366 = vector.broadcast %cst_61 : f32 to vector<8x128xf32>
    %367 = arith.addf %366, %365 : vector<8x128xf32>
    %368 = arith.divf %366, %367 : vector<8x128xf32>
    %369 = arith.select %13, %363, %368 : vector<8x128xi1>, vector<8x128xf32>
    %370 = vector.extract_strided_slice %369 {offsets = [0, 0], sizes = [8, 32], strides = [1, 1]} : vector<8x128xf32> to vector<8x32xf32>
    %371 = vector.extract_strided_slice %369 {offsets = [0, 32], sizes = [8, 32], strides = [1, 1]} : vector<8x128xf32> to vector<8x32xf32>
    %372 = vector.extract_strided_slice %369 {offsets = [0, 64], sizes = [8, 32], strides = [1, 1]} : vector<8x128xf32> to vector<8x32xf32>
    %373 = vector.extract_strided_slice %369 {offsets = [0, 96], sizes = [8, 32], strides = [1, 1]} : vector<8x128xf32> to vector<8x32xf32>
    %374 = arith.mulf %371, %335 : vector<8x32xf32>
    %375 = arith.mulf %370, %373 : vector<8x32xf32>
    %376 = arith.addf %374, %375 : vector<8x32xf32>
    %377 = math.tanh %376 : vector<8x32xf32>
    %378 = arith.mulf %372, %377 : vector<8x32xf32>
    %379 = vector.extract_strided_slice %358 {offsets = [0, 128], sizes = [8, 128], strides = [1, 1]} : vector<8x256xf32> to vector<8x128xf32>
    %380 = math.tanh %379 : vector<8x128xf32>
    %381 = arith.negf %379 : vector<8x128xf32>
    %382 = math.exp %381 : vector<8x128xf32>
    %cst_62 = arith.constant 1.000000e+00 : f32
    %383 = vector.broadcast %cst_62 : f32 to vector<8x128xf32>
    %384 = arith.addf %383, %382 : vector<8x128xf32>
    %385 = arith.divf %383, %384 : vector<8x128xf32>
    %386 = arith.select %13, %380, %385 : vector<8x128xi1>, vector<8x128xf32>
    %387 = vector.extract_strided_slice %386 {offsets = [0, 0], sizes = [8, 32], strides = [1, 1]} : vector<8x128xf32> to vector<8x32xf32>
    %388 = vector.extract_strided_slice %386 {offsets = [0, 32], sizes = [8, 32], strides = [1, 1]} : vector<8x128xf32> to vector<8x32xf32>
    %389 = vector.extract_strided_slice %386 {offsets = [0, 64], sizes = [8, 32], strides = [1, 1]} : vector<8x128xf32> to vector<8x32xf32>
    %390 = vector.extract_strided_slice %386 {offsets = [0, 96], sizes = [8, 32], strides = [1, 1]} : vector<8x128xf32> to vector<8x32xf32>
    %391 = arith.mulf %388, %352 : vector<8x32xf32>
    %392 = arith.mulf %387, %390 : vector<8x32xf32>
    %393 = arith.addf %391, %392 : vector<8x32xf32>
    %394 = math.tanh %393 : vector<8x32xf32>
    %395 = arith.mulf %389, %394 : vector<8x32xf32>
    %396 = tpu.concatenate %378, %395 in 1 : vector<8x32xf32>, vector<8x32xf32> -> vector<8x64xf32>
    %cst_63 = arith.constant dense<0.000000e+00> : vector<8x256xf32>
    %397 = tpu.matmul %396, %9, %cst_63 {dimension_numbers = #tpu.dot_dimension_numbers<[1], [0], [0], [1], [0, 0, 1, 1], [], []>} : vector<8x64xf32>, vector<64x256xf32>, vector<8x256xf32> -> vector<8x256xf32>
    %398 = vector.broadcast %10 : vector<1x256xf32> to vector<8x256xf32>
    %399 = arith.addf %397, %398 : vector<8x256xf32>
    %c10 = arith.constant 10 : index
    %c0_64 = arith.constant 0 : index
    %c0_65 = arith.constant 0 : index
    %400 = vector.load %arg8[%c10, %c0_64, %c0_65] : memref<16x8x128xf32, #tpu.memory_space<vmem>>, vector<1x8x128xf32>
    %401 = vector.shape_cast %400 : vector<1x8x128xf32> to vector<8x128xf32>
    %402 = vector.extract_strided_slice %399 {offsets = [0, 0], sizes = [8, 128], strides = [1, 1]} : vector<8x256xf32> to vector<8x128xf32>
    %403 = arith.addf %401, %402 : vector<8x128xf32>
    %404 = math.tanh %403 : vector<8x128xf32>
    %405 = arith.negf %403 : vector<8x128xf32>
    %406 = math.exp %405 : vector<8x128xf32>
    %cst_66 = arith.constant 1.000000e+00 : f32
    %407 = vector.broadcast %cst_66 : f32 to vector<8x128xf32>
    %408 = arith.addf %407, %406 : vector<8x128xf32>
    %409 = arith.divf %407, %408 : vector<8x128xf32>
    %410 = arith.select %13, %404, %409 : vector<8x128xi1>, vector<8x128xf32>
    %411 = vector.extract_strided_slice %410 {offsets = [0, 0], sizes = [8, 32], strides = [1, 1]} : vector<8x128xf32> to vector<8x32xf32>
    %412 = vector.extract_strided_slice %410 {offsets = [0, 32], sizes = [8, 32], strides = [1, 1]} : vector<8x128xf32> to vector<8x32xf32>
    %413 = vector.extract_strided_slice %410 {offsets = [0, 64], sizes = [8, 32], strides = [1, 1]} : vector<8x128xf32> to vector<8x32xf32>
    %414 = vector.extract_strided_slice %410 {offsets = [0, 96], sizes = [8, 32], strides = [1, 1]} : vector<8x128xf32> to vector<8x32xf32>
    %415 = arith.mulf %412, %376 : vector<8x32xf32>
    %416 = arith.mulf %411, %414 : vector<8x32xf32>
    %417 = arith.addf %415, %416 : vector<8x32xf32>
    %418 = math.tanh %417 : vector<8x32xf32>
    %419 = arith.mulf %413, %418 : vector<8x32xf32>
    %420 = vector.extract_strided_slice %399 {offsets = [0, 128], sizes = [8, 128], strides = [1, 1]} : vector<8x256xf32> to vector<8x128xf32>
    %421 = math.tanh %420 : vector<8x128xf32>
    %422 = arith.negf %420 : vector<8x128xf32>
    %423 = math.exp %422 : vector<8x128xf32>
    %cst_67 = arith.constant 1.000000e+00 : f32
    %424 = vector.broadcast %cst_67 : f32 to vector<8x128xf32>
    %425 = arith.addf %424, %423 : vector<8x128xf32>
    %426 = arith.divf %424, %425 : vector<8x128xf32>
    %427 = arith.select %13, %421, %426 : vector<8x128xi1>, vector<8x128xf32>
    %428 = vector.extract_strided_slice %427 {offsets = [0, 0], sizes = [8, 32], strides = [1, 1]} : vector<8x128xf32> to vector<8x32xf32>
    %429 = vector.extract_strided_slice %427 {offsets = [0, 32], sizes = [8, 32], strides = [1, 1]} : vector<8x128xf32> to vector<8x32xf32>
    %430 = vector.extract_strided_slice %427 {offsets = [0, 64], sizes = [8, 32], strides = [1, 1]} : vector<8x128xf32> to vector<8x32xf32>
    %431 = vector.extract_strided_slice %427 {offsets = [0, 96], sizes = [8, 32], strides = [1, 1]} : vector<8x128xf32> to vector<8x32xf32>
    %432 = arith.mulf %429, %393 : vector<8x32xf32>
    %433 = arith.mulf %428, %431 : vector<8x32xf32>
    %434 = arith.addf %432, %433 : vector<8x32xf32>
    %435 = math.tanh %434 : vector<8x32xf32>
    %436 = arith.mulf %430, %435 : vector<8x32xf32>
    %437 = tpu.concatenate %419, %436 in 1 : vector<8x32xf32>, vector<8x32xf32> -> vector<8x64xf32>
    %cst_68 = arith.constant dense<0.000000e+00> : vector<8x256xf32>
    %438 = tpu.matmul %437, %9, %cst_68 {dimension_numbers = #tpu.dot_dimension_numbers<[1], [0], [0], [1], [0, 0, 1, 1], [], []>} : vector<8x64xf32>, vector<64x256xf32>, vector<8x256xf32> -> vector<8x256xf32>
    %439 = vector.broadcast %10 : vector<1x256xf32> to vector<8x256xf32>
    %440 = arith.addf %438, %439 : vector<8x256xf32>
    %c11 = arith.constant 11 : index
    %c0_69 = arith.constant 0 : index
    %c0_70 = arith.constant 0 : index
    %441 = vector.load %arg8[%c11, %c0_69, %c0_70] : memref<16x8x128xf32, #tpu.memory_space<vmem>>, vector<1x8x128xf32>
    %442 = vector.shape_cast %441 : vector<1x8x128xf32> to vector<8x128xf32>
    %443 = vector.extract_strided_slice %440 {offsets = [0, 0], sizes = [8, 128], strides = [1, 1]} : vector<8x256xf32> to vector<8x128xf32>
    %444 = arith.addf %442, %443 : vector<8x128xf32>
    %445 = math.tanh %444 : vector<8x128xf32>
    %446 = arith.negf %444 : vector<8x128xf32>
    %447 = math.exp %446 : vector<8x128xf32>
    %cst_71 = arith.constant 1.000000e+00 : f32
    %448 = vector.broadcast %cst_71 : f32 to vector<8x128xf32>
    %449 = arith.addf %448, %447 : vector<8x128xf32>
    %450 = arith.divf %448, %449 : vector<8x128xf32>
    %451 = arith.select %13, %445, %450 : vector<8x128xi1>, vector<8x128xf32>
    %452 = vector.extract_strided_slice %451 {offsets = [0, 0], sizes = [8, 32], strides = [1, 1]} : vector<8x128xf32> to vector<8x32xf32>
    %453 = vector.extract_strided_slice %451 {offsets = [0, 32], sizes = [8, 32], strides = [1, 1]} : vector<8x128xf32> to vector<8x32xf32>
    %454 = vector.extract_strided_slice %451 {offsets = [0, 64], sizes = [8, 32], strides = [1, 1]} : vector<8x128xf32> to vector<8x32xf32>
    %455 = vector.extract_strided_slice %451 {offsets = [0, 96], sizes = [8, 32], strides = [1, 1]} : vector<8x128xf32> to vector<8x32xf32>
    %456 = arith.mulf %453, %417 : vector<8x32xf32>
    %457 = arith.mulf %452, %455 : vector<8x32xf32>
    %458 = arith.addf %456, %457 : vector<8x32xf32>
    %459 = math.tanh %458 : vector<8x32xf32>
    %460 = arith.mulf %454, %459 : vector<8x32xf32>
    %461 = vector.extract_strided_slice %440 {offsets = [0, 128], sizes = [8, 128], strides = [1, 1]} : vector<8x256xf32> to vector<8x128xf32>
    %462 = math.tanh %461 : vector<8x128xf32>
    %463 = arith.negf %461 : vector<8x128xf32>
    %464 = math.exp %463 : vector<8x128xf32>
    %cst_72 = arith.constant 1.000000e+00 : f32
    %465 = vector.broadcast %cst_72 : f32 to vector<8x128xf32>
    %466 = arith.addf %465, %464 : vector<8x128xf32>
    %467 = arith.divf %465, %466 : vector<8x128xf32>
    %468 = arith.select %13, %462, %467 : vector<8x128xi1>, vector<8x128xf32>
    %469 = vector.extract_strided_slice %468 {offsets = [0, 0], sizes = [8, 32], strides = [1, 1]} : vector<8x128xf32> to vector<8x32xf32>
    %470 = vector.extract_strided_slice %468 {offsets = [0, 32], sizes = [8, 32], strides = [1, 1]} : vector<8x128xf32> to vector<8x32xf32>
    %471 = vector.extract_strided_slice %468 {offsets = [0, 64], sizes = [8, 32], strides = [1, 1]} : vector<8x128xf32> to vector<8x32xf32>
    %472 = vector.extract_strided_slice %468 {offsets = [0, 96], sizes = [8, 32], strides = [1, 1]} : vector<8x128xf32> to vector<8x32xf32>
    %473 = arith.mulf %470, %434 : vector<8x32xf32>
    %474 = arith.mulf %469, %472 : vector<8x32xf32>
    %475 = arith.addf %473, %474 : vector<8x32xf32>
    %476 = math.tanh %475 : vector<8x32xf32>
    %477 = arith.mulf %471, %476 : vector<8x32xf32>
    %478 = tpu.concatenate %460, %477 in 1 : vector<8x32xf32>, vector<8x32xf32> -> vector<8x64xf32>
    %cst_73 = arith.constant dense<0.000000e+00> : vector<8x256xf32>
    %479 = tpu.matmul %478, %9, %cst_73 {dimension_numbers = #tpu.dot_dimension_numbers<[1], [0], [0], [1], [0, 0, 1, 1], [], []>} : vector<8x64xf32>, vector<64x256xf32>, vector<8x256xf32> -> vector<8x256xf32>
    %480 = vector.broadcast %10 : vector<1x256xf32> to vector<8x256xf32>
    %481 = arith.addf %479, %480 : vector<8x256xf32>
    %c12 = arith.constant 12 : index
    %c0_74 = arith.constant 0 : index
    %c0_75 = arith.constant 0 : index
    %482 = vector.load %arg8[%c12, %c0_74, %c0_75] : memref<16x8x128xf32, #tpu.memory_space<vmem>>, vector<1x8x128xf32>
    %483 = vector.shape_cast %482 : vector<1x8x128xf32> to vector<8x128xf32>
    %484 = vector.extract_strided_slice %481 {offsets = [0, 0], sizes = [8, 128], strides = [1, 1]} : vector<8x256xf32> to vector<8x128xf32>
    %485 = arith.addf %483, %484 : vector<8x128xf32>
    %486 = math.tanh %485 : vector<8x128xf32>
    %487 = arith.negf %485 : vector<8x128xf32>
    %488 = math.exp %487 : vector<8x128xf32>
    %cst_76 = arith.constant 1.000000e+00 : f32
    %489 = vector.broadcast %cst_76 : f32 to vector<8x128xf32>
    %490 = arith.addf %489, %488 : vector<8x128xf32>
    %491 = arith.divf %489, %490 : vector<8x128xf32>
    %492 = arith.select %13, %486, %491 : vector<8x128xi1>, vector<8x128xf32>
    %493 = vector.extract_strided_slice %492 {offsets = [0, 0], sizes = [8, 32], strides = [1, 1]} : vector<8x128xf32> to vector<8x32xf32>
    %494 = vector.extract_strided_slice %492 {offsets = [0, 32], sizes = [8, 32], strides = [1, 1]} : vector<8x128xf32> to vector<8x32xf32>
    %495 = vector.extract_strided_slice %492 {offsets = [0, 64], sizes = [8, 32], strides = [1, 1]} : vector<8x128xf32> to vector<8x32xf32>
    %496 = vector.extract_strided_slice %492 {offsets = [0, 96], sizes = [8, 32], strides = [1, 1]} : vector<8x128xf32> to vector<8x32xf32>
    %497 = arith.mulf %494, %458 : vector<8x32xf32>
    %498 = arith.mulf %493, %496 : vector<8x32xf32>
    %499 = arith.addf %497, %498 : vector<8x32xf32>
    %500 = math.tanh %499 : vector<8x32xf32>
    %501 = arith.mulf %495, %500 : vector<8x32xf32>
    %502 = vector.extract_strided_slice %481 {offsets = [0, 128], sizes = [8, 128], strides = [1, 1]} : vector<8x256xf32> to vector<8x128xf32>
    %503 = math.tanh %502 : vector<8x128xf32>
    %504 = arith.negf %502 : vector<8x128xf32>
    %505 = math.exp %504 : vector<8x128xf32>
    %cst_77 = arith.constant 1.000000e+00 : f32
    %506 = vector.broadcast %cst_77 : f32 to vector<8x128xf32>
    %507 = arith.addf %506, %505 : vector<8x128xf32>
    %508 = arith.divf %506, %507 : vector<8x128xf32>
    %509 = arith.select %13, %503, %508 : vector<8x128xi1>, vector<8x128xf32>
    %510 = vector.extract_strided_slice %509 {offsets = [0, 0], sizes = [8, 32], strides = [1, 1]} : vector<8x128xf32> to vector<8x32xf32>
    %511 = vector.extract_strided_slice %509 {offsets = [0, 32], sizes = [8, 32], strides = [1, 1]} : vector<8x128xf32> to vector<8x32xf32>
    %512 = vector.extract_strided_slice %509 {offsets = [0, 64], sizes = [8, 32], strides = [1, 1]} : vector<8x128xf32> to vector<8x32xf32>
    %513 = vector.extract_strided_slice %509 {offsets = [0, 96], sizes = [8, 32], strides = [1, 1]} : vector<8x128xf32> to vector<8x32xf32>
    %514 = arith.mulf %511, %475 : vector<8x32xf32>
    %515 = arith.mulf %510, %513 : vector<8x32xf32>
    %516 = arith.addf %514, %515 : vector<8x32xf32>
    %517 = math.tanh %516 : vector<8x32xf32>
    %518 = arith.mulf %512, %517 : vector<8x32xf32>
    %519 = tpu.concatenate %501, %518 in 1 : vector<8x32xf32>, vector<8x32xf32> -> vector<8x64xf32>
    %cst_78 = arith.constant dense<0.000000e+00> : vector<8x256xf32>
    %520 = tpu.matmul %519, %9, %cst_78 {dimension_numbers = #tpu.dot_dimension_numbers<[1], [0], [0], [1], [0, 0, 1, 1], [], []>} : vector<8x64xf32>, vector<64x256xf32>, vector<8x256xf32> -> vector<8x256xf32>
    %521 = vector.broadcast %10 : vector<1x256xf32> to vector<8x256xf32>
    %522 = arith.addf %520, %521 : vector<8x256xf32>
    %c13 = arith.constant 13 : index
    %c0_79 = arith.constant 0 : index
    %c0_80 = arith.constant 0 : index
    %523 = vector.load %arg8[%c13, %c0_79, %c0_80] : memref<16x8x128xf32, #tpu.memory_space<vmem>>, vector<1x8x128xf32>
    %524 = vector.shape_cast %523 : vector<1x8x128xf32> to vector<8x128xf32>
    %525 = vector.extract_strided_slice %522 {offsets = [0, 0], sizes = [8, 128], strides = [1, 1]} : vector<8x256xf32> to vector<8x128xf32>
    %526 = arith.addf %524, %525 : vector<8x128xf32>
    %527 = math.tanh %526 : vector<8x128xf32>
    %528 = arith.negf %526 : vector<8x128xf32>
    %529 = math.exp %528 : vector<8x128xf32>
    %cst_81 = arith.constant 1.000000e+00 : f32
    %530 = vector.broadcast %cst_81 : f32 to vector<8x128xf32>
    %531 = arith.addf %530, %529 : vector<8x128xf32>
    %532 = arith.divf %530, %531 : vector<8x128xf32>
    %533 = arith.select %13, %527, %532 : vector<8x128xi1>, vector<8x128xf32>
    %534 = vector.extract_strided_slice %533 {offsets = [0, 0], sizes = [8, 32], strides = [1, 1]} : vector<8x128xf32> to vector<8x32xf32>
    %535 = vector.extract_strided_slice %533 {offsets = [0, 32], sizes = [8, 32], strides = [1, 1]} : vector<8x128xf32> to vector<8x32xf32>
    %536 = vector.extract_strided_slice %533 {offsets = [0, 64], sizes = [8, 32], strides = [1, 1]} : vector<8x128xf32> to vector<8x32xf32>
    %537 = vector.extract_strided_slice %533 {offsets = [0, 96], sizes = [8, 32], strides = [1, 1]} : vector<8x128xf32> to vector<8x32xf32>
    %538 = arith.mulf %535, %499 : vector<8x32xf32>
    %539 = arith.mulf %534, %537 : vector<8x32xf32>
    %540 = arith.addf %538, %539 : vector<8x32xf32>
    %541 = math.tanh %540 : vector<8x32xf32>
    %542 = arith.mulf %536, %541 : vector<8x32xf32>
    %543 = vector.extract_strided_slice %522 {offsets = [0, 128], sizes = [8, 128], strides = [1, 1]} : vector<8x256xf32> to vector<8x128xf32>
    %544 = math.tanh %543 : vector<8x128xf32>
    %545 = arith.negf %543 : vector<8x128xf32>
    %546 = math.exp %545 : vector<8x128xf32>
    %cst_82 = arith.constant 1.000000e+00 : f32
    %547 = vector.broadcast %cst_82 : f32 to vector<8x128xf32>
    %548 = arith.addf %547, %546 : vector<8x128xf32>
    %549 = arith.divf %547, %548 : vector<8x128xf32>
    %550 = arith.select %13, %544, %549 : vector<8x128xi1>, vector<8x128xf32>
    %551 = vector.extract_strided_slice %550 {offsets = [0, 0], sizes = [8, 32], strides = [1, 1]} : vector<8x128xf32> to vector<8x32xf32>
    %552 = vector.extract_strided_slice %550 {offsets = [0, 32], sizes = [8, 32], strides = [1, 1]} : vector<8x128xf32> to vector<8x32xf32>
    %553 = vector.extract_strided_slice %550 {offsets = [0, 64], sizes = [8, 32], strides = [1, 1]} : vector<8x128xf32> to vector<8x32xf32>
    %554 = vector.extract_strided_slice %550 {offsets = [0, 96], sizes = [8, 32], strides = [1, 1]} : vector<8x128xf32> to vector<8x32xf32>
    %555 = arith.mulf %552, %516 : vector<8x32xf32>
    %556 = arith.mulf %551, %554 : vector<8x32xf32>
    %557 = arith.addf %555, %556 : vector<8x32xf32>
    %558 = math.tanh %557 : vector<8x32xf32>
    %559 = arith.mulf %553, %558 : vector<8x32xf32>
    %560 = tpu.concatenate %542, %559 in 1 : vector<8x32xf32>, vector<8x32xf32> -> vector<8x64xf32>
    %cst_83 = arith.constant dense<0.000000e+00> : vector<8x256xf32>
    %561 = tpu.matmul %560, %9, %cst_83 {dimension_numbers = #tpu.dot_dimension_numbers<[1], [0], [0], [1], [0, 0, 1, 1], [], []>} : vector<8x64xf32>, vector<64x256xf32>, vector<8x256xf32> -> vector<8x256xf32>
    %562 = vector.broadcast %10 : vector<1x256xf32> to vector<8x256xf32>
    %563 = arith.addf %561, %562 : vector<8x256xf32>
    %c14 = arith.constant 14 : index
    %c0_84 = arith.constant 0 : index
    %c0_85 = arith.constant 0 : index
    %564 = vector.load %arg8[%c14, %c0_84, %c0_85] : memref<16x8x128xf32, #tpu.memory_space<vmem>>, vector<1x8x128xf32>
    %565 = vector.shape_cast %564 : vector<1x8x128xf32> to vector<8x128xf32>
    %566 = vector.extract_strided_slice %563 {offsets = [0, 0], sizes = [8, 128], strides = [1, 1]} : vector<8x256xf32> to vector<8x128xf32>
    %567 = arith.addf %565, %566 : vector<8x128xf32>
    %568 = math.tanh %567 : vector<8x128xf32>
    %569 = arith.negf %567 : vector<8x128xf32>
    %570 = math.exp %569 : vector<8x128xf32>
    %cst_86 = arith.constant 1.000000e+00 : f32
    %571 = vector.broadcast %cst_86 : f32 to vector<8x128xf32>
    %572 = arith.addf %571, %570 : vector<8x128xf32>
    %573 = arith.divf %571, %572 : vector<8x128xf32>
    %574 = arith.select %13, %568, %573 : vector<8x128xi1>, vector<8x128xf32>
    %575 = vector.extract_strided_slice %574 {offsets = [0, 0], sizes = [8, 32], strides = [1, 1]} : vector<8x128xf32> to vector<8x32xf32>
    %576 = vector.extract_strided_slice %574 {offsets = [0, 32], sizes = [8, 32], strides = [1, 1]} : vector<8x128xf32> to vector<8x32xf32>
    %577 = vector.extract_strided_slice %574 {offsets = [0, 64], sizes = [8, 32], strides = [1, 1]} : vector<8x128xf32> to vector<8x32xf32>
    %578 = vector.extract_strided_slice %574 {offsets = [0, 96], sizes = [8, 32], strides = [1, 1]} : vector<8x128xf32> to vector<8x32xf32>
    %579 = arith.mulf %576, %540 : vector<8x32xf32>
    %580 = arith.mulf %575, %578 : vector<8x32xf32>
    %581 = arith.addf %579, %580 : vector<8x32xf32>
    %582 = math.tanh %581 : vector<8x32xf32>
    %583 = arith.mulf %577, %582 : vector<8x32xf32>
    %584 = vector.extract_strided_slice %563 {offsets = [0, 128], sizes = [8, 128], strides = [1, 1]} : vector<8x256xf32> to vector<8x128xf32>
    %585 = math.tanh %584 : vector<8x128xf32>
    %586 = arith.negf %584 : vector<8x128xf32>
    %587 = math.exp %586 : vector<8x128xf32>
    %cst_87 = arith.constant 1.000000e+00 : f32
    %588 = vector.broadcast %cst_87 : f32 to vector<8x128xf32>
    %589 = arith.addf %588, %587 : vector<8x128xf32>
    %590 = arith.divf %588, %589 : vector<8x128xf32>
    %591 = arith.select %13, %585, %590 : vector<8x128xi1>, vector<8x128xf32>
    %592 = vector.extract_strided_slice %591 {offsets = [0, 0], sizes = [8, 32], strides = [1, 1]} : vector<8x128xf32> to vector<8x32xf32>
    %593 = vector.extract_strided_slice %591 {offsets = [0, 32], sizes = [8, 32], strides = [1, 1]} : vector<8x128xf32> to vector<8x32xf32>
    %594 = vector.extract_strided_slice %591 {offsets = [0, 64], sizes = [8, 32], strides = [1, 1]} : vector<8x128xf32> to vector<8x32xf32>
    %595 = vector.extract_strided_slice %591 {offsets = [0, 96], sizes = [8, 32], strides = [1, 1]} : vector<8x128xf32> to vector<8x32xf32>
    %596 = arith.mulf %593, %557 : vector<8x32xf32>
    %597 = arith.mulf %592, %595 : vector<8x32xf32>
    %598 = arith.addf %596, %597 : vector<8x32xf32>
    %599 = math.tanh %598 : vector<8x32xf32>
    %600 = arith.mulf %594, %599 : vector<8x32xf32>
    %601 = tpu.concatenate %583, %600 in 1 : vector<8x32xf32>, vector<8x32xf32> -> vector<8x64xf32>
    %cst_88 = arith.constant dense<0.000000e+00> : vector<8x256xf32>
    %602 = tpu.matmul %601, %9, %cst_88 {dimension_numbers = #tpu.dot_dimension_numbers<[1], [0], [0], [1], [0, 0, 1, 1], [], []>} : vector<8x64xf32>, vector<64x256xf32>, vector<8x256xf32> -> vector<8x256xf32>
    %603 = vector.broadcast %10 : vector<1x256xf32> to vector<8x256xf32>
    %604 = arith.addf %602, %603 : vector<8x256xf32>
    %c15 = arith.constant 15 : index
    %c0_89 = arith.constant 0 : index
    %c0_90 = arith.constant 0 : index
    %605 = vector.load %arg8[%c15, %c0_89, %c0_90] : memref<16x8x128xf32, #tpu.memory_space<vmem>>, vector<1x8x128xf32>
    %606 = vector.shape_cast %605 : vector<1x8x128xf32> to vector<8x128xf32>
    %607 = vector.extract_strided_slice %604 {offsets = [0, 0], sizes = [8, 128], strides = [1, 1]} : vector<8x256xf32> to vector<8x128xf32>
    %608 = arith.addf %606, %607 : vector<8x128xf32>
    %609 = math.tanh %608 : vector<8x128xf32>
    %610 = arith.negf %608 : vector<8x128xf32>
    %611 = math.exp %610 : vector<8x128xf32>
    %cst_91 = arith.constant 1.000000e+00 : f32
    %612 = vector.broadcast %cst_91 : f32 to vector<8x128xf32>
    %613 = arith.addf %612, %611 : vector<8x128xf32>
    %614 = arith.divf %612, %613 : vector<8x128xf32>
    %615 = arith.select %13, %609, %614 : vector<8x128xi1>, vector<8x128xf32>
    %616 = vector.extract_strided_slice %615 {offsets = [0, 0], sizes = [8, 32], strides = [1, 1]} : vector<8x128xf32> to vector<8x32xf32>
    %617 = vector.extract_strided_slice %615 {offsets = [0, 32], sizes = [8, 32], strides = [1, 1]} : vector<8x128xf32> to vector<8x32xf32>
    %618 = vector.extract_strided_slice %615 {offsets = [0, 64], sizes = [8, 32], strides = [1, 1]} : vector<8x128xf32> to vector<8x32xf32>
    %619 = vector.extract_strided_slice %615 {offsets = [0, 96], sizes = [8, 32], strides = [1, 1]} : vector<8x128xf32> to vector<8x32xf32>
    %620 = arith.mulf %617, %581 : vector<8x32xf32>
    %621 = arith.mulf %616, %619 : vector<8x32xf32>
    %622 = arith.addf %620, %621 : vector<8x32xf32>
    %623 = math.tanh %622 : vector<8x32xf32>
    %624 = arith.mulf %618, %623 : vector<8x32xf32>
    %625 = vector.extract_strided_slice %604 {offsets = [0, 128], sizes = [8, 128], strides = [1, 1]} : vector<8x256xf32> to vector<8x128xf32>
    %626 = math.tanh %625 : vector<8x128xf32>
    %627 = arith.negf %625 : vector<8x128xf32>
    %628 = math.exp %627 : vector<8x128xf32>
    %cst_92 = arith.constant 1.000000e+00 : f32
    %629 = vector.broadcast %cst_92 : f32 to vector<8x128xf32>
    %630 = arith.addf %629, %628 : vector<8x128xf32>
    %631 = arith.divf %629, %630 : vector<8x128xf32>
    %632 = arith.select %13, %626, %631 : vector<8x128xi1>, vector<8x128xf32>
    %633 = vector.extract_strided_slice %632 {offsets = [0, 0], sizes = [8, 32], strides = [1, 1]} : vector<8x128xf32> to vector<8x32xf32>
    %634 = vector.extract_strided_slice %632 {offsets = [0, 32], sizes = [8, 32], strides = [1, 1]} : vector<8x128xf32> to vector<8x32xf32>
    %635 = vector.extract_strided_slice %632 {offsets = [0, 64], sizes = [8, 32], strides = [1, 1]} : vector<8x128xf32> to vector<8x32xf32>
    %636 = vector.extract_strided_slice %632 {offsets = [0, 96], sizes = [8, 32], strides = [1, 1]} : vector<8x128xf32> to vector<8x32xf32>
    %637 = arith.mulf %634, %598 : vector<8x32xf32>
    %638 = arith.mulf %633, %636 : vector<8x32xf32>
    %639 = arith.addf %637, %638 : vector<8x32xf32>
    %640 = math.tanh %639 : vector<8x32xf32>
    %641 = arith.mulf %635, %640 : vector<8x32xf32>
    %642 = tpu.concatenate %624, %641 in 1 : vector<8x32xf32>, vector<8x32xf32> -> vector<8x64xf32>
    %cst_93 = arith.constant dense<0.000000e+00> : vector<8x256xf32>
    %643 = tpu.matmul %642, %9, %cst_93 {dimension_numbers = #tpu.dot_dimension_numbers<[1], [0], [0], [1], [0, 0, 1, 1], [], []>} : vector<8x64xf32>, vector<64x256xf32>, vector<8x256xf32> -> vector<8x256xf32>
    %644 = vector.broadcast %10 : vector<1x256xf32> to vector<8x256xf32>
    %645 = arith.addf %643, %644 : vector<8x256xf32>
    %646 = vector.extract_strided_slice %645 {offsets = [0, 128], sizes = [8, 128], strides = [1, 1]} : vector<8x256xf32> to vector<8x128xf32>
    %647 = math.tanh %646 : vector<8x128xf32>
    %648 = arith.negf %646 : vector<8x128xf32>
    %649 = math.exp %648 : vector<8x128xf32>
    %cst_94 = arith.constant 1.000000e+00 : f32
    %650 = vector.broadcast %cst_94 : f32 to vector<8x128xf32>
    %651 = arith.addf %650, %649 : vector<8x128xf32>
    %652 = arith.divf %650, %651 : vector<8x128xf32>
    %653 = arith.select %13, %647, %652 : vector<8x128xi1>, vector<8x128xf32>
    %654 = vector.extract_strided_slice %653 {offsets = [0, 0], sizes = [8, 32], strides = [1, 1]} : vector<8x128xf32> to vector<8x32xf32>
    %655 = vector.extract_strided_slice %653 {offsets = [0, 32], sizes = [8, 32], strides = [1, 1]} : vector<8x128xf32> to vector<8x32xf32>
    %656 = vector.extract_strided_slice %653 {offsets = [0, 64], sizes = [8, 32], strides = [1, 1]} : vector<8x128xf32> to vector<8x32xf32>
    %657 = vector.extract_strided_slice %653 {offsets = [0, 96], sizes = [8, 32], strides = [1, 1]} : vector<8x128xf32> to vector<8x32xf32>
    %658 = arith.mulf %655, %639 : vector<8x32xf32>
    %659 = arith.mulf %654, %657 : vector<8x32xf32>
    %660 = arith.addf %658, %659 : vector<8x32xf32>
    %661 = math.tanh %660 : vector<8x32xf32>
    %662 = arith.mulf %656, %661 : vector<8x32xf32>
    %c0_95 = arith.constant 0 : index
    %c0_96 = arith.constant 0 : index
    %663 = vector.load %arg5[%c0_95, %c0_96] : memref<32x128xf32, #tpu.memory_space<vmem>>, vector<32x128xf32>
    %cst_97 = arith.constant dense<0.000000e+00> : vector<8x128xf32>
    %664 = tpu.matmul %662, %663, %cst_97 {dimension_numbers = #tpu.dot_dimension_numbers<[1], [0], [0], [1], [0, 0, 1, 1], [], []>} : vector<8x32xf32>, vector<32x128xf32>, vector<8x128xf32> -> vector<8x128xf32>
    %c0_98 = arith.constant 0 : index
    %c0_99 = arith.constant 0 : index
    %665 = vector.load %arg6[%c0_98, %c0_99] : memref<1x128xf32, #tpu.memory_space<vmem>>, vector<1x128xf32>
    %666 = vector.broadcast %665 : vector<1x128xf32> to vector<8x128xf32>
    %667 = arith.addf %664, %666 : vector<8x128xf32>
    %cst_100 = arith.constant dense<0xFF800000> : vector<8xf32>
    %668 = vector.multi_reduction <maximumf>, %667, %cst_100 [1] : vector<8x128xf32> to vector<8xf32>
    %669 = vector.shape_cast %668 : vector<8xf32> to vector<8x1xf32>
    %670 = vector.broadcast %669 : vector<8x1xf32> to vector<8x128xf32>
    %671 = arith.subf %667, %670 : vector<8x128xf32>
    %672 = math.exp %671 : vector<8x128xf32>
    %cst_101 = arith.constant dense<0.000000e+00> : vector<8xf32>
    %673 = vector.multi_reduction <add>, %672, %cst_101 [1] : vector<8x128xf32> to vector<8xf32>
    %674 = vector.shape_cast %673 : vector<8xf32> to vector<8x1xf32>
    %675 = vector.broadcast %674 : vector<8x1xf32> to vector<8x128xf32>
    %676 = arith.divf %672, %675 : vector<8x128xf32>
    %c0_102 = arith.constant 0 : index
    %c0_103 = arith.constant 0 : index
    %677 = vector.load %arg7[%c0_102, %c0_103] : memref<8x128xf32, #tpu.memory_space<vmem>>, vector<8x128xf32>
    tpu.vector_store %arg7[%c0_102, %c0_103], %676 {strides = array<i32>} : memref<8x128xf32, #tpu.memory_space<vmem>>, vector<8x128xf32>,
    return
  }
}

</mosaic_0001>

<bundles_post_ra>
// kernel: lstm_classifier_forward.1
= control target key start
LH: loop header
LB: loop body
LE: loop exit
PB: predicated region body
PF: predicated region fallthrough
CT: control target
= control target key end

     0   :  { %vm50_vm0 = vcmask 64512   ;;  %v277_v10 = vlaneseq  ;;  %s2968_s8 = smov 64   ;;  %v2969_v34 = vmov 0.0   ;;  %vm304_vm2 = vcmask 261120   ;;  %s2970_s24 = smov 96   ;;  %s3981_s1 = inlined_call_operand.vmem [shape: f32[8,128], index: 1, kind: input, shape index: {}]   ;;  %s3982_s0 = inlined_call_operand.vmem [shape: f32[16,8,8], index: 0, kind: input, shape index: {}]   ;;  %s3983_s2 = inlined_call_operand.vmem [shape: f32[1,128], index: 2, kind: input, shape index: {}]   ;;  %s3984_s3 = inlined_call_operand.vmem [shape: f32[64,256], index: 3, kind: input, shape index: {}]   ;;  %s3985_s4 = inlined_call_operand.vmem [shape: f32[1,256], index: 4, kind: input, shape index: {}]   ;;  %s3986_s5 = inlined_call_operand.vmem [shape: f32[32,128], index: 5, kind: input, shape index: {}]   ;;  %s3987_s6 = inlined_call_operand.vmem [shape: f32[1,128], index: 6, kind: input, shape index: {}]   ;;  %s3988_s7 = inlined_call_operand.vmem [shape: f32[8,128], index: 7, kind: output, shape index: {}]  }
   0x1   :  { %v42_v0 = vld [vmem:[%s3981_s1] sm:$0xff]  ;;  %v27_v2 = vld [vmem:[%s3982_s0 + $0x8] sm:$0xff]  ;;  %s2967_s1 = smov 32   ;;  %v3045_v17 = vld [vmem:[%s3984_s3 + $0x78] sm:$0xff]  ;;  %385 = vmatprep.mubr.f32.mxu1 %v2969_v34  ;;  %vm317_vm3 = vcmask 523264   ;;  %vm2971_vm4 = vmmov 0  }
   0x2   :  { %v26_v1 = vld [vmem:[%s3982_s0] sm:$0xff]  ;;  %2647 = vmatprep.subr.mxu0 %v42_v0  ;;  %v3032_v11 = vand.u32 127, %v277_v10  ;;  %v3050_v18 = vld [vmem:[%s3984_s3 + $0x70] sm:$0xff]  ;;  %v3055_v19 = vld [vmem:[%s3984_s3 + $0x68] sm:$0xff]  ;;  %337 = vmatprep.subr.mxu1 %v3045_v17  ;;  %v308_v39 = vshrl.u32 %v277_v10, 7 }
   0x3   :  { %2649 = vmatprep.mubr.msk.f32.mxu0 %vm50_vm0, %v26_v1  ;;  %2648 = vmatpush3.msra.mxu0 %v42_v0  ;;  %v3028_v4 = vld [vmem:[%s3983_s2] ss:$0 sm:$0xff]  ;;  %v3068_v21 = vld [vmem:[%s3984_s3 + $0x58] sm:$0xff]  ;;  %v3075_v22 = vld [vmem:[%s3984_s3 + $0x50] sm:$0xff] }
   0x4   :  { %2650 = vmatmul.mubr.msk.f32.vlgmr.msra.gmra.mxu0 %vm50_vm0, %v27_v2  ;;  %vm279_vm1 = vcmp.ge.s32.totalorder %v3032_v11, 96  ;;  %v3061_v20 = vld [vmem:[%s3984_s3 + $0x60] sm:$0xff]  ;;  %611 = vmatprep.subr.mxu0 %v3045_v17  ;;  %v3082_v23 = vld [vmem:[%s3984_s3 + $0x48] sm:$0xff]  ;;  %v3096_v25 = vld [vmem:[%s3984_s3 + $0x38] sm:$0xff]  ;;  %v309_v40 = vsub.s32 0, %v308_v39  ;;  %v313_v42 = vsub.s32 1, %v308_v39 }
   0x5   :  { %338 = vmatpush1.msra.mxu1 %v3050_v18  ;;  %612 = vmatpush1.msra.mxu0 %v3050_v18  ;;  %v3089_v24 = vld [vmem:[%s3984_s3 + $0x40] sm:$0xff]  ;;  %v3103_v26 = vld [vmem:[%s3984_s3 + $0x30] sm:$0xff]  ;;  %v3110_v28 = vld [vmem:[%s3984_s3 + $0x28] sm:$0xff] }
   0x6   :  { %339 = vmatprep.subr.mxu1 %v3055_v19  ;;  %613 = vmatprep.subr.mxu0 %v3055_v19  ;;  %v3118_v29 = vld [vmem:[%s3984_s3 + $0x20] sm:$0xff]  ;;  %v3124_v30 = vld [vmem:[%s3984_s3 + $0x18] sm:$0xff]  ;;  %v3131_v31 = vld [vmem:[%s3984_s3 + $0x10] sm:$0xff] }
   0x7   :  { %340 = vmatpush1.msra.mxu1 %v3061_v20  ;;  %614 = vmatpush1.msra.mxu0 %v3061_v20  ;;  %v3138_v32 = vld [vmem:[%s3984_s3 + $0x8] sm:$0xff]  ;;  %v3152_v33 = vld [vmem:[%s3984_s3] sm:$0xff]  ;;  %v29_v10 = vld [vmem:[%s3982_s0 + $0x18] sm:$0xff] }
   0x8   :  { %341 = vmatprep.subr.mxu1 %v3068_v21  ;;  %615 = vmatprep.subr.mxu0 %v3068_v21  ;;  %v276_v41 = vld [vmem:[%s3985_s4] sm:$0x3]  ;;  %v2459_v11 = vld [vmem:[%s3986_s5 + $0x8] sm:$0xff] }
   0x9   :  { %342 = vmatpush1.msra.mxu1 %v3075_v22  ;;  %616 = vmatpush1.msra.mxu0 %v3075_v22  ;;  %v3184_v43 = vrot.slane %v276_v41, %v309_v40  ;;  %v3186_v44 = vrot.slane %v276_v41, %v313_v42 }
   0xa   :  { %343 = vmatprep.subr.mxu1 %v3082_v23  ;;  %617 = vmatprep.subr.mxu0 %v3082_v23 }
   0xb   :  { %344 = vmatpush1.msra.mxu1 %v3089_v24  ;;  %618 = vmatpush1.msra.mxu0 %v3089_v24 }
   0xc   :  { %345 = vmatprep.subr.mxu1 %v3096_v25  ;;  %619 = vmatprep.subr.mxu0 %v3096_v25 }
   0xd   :  { %346 = vmatpush1.msra.mxu1 %v3103_v26  ;;  %620 = vmatpush1.msra.mxu0 %v3103_v26 }
   0xe   :  { %347 = vmatprep.subr.mxu1 %v3110_v28  ;;  %621 = vmatprep.subr.mxu0 %v3110_v28 }
   0xf   :  { %348 = vmatpush1.msra.mxu1 %v3118_v29  ;;  %622 = vmatpush1.msra.mxu0 %v3118_v29 }
  0x10   :  { %349 = vmatprep.subr.mxu1 %v3124_v30  ;;  %623 = vmatprep.subr.mxu0 %v3124_v30 }
  0x11   :  { %350 = vmatpush1.msra.mxu1 %v3131_v31  ;;  %624 = vmatpush1.msra.mxu0 %v3131_v31 }
  0x12   :  { %351 = vmatprep.subr.mxu1 %v3138_v32  ;;  %625 = vmatprep.subr.mxu0 %v3138_v32 }
  0x13   :  { %352 = vmatpush1.msra.mxu1 %v3152_v33  ;;  %626 = vmatpush1.msra.mxu0 %v3152_v33 }
  0x14   :  { %471 = vmatprep.subr.mxu1 %v3045_v17  ;;  %883 = vmatprep.subr.mxu0 %v3045_v17 }
  0xc4   :  { %v3023_v3 = vpop.f32.mrf.mxu0 }
  0xc5   :  { %v171_v46 = vadd.f32 %v3023_v3, %v3028_v4 }
  0xc6   :  { %v165_v5 = vpop.f32.mrf.mxu0 }
  0xc7   :  { %v166_v6 = vadd.f32 %v3028_v4, %v165_v5 }
  0xc9   :  { %v2575_v7 = vmul.f32 -1.442695, %v166_v6 }
  0xcb   :  { %2689 = vpow2.f32 %v2575_v7 }
  0xcc   :  { %2691 = vtanh.f32 %v166_v6 }
  0xd8   :  { %v2690_v8 = vpop.eup %2689 }
  0xd9   :  { %v285_v9 = vadd.f32 1.0, %v2690_v8  ;;  %v2692_v12 = vpop.eup %2691 }
  0xdb   :  { %2693 = vrcp.f32 %v285_v9  ;;  %v28_v9 = vld [vmem:[%s3982_s0 + $0x10] sm:$0xff] }
  0xdc   :  { %2652 = vmatprep.mubr.msk.f32.mxu0 %vm50_vm0, %v28_v9  ;;  %v31_v9 = vld [vmem:[%s3982_s0 + $0x28] sm:$0xff] }
  0xdd   :  { %2653 = vmatmul.mubr.msk.f32.gmra.mxu0 %vm50_vm0, %v29_v10  ;;  %v33_v10 = vld [vmem:[%s3982_s0 + $0x38] sm:$0xff] }
  0xe8   :  { %v2694_v13 = vpop.eup %2693 }
  0xe9   :  { %v3037_v14 = vsel %vm279_vm1, %v2692_v12, %v2694_v13 }
  0xea   :  { %290 = vrot.lane.b32.xlu0 %v3037_v14, %s2967_s1 }
 0x15c   :  { %v291_v15 = vpop.permute.xlu0 %290 }
 0x15d   :  { %v293_v16 = vmul.f32 %v291_v15, %v3037_v14 }
 0x15f   :  { %2695 = vtanh.f32 %v293_v16 }
 0x16c   :  { %v2696_v27 = vpop.eup %2695 }
 0x16d   :  { %296 = vrot.lane.b32.xlu0 %v2696_v27, %s2968_s8 }
 0x171   :  { %404 = vrot.lane.b32.xlu0 %v293_v16, %s2967_s1 }
 0x1df   :  { %v297_v35 = vpop.permute.xlu0 %296 }
 0x1e0   :  { %v299_v36 = vmul.f32 %v297_v35, %v3037_v14 }
 0x1e2   :  { %301 = vrot.lane.b32.xlu1 %v299_v36, %s2968_s8 }
 0x1e3   :  { %v405_v63 = vpop.permute.xlu0 %404 }
 0x254   :  { %v302_v37 = vpop.permute.xlu1 %301 }
 0x255   :  { %v305_v38 = vsel %vm304_vm2, %v302_v37, 0.0  ;;  %v3236_v37 = vpop.f32.mrf.mxu0 }
 0x256   :  { %2576 = vmatmul.mubr.msk.f32.vlgmr.msra.gmra.mxu1 %vm317_vm3, %v305_v38 }
 0x257   :  { %472 = vmatpush1.msra.mxu1 %v3050_v18  ;;  %519 = vmatprep.mubr.f32.mxu1 %v2969_v34  ;;  %v175_v38 = vpop.f32.mrf.mxu0 }
 0x258   :  { %473 = vmatprep.subr.mxu1 %v3055_v19  ;;  %v176_v40 = vadd.f32 %v3028_v4, %v175_v38  ;;  %v40_v38 = vld [vmem:[%s3982_s0 + $0x70] sm:$0xff] }
 0x259   :  { %474 = vmatpush1.msra.mxu1 %v3061_v20 }
 0x25a   :  { %475 = vmatprep.subr.mxu1 %v3068_v21 }
 0x25b   :  { %476 = vmatpush1.msra.mxu1 %v3075_v22 }
 0x25c   :  { %477 = vmatprep.subr.mxu1 %v3082_v23 }
 0x25d   :  { %478 = vmatpush1.msra.mxu1 %v3089_v24 }
 0x25e   :  { %479 = vmatprep.subr.mxu1 %v3096_v25 }
 0x25f   :  { %480 = vmatpush1.msra.mxu1 %v3103_v26 }
 0x260   :  { %481 = vmatprep.subr.mxu1 %v3110_v28 }
 0x261   :  { %482 = vmatpush1.msra.mxu1 %v3118_v29 }
 0x262   :  { %483 = vmatprep.subr.mxu1 %v3124_v30 }
 0x263   :  { %484 = vmatpush1.msra.mxu1 %v3131_v31 }
 0x264   :  { %485 = vmatprep.subr.mxu1 %v3138_v32 }
 0x265   :  { %486 = vmatpush1.msra.mxu1 %v3152_v33 }
 0x266   :  { %747 = vmatprep.subr.mxu1 %v3045_v17 }
 0x316   :  { %v387_v45 = vpop.f32.mrf.mxu1 }
 0x317   :  { %v388_v47 = vadd.f32 %v387_v45, %v3184_v43 }
 0x318   :  { %v389_v48 = vpop.f32.mrf.mxu1 }
 0x319   :  { %v394_v49 = vadd.f32 %v388_v47, %v171_v46  ;;  %v390_v50 = vadd.f32 %v389_v48, %v3186_v44 }
 0x31b   :  { %v2577_v51 = vmul.f32 -1.442695, %v394_v49  ;;  %v2578_v52 = vmul.f32 -1.442695, %v390_v50 }
 0x31d   :  { %2697 = vpow2.f32 %v2577_v51 }
 0x31e   :  { %2699 = vpow2.f32 %v2578_v52 }
 0x31f   :  { %2701 = vtanh.f32 %v394_v49 }
 0x320   :  { %2703 = vtanh.f32 %v390_v50 }
 0x32a   :  { %v2698_v53 = vpop.eup %2697 }
 0x32b   :  { %v2700_v54 = vpop.eup %2699  ;;  %v399_v55 = vadd.f32 1.0, %v2698_v53 }
 0x32c   :  { %v428_v56 = vadd.f32 1.0, %v2700_v54  ;;  %v2702_v57 = vpop.eup %2701 }
 0x32d   :  { %2705 = vrcp.f32 %v399_v55  ;;  %v2704_v58 = vpop.eup %2703 }
 0x32e   :  { %2707 = vrcp.f32 %v428_v56 }
 0x33a   :  { %v2706_v59 = vpop.eup %2705 }
 0x33b   :  { %v2708_v60 = vpop.eup %2707  ;;  %v402_v61 = vsel %vm279_vm1, %v2702_v57, %v2706_v59 }
 0x33c   :  { %v431_v62 = vsel %vm279_vm1, %v2704_v58, %v2708_v60  ;;  %409 = vrot.lane.b32.xlu1 %v402_v61, %s2967_s1  ;;  %v407_v6 = vmul.f32 %v405_v63, %v402_v61 }
 0x33d   :  { %433 = vrot.lane.b32.xlu0 %v431_v62, %s2967_s1 }
 0x3ae   :  { %v410_v0 = vpop.permute.xlu1 %409 }
 0x3af   :  { %v412_v1 = vmul.f32 %v410_v0, %v402_v61  ;;  %v434_v2 = vpop.permute.xlu0 %433 }
 0x3b0   :  { %v3198_v3 = vmul.f32 %v434_v2, %v431_v62 }
 0x3b1   :  { %414 = vrot.lane.b32.xlu1 %v412_v1, %s2967_s1 }
 0x3b2   :  { %2709 = vtanh.f32 %v3198_v3 }
 0x3bf   :  { %v2710_v5 = vpop.eup %2709 }
 0x3c0   :  { %439 = vrot.lane.b32.xlu0 %v2710_v5, %s2968_s8 }
 0x423   :  { %v415_v7 = vpop.permute.xlu1 %414 }
 0x424   :  { %v3203_v8 = vadd.f32 %v415_v7, %v407_v6 }
 0x426   :  { %2711 = vtanh.f32 %v3203_v8 }
 0x432   :  { %v440_v12 = vpop.permute.xlu0 %439 }
 0x433   :  { %v2712_v13 = vpop.eup %2711  ;;  %v442_v14 = vmul.f32 %v440_v12, %v431_v62  ;;  %v34_v12 = vld [vmem:[%s3982_s0 + $0x40] sm:$0xff] }
 0x434   :  { %420 = vrot.lane.b32.xlu1 %v2712_v13, %s2967_s1  ;;  %v35_v13 = vld [vmem:[%s3982_s0 + $0x48] sm:$0xff] }
 0x435   :  { %448 = vrot.lane.b32.xlu0 %v442_v14, %s2970_s24  ;;  %v36_v14 = vld [vmem:[%s3982_s0 + $0x50] sm:$0xff] }
 0x4a6   :  { %v421_v15 = vpop.permute.xlu1 %420 }
 0x4a7   :  { %v423_v16 = vmul.f32 %v421_v15, %v402_v61  ;;  %v449_v27 = vpop.permute.xlu0 %448 }
 0x4a9   :  { %444 = vrot.lane.b32.xlu1 %v423_v16, %s2968_s8 }
 0x51b   :  { %v445_v35 = vpop.permute.xlu1 %444 }
 0x51c   :  { %v451_v36 = vsel %vm304_vm2, %v445_v35, %v449_v27  ;;  %v37_v27 = vld [vmem:[%s3982_s0 + $0x58] sm:$0xff]  ;;  %v38_v35 = vld [vmem:[%s3982_s0 + $0x60] sm:$0xff] }
 0x51d   :  { %2579 = vmatmul.mubr.msk.f32.vlgmr.msra.gmra.mxu1 %vm317_vm3, %v451_v36  ;;  %v39_v36 = vld [vmem:[%s3982_s0 + $0x68] sm:$0xff] }
 0x51e   :  { %748 = vmatpush1.msra.mxu1 %v3050_v18  ;;  %795 = vmatprep.mubr.f32.mxu1 %v2969_v34 }
 0x51f   :  { %749 = vmatprep.subr.mxu1 %v3055_v19 }
 0x520   :  { %750 = vmatpush1.msra.mxu1 %v3061_v20 }
 0x521   :  { %751 = vmatprep.subr.mxu1 %v3068_v21 }
 0x522   :  { %752 = vmatpush1.msra.mxu1 %v3075_v22 }
 0x523   :  { %753 = vmatprep.subr.mxu1 %v3082_v23 }
 0x524   :  { %754 = vmatpush1.msra.mxu1 %v3089_v24 }
 0x525   :  { %755 = vmatprep.subr.mxu1 %v3096_v25 }
 0x526   :  { %756 = vmatpush1.msra.mxu1 %v3103_v26 }
 0x527   :  { %757 = vmatprep.subr.mxu1 %v3110_v28 }
 0x528   :  { %758 = vmatpush1.msra.mxu1 %v3118_v29 }
 0x529   :  { %759 = vmatprep.subr.mxu1 %v3124_v30 }
 0x52a   :  { %760 = vmatpush1.msra.mxu1 %v3131_v31 }
 0x52b   :  { %761 = vmatprep.subr.mxu1 %v3138_v32 }
 0x52c   :  { %762 = vmatpush1.msra.mxu1 %v3152_v33 }
 0x52d   :  { %1019 = vmatprep.subr.mxu1 %v3045_v17 }
 0x5dd   :  { %v521_v39 = vpop.f32.mrf.mxu1 }
 0x5de   :  { %v522_v41 = vadd.f32 %v521_v39, %v3184_v43  ;;  %v41_v39 = vld [vmem:[%s3982_s0 + $0x78] sm:$0xff] }
 0x5df   :  { %v523_v42 = vpop.f32.mrf.mxu1 }
 0x5e0   :  { %v528_v45 = vadd.f32 %v522_v41, %v176_v40  ;;  %v524_v46 = vadd.f32 %v523_v42, %v3186_v44 }
 0x5e2   :  { %v2580_v47 = vmul.f32 -1.442695, %v528_v45  ;;  %v2581_v48 = vmul.f32 -1.442695, %v524_v46 }
 0x5e4   :  { %2713 = vpow2.f32 %v2580_v47 }
 0x5e5   :  { %2715 = vpow2.f32 %v2581_v48 }
 0x5e6   :  { %2717 = vtanh.f32 %v528_v45 }
 0x5e7   :  { %2719 = vtanh.f32 %v524_v46 }
 0x5f1   :  { %v2714_v49 = vpop.eup %2713 }
 0x5f2   :  { %v2716_v50 = vpop.eup %2715  ;;  %v533_v51 = vadd.f32 1.0, %v2714_v49 }
 0x5f3   :  { %v558_v52 = vadd.f32 1.0, %v2716_v50  ;;  %v2718_v53 = vpop.eup %2717 }
 0x5f4   :  { %2721 = vrcp.f32 %v533_v51  ;;  %v2720_v54 = vpop.eup %2719 }
 0x5f5   :  { %2723 = vrcp.f32 %v558_v52 }
 0x601   :  { %v2722_v55 = vpop.eup %2721 }
 0x602   :  { %v2724_v56 = vpop.eup %2723  ;;  %v536_v57 = vsel %vm279_vm1, %v2718_v53, %v2722_v55 }
 0x603   :  { %v561_v58 = vsel %vm279_vm1, %v2720_v54, %v2724_v56  ;;  %539 = vrot.lane.b32.xlu1 %v536_v57, %s2967_s1  ;;  %v537_v0 = vmul.f32 %v536_v57, %v3203_v8  ;;  %v32_v8 = vld [vmem:[%s3982_s0 + $0x30] sm:$0xff] }
 0x604   :  { %568 = vrot.lane.b32.xlu0 %v561_v58, %s2967_s1 }
 0x607   :  { %563 = vrot.lane.b32.xlu1 %v3198_v3, %s2967_s1  ;;  %v30_v3 = vld [vmem:[%s3982_s0 + $0x20] sm:$0xff] }
 0x608   :  { %2655 = vmatprep.mubr.msk.f32.mxu0 %vm50_vm0, %v30_v3 }
 0x609   :  { %2656 = vmatmul.mubr.msk.f32.gmra.mxu0 %vm50_vm0, %v31_v9 }
 0x60a   :  { %2658 = vmatprep.mubr.msk.f32.mxu0 %vm50_vm0, %v32_v8 }
 0x60d   :  { %2659 = vmatmul.mubr.msk.f32.gmra.mxu0 %vm50_vm0, %v33_v10 }
 0x60e   :  { %2661 = vmatprep.mubr.msk.f32.mxu0 %vm50_vm0, %v34_v12 }
 0x611   :  { %2662 = vmatmul.mubr.msk.f32.gmra.mxu0 %vm50_vm0, %v35_v13 }
 0x612   :  { %2664 = vmatprep.mubr.msk.f32.mxu0 %vm50_vm0, %v36_v14 }
 0x615   :  { %2665 = vmatmul.mubr.msk.f32.gmra.mxu0 %vm50_vm0, %v37_v27 }
 0x616   :  { %2667 = vmatprep.mubr.msk.f32.mxu0 %vm50_vm0, %v38_v35 }
 0x619   :  { %2668 = vmatmul.mubr.msk.f32.gmra.mxu0 %vm50_vm0, %v39_v36 }
 0x61a   :  { %2670 = vmatprep.mubr.msk.f32.mxu0 %vm50_vm0, %v40_v38 }
 0x61d   :  { %2671 = vmatmul.mubr.msk.f32.gmra.mxu0 %vm50_vm0, %v41_v39 }
 0x61e   :  { %659 = vmatprep.mubr.f32.mxu0 %v2969_v34 }
 0x675   :  { %v540_v59 = vpop.permute.xlu1 %539 }
 0x676   :  { %v569_v60 = vpop.permute.xlu0 %568  ;;  %v542_v61 = vmul.f32 %v540_v59, %v536_v57 }
 0x677   :  { %v571_v62 = vmul.f32 %v569_v60, %v561_v58 }
 0x678   :  { %544 = vrot.lane.b32.xlu0 %v542_v61, %s2967_s1 }
 0x679   :  { %573 = vrot.lane.b32.xlu1 %v571_v62, %s2967_s1  ;;  %v564_v63 = vpop.permute.xlu1 %563  ;;  %v181_v62 = vadd.f32 %v3236_v37, %v3028_v4 }
 0x67a   :  { %v566_v1 = vmul.f32 %v564_v63, %v561_v58 }
 0x6c9   :  { %v3330_v49 = vpop.f32.mrf.mxu0 }
 0x6cb   :  { %v3332_v50 = vpop.f32.mrf.mxu0 }
 0x6cd   :  { %v3334_v51 = vpop.f32.mrf.mxu0 }
 0x6cf   :  { %v3336_v52 = vpop.f32.mrf.mxu0 }
 0x6d1   :  { %v3338_v53 = vpop.f32.mrf.mxu0 }
 0x6d3   :  { %v3340_v54 = vpop.f32.mrf.mxu0 }
 0x6d5   :  { %v3342_v55 = vpop.f32.mrf.mxu0 }
 0x6d7   :  { %v3344_v56 = vpop.f32.mrf.mxu0 }
 0x6ea   :  { %v545_v2 = vpop.permute.xlu0 %544 }
 0x6eb   :  { %v3252_v5 = vadd.f32 %v545_v2, %v537_v0  ;;  %v574_v6 = vpop.permute.xlu1 %573 }
 0x6ec   :  { %v3254_v7 = vadd.f32 %v574_v6, %v566_v1 }
 0x6ed   :  { %2725 = vtanh.f32 %v3252_v5 }
 0x6ee   :  { %2727 = vtanh.f32 %v3254_v7 }
 0x6fa   :  { %v2726_v15 = vpop.eup %2725 }
 0x6fb   :  { %v2728_v16 = vpop.eup %2727  ;;  %550 = vrot.lane.b32.xlu0 %v2726_v15, %s2967_s1 }
 0x6fc   :  { %579 = vrot.lane.b32.xlu1 %v2728_v16, %s2967_s1 }
 0x76d   :  { %v551_v40 = vpop.permute.xlu0 %550 }
 0x76e   :  { %v580_v41 = vpop.permute.xlu1 %579  ;;  %v553_v42 = vmul.f32 %v551_v40, %v536_v57  ;;  %v3346_v57 = vpop.f32.mrf.mxu0 }
 0x76f   :  { %v582_v45 = vmul.f32 %v580_v41, %v561_v58 }
 0x770   :  { %584 = vrot.lane.b32.xlu0 %v553_v42, %s2968_s8  ;;  %v3348_v58 = vpop.f32.mrf.mxu0 }
 0x771   :  { %588 = vrot.lane.b32.xlu1 %v582_v45, %s2970_s24 }
 0x772   :  { %v3350_v59 = vpop.f32.mrf.mxu0 }
 0x774   :  { %v3352_v60 = vpop.f32.mrf.mxu0 }
 0x7e2   :  { %v585_v46 = vpop.permute.xlu0 %584 }
 0x7e3   :  { %v589_v47 = vpop.permute.xlu1 %588 }
 0x7e4   :  { %v591_v48 = vsel %vm304_vm2, %v585_v46, %v589_v47 }
 0x7e5   :  { %2582 = vmatmul.mubr.msk.f32.vlgmr.msra.gmra.mxu0 %vm317_vm3, %v591_v48 }
 0x7e6   :  { %884 = vmatpush1.msra.mxu0 %v3050_v18  ;;  %931 = vmatprep.mubr.f32.mxu0 %v2969_v34 }
 0x7e7   :  { %885 = vmatprep.subr.mxu0 %v3055_v19 }
 0x7e8   :  { %886 = vmatpush1.msra.mxu0 %v3061_v20 }
 0x7e9   :  { %887 = vmatprep.subr.mxu0 %v3068_v21 }
 0x7ea   :  { %888 = vmatpush1.msra.mxu0 %v3075_v22 }
 0x7eb   :  { %889 = vmatprep.subr.mxu0 %v3082_v23 }
 0x7ec   :  { %890 = vmatpush1.msra.mxu0 %v3089_v24 }
 0x7ed   :  { %891 = vmatprep.subr.mxu0 %v3096_v25 }
 0x7ee   :  { %892 = vmatpush1.msra.mxu0 %v3103_v26 }
 0x7ef   :  { %893 = vmatprep.subr.mxu0 %v3110_v28 }
 0x7f0   :  { %894 = vmatpush1.msra.mxu0 %v3118_v29 }
 0x7f1   :  { %895 = vmatprep.subr.mxu0 %v3124_v30 }
 0x7f2   :  { %896 = vmatpush1.msra.mxu0 %v3131_v31 }
 0x7f3   :  { %897 = vmatprep.subr.mxu0 %v3138_v32 }
 0x7f4   :  { %898 = vmatpush1.msra.mxu0 %v3152_v33 }
 0x7f5   :  { %1155 = vmatprep.subr.mxu0 %v3045_v17 }
 0x8a5   :  { %v661_v61 = vpop.f32.mrf.mxu0 }
 0x8a6   :  { %v662_v63 = vadd.f32 %v661_v61, %v3184_v43 }
 0x8a7   :  { %v663_v0 = vpop.f32.mrf.mxu0 }
 0x8a8   :  { %v668_v1 = vadd.f32 %v662_v63, %v181_v62  ;;  %v664_v2 = vadd.f32 %v663_v0, %v3186_v44 }
 0x8aa   :  { %v2583_v6 = vmul.f32 -1.442695, %v668_v1  ;;  %v2584_v3 = vmul.f32 -1.442695, %v664_v2 }
 0x8ac   :  { %2729 = vpow2.f32 %v2583_v6 }
 0x8ad   :  { %2731 = vpow2.f32 %v2584_v3  ;;  %v186_v3 = vadd.f32 %v3028_v4, %v3332_v50 }
 0x8ae   :  { %2733 = vtanh.f32 %v668_v1 }
 0x8af   :  { %2735 = vtanh.f32 %v664_v2 }
 0x8b9   :  { %v2730_v9 = vpop.eup %2729 }
 0x8ba   :  { %v2732_v8 = vpop.eup %2731  ;;  %v673_v10 = vadd.f32 1.0, %v2730_v9 }
 0x8bb   :  { %v698_v12 = vadd.f32 1.0, %v2732_v8  ;;  %v2734_v13 = vpop.eup %2733 }
 0x8bc   :  { %2737 = vrcp.f32 %v673_v10  ;;  %v2736_v37 = vpop.eup %2735 }
 0x8bd   :  { %2739 = vrcp.f32 %v698_v12 }
 0x8c9   :  { %v2738_v14 = vpop.eup %2737 }
 0x8ca   :  { %v2740_v15 = vpop.eup %2739  ;;  %v676_v16 = vsel %vm279_vm1, %v2734_v13, %v2738_v14 }
 0x8cb   :  { %v701_v27 = vsel %vm279_vm1, %v2736_v37, %v2740_v15  ;;  %679 = vrot.lane.b32.xlu0 %v676_v16, %s2967_s1  ;;  %v677_v40 = vmul.f32 %v676_v16, %v3252_v5 }
 0x8cc   :  { %704 = vrot.lane.b32.xlu1 %v701_v27, %s2967_s1  ;;  %v702_v41 = vmul.f32 %v701_v27, %v3254_v7 }
 0x93d   :  { %v680_v35 = vpop.permute.xlu0 %679 }
 0x93e   :  { %v705_v36 = vpop.permute.xlu1 %704  ;;  %v682_v38 = vmul.f32 %v680_v35, %v676_v16 }
 0x93f   :  { %v707_v39 = vmul.f32 %v705_v36, %v701_v27 }
 0x940   :  { %684 = vrot.lane.b32.xlu0 %v682_v38, %s2967_s1 }
 0x941   :  { %709 = vrot.lane.b32.xlu1 %v707_v39, %s2967_s1 }
 0x9b2   :  { %v685_v42 = vpop.permute.xlu0 %684 }
 0x9b3   :  { %v710_v45 = vpop.permute.xlu1 %709  ;;  %v3368_v46 = vadd.f32 %v685_v42, %v677_v40 }
 0x9b4   :  { %v3370_v47 = vadd.f32 %v710_v45, %v702_v41 }
 0x9b5   :  { %2741 = vtanh.f32 %v3368_v46 }
 0x9b6   :  { %2743 = vtanh.f32 %v3370_v47 }
 0x9c2   :  { %v2742_v48 = vpop.eup %2741 }
 0x9c3   :  { %v2744_v61 = vpop.eup %2743  ;;  %690 = vrot.lane.b32.xlu0 %v2742_v48, %s2967_s1 }
 0x9c4   :  { %715 = vrot.lane.b32.xlu1 %v2744_v61, %s2967_s1 }
 0xa35   :  { %v691_v62 = vpop.permute.xlu0 %690 }
 0xa36   :  { %v716_v5 = vpop.permute.xlu1 %715  ;;  %v693_v63 = vmul.f32 %v691_v62, %v676_v16 }
 0xa37   :  { %v718_v7 = vmul.f32 %v716_v5, %v701_v27 }
 0xa38   :  { %720 = vrot.lane.b32.xlu0 %v693_v63, %s2968_s8 }
 0xa39   :  { %724 = vrot.lane.b32.xlu1 %v718_v7, %s2970_s24 }
 0xaaa   :  { %v721_v0 = vpop.permute.xlu0 %720 }
 0xaab   :  { %v725_v1 = vpop.permute.xlu1 %724 }
 0xaac   :  { %v727_v2 = vsel %vm304_vm2, %v721_v0, %v725_v1 }
 0xaad   :  { %2585 = vmatmul.mubr.msk.f32.vlgmr.msra.gmra.mxu1 %vm317_vm3, %v727_v2 }
 0xaae   :  { %1020 = vmatpush1.msra.mxu1 %v3050_v18  ;;  %1067 = vmatprep.mubr.f32.mxu1 %v2969_v34 }
 0xaaf   :  { %1021 = vmatprep.subr.mxu1 %v3055_v19 }
 0xab0   :  { %1022 = vmatpush1.msra.mxu1 %v3061_v20 }
 0xab1   :  { %1023 = vmatprep.subr.mxu1 %v3068_v21 }
 0xab2   :  { %1024 = vmatpush1.msra.mxu1 %v3075_v22 }
 0xab3   :  { %1025 = vmatprep.subr.mxu1 %v3082_v23 }
 0xab4   :  { %1026 = vmatpush1.msra.mxu1 %v3089_v24 }
 0xab5   :  { %1027 = vmatprep.subr.mxu1 %v3096_v25 }
 0xab6   :  { %1028 = vmatpush1.msra.mxu1 %v3103_v26 }
 0xab7   :  { %1029 = vmatprep.subr.mxu1 %v3110_v28 }
 0xab8   :  { %1030 = vmatpush1.msra.mxu1 %v3118_v29 }
 0xab9   :  { %1031 = vmatprep.subr.mxu1 %v3124_v30 }
 0xaba   :  { %1032 = vmatpush1.msra.mxu1 %v3131_v31 }
 0xabb   :  { %1033 = vmatprep.subr.mxu1 %v3138_v32 }
 0xabc   :  { %1034 = vmatpush1.msra.mxu1 %v3152_v33 }
 0xabd   :  { %1291 = vmatprep.subr.mxu1 %v3045_v17 }
 0xb6d   :  { %v797_v6 = vpop.f32.mrf.mxu1 }
 0xb6e   :  { %v798_v9 = vadd.f32 %v797_v6, %v3184_v43 }
 0xb6f   :  { %v799_v8 = vpop.f32.mrf.mxu1 }
 0xb70   :  { %v804_v10 = vadd.f32 %v798_v9, %v186_v3  ;;  %v800_v12 = vadd.f32 %v799_v8, %v3186_v44 }
 0xb72   :  { %v2586_v13 = vmul.f32 -1.442695, %v804_v10  ;;  %v2587_v37 = vmul.f32 -1.442695, %v800_v12 }
 0xb74   :  { %2745 = vpow2.f32 %v2586_v13  ;;  %v191_v13 = vadd.f32 %v3330_v49, %v3028_v4 }
 0xb75   :  { %2747 = vpow2.f32 %v2587_v37 }
 0xb76   :  { %2749 = vtanh.f32 %v804_v10 }
 0xb77   :  { %2751 = vtanh.f32 %v800_v12 }
 0xb81   :  { %v2746_v14 = vpop.eup %2745 }
 0xb82   :  { %v2748_v15 = vpop.eup %2747  ;;  %v809_v16 = vadd.f32 1.0, %v2746_v14 }
 0xb83   :  { %v834_v27 = vadd.f32 1.0, %v2748_v15  ;;  %v2750_v35 = vpop.eup %2749 }
 0xb84   :  { %2753 = vrcp.f32 %v809_v16  ;;  %v2752_v50 = vpop.eup %2751 }
 0xb85   :  { %2755 = vrcp.f32 %v834_v27 }
 0xb91   :  { %v2754_v36 = vpop.eup %2753 }
 0xb92   :  { %v2756_v38 = vpop.eup %2755  ;;  %v812_v39 = vsel %vm279_vm1, %v2750_v35, %v2754_v36 }
 0xb93   :  { %v837_v40 = vsel %vm279_vm1, %v2752_v50, %v2756_v38  ;;  %815 = vrot.lane.b32.xlu0 %v812_v39, %s2967_s1  ;;  %v813_v61 = vmul.f32 %v812_v39, %v3368_v46 }
 0xb94   :  { %840 = vrot.lane.b32.xlu1 %v837_v40, %s2967_s1  ;;  %v838_v62 = vmul.f32 %v837_v40, %v3370_v47 }
 0xc05   :  { %v816_v41 = vpop.permute.xlu0 %815 }
 0xc06   :  { %v841_v42 = vpop.permute.xlu1 %840  ;;  %v818_v45 = vmul.f32 %v816_v41, %v812_v39 }
 0xc07   :  { %v843_v48 = vmul.f32 %v841_v42, %v837_v40 }
 0xc08   :  { %820 = vrot.lane.b32.xlu0 %v818_v45, %s2967_s1 }
 0xc09   :  { %845 = vrot.lane.b32.xlu1 %v843_v48, %s2967_s1 }
 0xc7a   :  { %v821_v5 = vpop.permute.xlu0 %820 }
 0xc7b   :  { %v846_v63 = vpop.permute.xlu1 %845  ;;  %v3411_v7 = vadd.f32 %v821_v5, %v813_v61 }
 0xc7c   :  { %v3413_v0 = vadd.f32 %v846_v63, %v838_v62 }
 0xc7d   :  { %2757 = vtanh.f32 %v3411_v7 }
 0xc7e   :  { %2759 = vtanh.f32 %v3413_v0 }
 0xc8a   :  { %v2758_v1 = vpop.eup %2757 }
 0xc8b   :  { %v2760_v2 = vpop.eup %2759  ;;  %826 = vrot.lane.b32.xlu0 %v2758_v1, %s2967_s1 }
 0xc8c   :  { %851 = vrot.lane.b32.xlu1 %v2760_v2, %s2967_s1 }
 0xcfd   :  { %v827_v6 = vpop.permute.xlu0 %826 }
 0xcfe   :  { %v852_v46 = vpop.permute.xlu1 %851  ;;  %v829_v3 = vmul.f32 %v827_v6, %v812_v39 }
 0xcff   :  { %v854_v47 = vmul.f32 %v852_v46, %v837_v40 }
 0xd00   :  { %856 = vrot.lane.b32.xlu0 %v829_v3, %s2968_s8 }
 0xd01   :  { %860 = vrot.lane.b32.xlu1 %v854_v47, %s2970_s24 }
 0xd72   :  { %v857_v9 = vpop.permute.xlu0 %856 }
 0xd73   :  { %v861_v8 = vpop.permute.xlu1 %860 }
 0xd74   :  { %v863_v10 = vsel %vm304_vm2, %v857_v9, %v861_v8 }
 0xd75   :  { %2588 = vmatmul.mubr.msk.f32.vlgmr.msra.gmra.mxu0 %vm317_vm3, %v863_v10 }
 0xd76   :  { %1156 = vmatpush1.msra.mxu0 %v3050_v18  ;;  %1203 = vmatprep.mubr.f32.mxu0 %v2969_v34 }
 0xd77   :  { %1157 = vmatprep.subr.mxu0 %v3055_v19 }
 0xd78   :  { %1158 = vmatpush1.msra.mxu0 %v3061_v20 }
 0xd79   :  { %1159 = vmatprep.subr.mxu0 %v3068_v21 }
 0xd7a   :  { %1160 = vmatpush1.msra.mxu0 %v3075_v22 }
 0xd7b   :  { %1161 = vmatprep.subr.mxu0 %v3082_v23 }
 0xd7c   :  { %1162 = vmatpush1.msra.mxu0 %v3089_v24 }
 0xd7d   :  { %1163 = vmatprep.subr.mxu0 %v3096_v25 }
 0xd7e   :  { %1164 = vmatpush1.msra.mxu0 %v3103_v26 }
 0xd7f   :  { %1165 = vmatprep.subr.mxu0 %v3110_v28 }
 0xd80   :  { %1166 = vmatpush1.msra.mxu0 %v3118_v29 }
 0xd81   :  { %1167 = vmatprep.subr.mxu0 %v3124_v30 }
 0xd82   :  { %1168 = vmatpush1.msra.mxu0 %v3131_v31 }
 0xd83   :  { %1169 = vmatprep.subr.mxu0 %v3138_v32 }
 0xd84   :  { %1170 = vmatpush1.msra.mxu0 %v3152_v33 }
 0xd85   :  { %1427 = vmatprep.subr.mxu0 %v3045_v17 }
 0xe35   :  { %v933_v12 = vpop.f32.mrf.mxu0 }
 0xe36   :  { %v934_v37 = vadd.f32 %v933_v12, %v3184_v43 }
 0xe37   :  { %v935_v14 = vpop.f32.mrf.mxu0 }
 0xe38   :  { %v940_v15 = vadd.f32 %v934_v37, %v191_v13  ;;  %v936_v16 = vadd.f32 %v935_v14, %v3186_v44 }
 0xe3a   :  { %v2589_v27 = vmul.f32 -1.442695, %v940_v15  ;;  %v2590_v35 = vmul.f32 -1.442695, %v936_v16 }
 0xe3c   :  { %2761 = vpow2.f32 %v2589_v27 }
 0xe3d   :  { %2763 = vpow2.f32 %v2590_v35 }
 0xe3e   :  { %2765 = vtanh.f32 %v940_v15 }
 0xe3f   :  { %2767 = vtanh.f32 %v936_v16 }
 0xe49   :  { %v2762_v50 = vpop.eup %2761 }
 0xe4a   :  { %v2764_v36 = vpop.eup %2763  ;;  %v945_v38 = vadd.f32 1.0, %v2762_v50 }
 0xe4b   :  { %v970_v39 = vadd.f32 1.0, %v2764_v36  ;;  %v2766_v40 = vpop.eup %2765 }
 0xe4c   :  { %2769 = vrcp.f32 %v945_v38  ;;  %v2768_v49 = vpop.eup %2767 }
 0xe4d   :  { %2771 = vrcp.f32 %v970_v39 }
 0xe59   :  { %v2770_v41 = vpop.eup %2769 }
 0xe5a   :  { %v2772_v42 = vpop.eup %2771  ;;  %v948_v45 = vsel %vm279_vm1, %v2766_v40, %v2770_v41 }
 0xe5b   :  { %v973_v48 = vsel %vm279_vm1, %v2768_v49, %v2772_v42  ;;  %951 = vrot.lane.b32.xlu0 %v948_v45, %s2967_s1  ;;  %v949_v1 = vmul.f32 %v948_v45, %v3411_v7 }
 0xe5c   :  { %976 = vrot.lane.b32.xlu1 %v973_v48, %s2967_s1  ;;  %v974_v2 = vmul.f32 %v973_v48, %v3413_v0 }
 0xecd   :  { %v952_v61 = vpop.permute.xlu0 %951 }
 0xece   :  { %v977_v62 = vpop.permute.xlu1 %976  ;;  %v954_v5 = vmul.f32 %v952_v61, %v948_v45 }
 0xecf   :  { %v979_v63 = vmul.f32 %v977_v62, %v973_v48 }
 0xed0   :  { %956 = vrot.lane.b32.xlu0 %v954_v5, %s2967_s1 }
 0xed1   :  { %981 = vrot.lane.b32.xlu1 %v979_v63, %s2967_s1 }
 0xf42   :  { %v957_v6 = vpop.permute.xlu0 %956 }
 0xf43   :  { %v982_v46 = vpop.permute.xlu1 %981  ;;  %v3454_v3 = vadd.f32 %v957_v6, %v949_v1  ;;  %v3512_v6 = vld [vmem:[%s3984_s3 + $0x70] sm:$0xff] }
 0xf44   :  { %v3456_v47 = vadd.f32 %v982_v46, %v974_v2  ;;  %v3519_v46 = vld [vmem:[%s3984_s3 + $0x68] sm:$0xff] }
 0xf45   :  { %2773 = vtanh.f32 %v3454_v3 }
 0xf46   :  { %2775 = vtanh.f32 %v3456_v47 }
 0xf52   :  { %v2774_v9 = vpop.eup %2773 }
 0xf53   :  { %v2776_v8 = vpop.eup %2775  ;;  %962 = vrot.lane.b32.xlu0 %v2774_v9, %s2967_s1  ;;  %v3537_v9 = vld [vmem:[%s3984_s3 + $0x50] sm:$0xff] }
 0xf54   :  { %987 = vrot.lane.b32.xlu1 %v2776_v8, %s2967_s1  ;;  %v3543_v8 = vld [vmem:[%s3984_s3 + $0x48] sm:$0xff] }
 0xfc5   :  { %v963_v10 = vpop.permute.xlu0 %962 }
 0xfc6   :  { %v988_v7 = vpop.permute.xlu1 %987  ;;  %v965_v12 = vmul.f32 %v963_v10, %v948_v45  ;;  %v3549_v10 = vld [vmem:[%s3984_s3 + $0x40] sm:$0xff] }
 0xfc7   :  { %v990_v0 = vmul.f32 %v988_v7, %v973_v48  ;;  %v3555_v7 = vld [vmem:[%s3984_s3 + $0x38] sm:$0xff] }
 0xfc8   :  { %992 = vrot.lane.b32.xlu0 %v965_v12, %s2968_s8  ;;  %v3561_v12 = vld [vmem:[%s3984_s3 + $0x30] sm:$0xff] }
 0xfc9   :  { %996 = vrot.lane.b32.xlu1 %v990_v0, %s2970_s24  ;;  %v3567_v0 = vld [vmem:[%s3984_s3 + $0x28] sm:$0xff] }
0x103a   :  { %v993_v13 = vpop.permute.xlu0 %992 }
0x103b   :  { %v997_v37 = vpop.permute.xlu1 %996 }
0x103c   :  { %v999_v14 = vsel %vm304_vm2, %v993_v13, %v997_v37  ;;  %v3573_v13 = vld [vmem:[%s3984_s3 + $0x20] sm:$0xff]  ;;  %v3579_v37 = vld [vmem:[%s3984_s3 + $0x18] sm:$0xff] }
0x103d   :  { %2591 = vmatmul.mubr.msk.f32.vlgmr.msra.gmra.mxu1 %vm317_vm3, %v999_v14  ;;  %v3585_v14 = vld [vmem:[%s3984_s3 + $0x10] sm:$0xff] }
0x103e   :  { %1292 = vmatpush1.msra.mxu1 %v3050_v18  ;;  %1339 = vmatprep.mubr.f32.mxu1 %v2969_v34 }
0x103f   :  { %1293 = vmatprep.subr.mxu1 %v3055_v19  ;;  %v196_v19 = vadd.f32 %v3028_v4, %v3336_v52 }
0x1040   :  { %1294 = vmatpush1.msra.mxu1 %v3061_v20 }
0x1041   :  { %1295 = vmatprep.subr.mxu1 %v3068_v21 }
0x1042   :  { %1296 = vmatpush1.msra.mxu1 %v3075_v22 }
0x1043   :  { %1297 = vmatprep.subr.mxu1 %v3082_v23 }
0x1044   :  { %1298 = vmatpush1.msra.mxu1 %v3089_v24 }
0x1045   :  { %1299 = vmatprep.subr.mxu1 %v3096_v25 }
0x1046   :  { %1300 = vmatpush1.msra.mxu1 %v3103_v26 }
0x1047   :  { %1301 = vmatprep.subr.mxu1 %v3110_v28 }
0x1048   :  { %1302 = vmatpush1.msra.mxu1 %v3118_v29 }
0x1049   :  { %1303 = vmatprep.subr.mxu1 %v3124_v30 }
0x104a   :  { %1304 = vmatpush1.msra.mxu1 %v3131_v31 }
0x104b   :  { %1305 = vmatprep.subr.mxu1 %v3138_v32 }
0x104c   :  { %1306 = vmatpush1.msra.mxu1 %v3152_v33 }
0x104d   :  { %1563 = vmatprep.subr.mxu1 %v3045_v17 }
0x10fd   :  { %v1069_v18 = vpop.f32.mrf.mxu1 }
0x10fe   :  { %v1070_v20 = vadd.f32 %v1069_v18, %v3184_v43  ;;  %v3591_v18 = vld [vmem:[%s3984_s3 + $0x8] sm:$0xff] }
0x10ff   :  { %v1071_v21 = vpop.f32.mrf.mxu1 }
0x1100   :  { %v1076_v22 = vadd.f32 %v1070_v20, %v196_v19  ;;  %v1072_v23 = vadd.f32 %v1071_v21, %v3186_v44  ;;  %v3598_v19 = vld [vmem:[%s3984_s3 + $0x78] sm:$0xff]  ;;  %v3604_v21 = vld [vmem:[%s3983_s2] ss:$0 sm:$0xff] }
0x1102   :  { %v2592_v24 = vmul.f32 -1.442695, %v1076_v22  ;;  %v2593_v25 = vmul.f32 -1.442695, %v1072_v23 }
0x1104   :  { %2777 = vpow2.f32 %v2592_v24 }
0x1105   :  { %2779 = vpow2.f32 %v2593_v25 }
0x1106   :  { %2781 = vtanh.f32 %v1076_v22  ;;  %v201_v22 = vadd.f32 %v3604_v21, %v3334_v51 }
0x1107   :  { %2783 = vtanh.f32 %v1072_v23 }
0x1111   :  { %v2778_v26 = vpop.eup %2777 }
0x1112   :  { %v2780_v28 = vpop.eup %2779  ;;  %v1081_v29 = vadd.f32 1.0, %v2778_v26 }
0x1113   :  { %v1106_v17 = vadd.f32 1.0, %v2780_v28  ;;  %v2782_v30 = vpop.eup %2781 }
0x1114   :  { %2785 = vrcp.f32 %v1081_v29  ;;  %v2784_v4 = vpop.eup %2783 }
0x1115   :  { %2787 = vrcp.f32 %v1106_v17 }
0x1121   :  { %v2786_v31 = vpop.eup %2785 }
0x1122   :  { %v2788_v32 = vpop.eup %2787  ;;  %v1084_v52 = vsel %vm279_vm1, %v2782_v30, %v2786_v31 }
0x1123   :  { %v1109_v15 = vsel %vm279_vm1, %v2784_v4, %v2788_v32  ;;  %1087 = vrot.lane.b32.xlu0 %v1084_v52, %s2967_s1  ;;  %v1085_v36 = vmul.f32 %v1084_v52, %v3454_v3  ;;  %v3525_v3 = vld [vmem:[%s3984_s3 + $0x60] sm:$0xff] }
0x1124   :  { %1112 = vrot.lane.b32.xlu1 %v1109_v15, %s2967_s1  ;;  %v1110_v38 = vmul.f32 %v1109_v15, %v3456_v47  ;;  %v3531_v47 = vld [vmem:[%s3984_s3 + $0x58] sm:$0xff] }
0x1195   :  { %v1088_v16 = vpop.permute.xlu0 %1087 }
0x1196   :  { %v1113_v27 = vpop.permute.xlu1 %1112  ;;  %v1090_v35 = vmul.f32 %v1088_v16, %v1084_v52 }
0x1197   :  { %v1115_v50 = vmul.f32 %v1113_v27, %v1109_v15 }
0x1198   :  { %1092 = vrot.lane.b32.xlu0 %v1090_v35, %s2967_s1 }
0x1199   :  { %1117 = vrot.lane.b32.xlu1 %v1115_v50, %s2967_s1 }
0x120a   :  { %v1093_v39 = vpop.permute.xlu0 %1092 }
0x120b   :  { %v1118_v40 = vpop.permute.xlu1 %1117  ;;  %v3497_v49 = vadd.f32 %v1093_v39, %v1085_v36 }
0x120c   :  { %v3499_v41 = vadd.f32 %v1118_v40, %v1110_v38 }
0x120d   :  { %2789 = vtanh.f32 %v3497_v49 }
0x120e   :  { %2791 = vtanh.f32 %v3499_v41 }
0x121a   :  { %v2790_v42 = vpop.eup %2789 }
0x121b   :  { %v2792_v45 = vpop.eup %2791  ;;  %1098 = vrot.lane.b32.xlu0 %v2790_v42, %s2967_s1 }
0x121c   :  { %1123 = vrot.lane.b32.xlu1 %v2792_v45, %s2967_s1 }
0x128d   :  { %v1099_v48 = vpop.permute.xlu0 %1098 }
0x128e   :  { %v1124_v61 = vpop.permute.xlu1 %1123  ;;  %v1101_v62 = vmul.f32 %v1099_v48, %v1084_v52 }
0x128f   :  { %v1126_v5 = vmul.f32 %v1124_v61, %v1109_v15 }
0x1290   :  { %1128 = vrot.lane.b32.xlu0 %v1101_v62, %s2968_s8 }
0x1291   :  { %1132 = vrot.lane.b32.xlu1 %v1126_v5, %s2970_s24 }
0x1302   :  { %v1129_v63 = vpop.permute.xlu0 %1128 }
0x1303   :  { %v1133_v1 = vpop.permute.xlu1 %1132 }
0x1304   :  { %v1135_v2 = vsel %vm304_vm2, %v1129_v63, %v1133_v1 }
0x1305   :  { %2594 = vmatmul.mubr.msk.f32.vlgmr.msra.gmra.mxu0 %vm317_vm3, %v1135_v2 }
0x1306   :  { %1428 = vmatpush1.msra.mxu0 %v3512_v6  ;;  %1475 = vmatprep.mubr.f32.mxu0 %v2969_v34 }
0x1307   :  { %1429 = vmatprep.subr.mxu0 %v3519_v46 }
0x1308   :  { %1430 = vmatpush1.msra.mxu0 %v3525_v3 }
0x1309   :  { %1431 = vmatprep.subr.mxu0 %v3531_v47 }
0x130a   :  { %1432 = vmatpush1.msra.mxu0 %v3537_v9 }
0x130b   :  { %1433 = vmatprep.subr.mxu0 %v3543_v8 }
0x130c   :  { %1434 = vmatpush1.msra.mxu0 %v3549_v10 }
0x130d   :  { %1435 = vmatprep.subr.mxu0 %v3555_v7 }
0x130e   :  { %1436 = vmatpush1.msra.mxu0 %v3561_v12 }
0x130f   :  { %1437 = vmatprep.subr.mxu0 %v3567_v0 }
0x1310   :  { %1438 = vmatpush1.msra.mxu0 %v3573_v13 }
0x1311   :  { %1439 = vmatprep.subr.mxu0 %v3579_v37 }
0x1312   :  { %1440 = vmatpush1.msra.mxu0 %v3585_v14 }
0x1313   :  { %1441 = vmatprep.subr.mxu0 %v3591_v18 }
0x1314   :  { %1442 = vmatpush1.msra.mxu0 %v3152_v33 }
0x1315   :  { %1699 = vmatprep.subr.mxu0 %v3598_v19 }
0x13c5   :  { %v1205_v20 = vpop.f32.mrf.mxu0 }
0x13c6   :  { %v1206_v23 = vadd.f32 %v1205_v20, %v3184_v43 }
0x13c7   :  { %v1207_v24 = vpop.f32.mrf.mxu0 }
0x13c8   :  { %v1212_v33 = vadd.f32 %v1206_v23, %v201_v22  ;;  %v1208_v25 = vadd.f32 %v1207_v24, %v3186_v44  ;;  %v3650_v22 = vld [vmem:[%s3984_s3] sm:$0xff]  ;;  %v206_v24 = vadd.f32 %v3604_v21, %v3340_v54 }
0x13ca   :  { %v2595_v26 = vmul.f32 -1.442695, %v1212_v33  ;;  %v2596_v28 = vmul.f32 -1.442695, %v1208_v25 }
0x13cc   :  { %2793 = vpow2.f32 %v2595_v26 }
0x13cd   :  { %2795 = vpow2.f32 %v2596_v28 }
0x13ce   :  { %2797 = vtanh.f32 %v1212_v33 }
0x13cf   :  { %2799 = vtanh.f32 %v1208_v25 }
0x13d9   :  { %v2794_v29 = vpop.eup %2793 }
0x13da   :  { %v2796_v17 = vpop.eup %2795  ;;  %v1217_v30 = vadd.f32 1.0, %v2794_v29 }
0x13db   :  { %v1242_v4 = vadd.f32 1.0, %v2796_v17  ;;  %v2798_v31 = vpop.eup %2797 }
0x13dc   :  { %2801 = vrcp.f32 %v1217_v30  ;;  %v2800_v51 = vpop.eup %2799 }
0x13dd   :  { %2803 = vrcp.f32 %v1242_v4 }
0x13e9   :  { %v2802_v32 = vpop.eup %2801 }
0x13ea   :  { %v2804_v52 = vpop.eup %2803  ;;  %v1220_v15 = vsel %vm279_vm1, %v2798_v31, %v2802_v32 }
0x13eb   :  { %v1245_v16 = vsel %vm279_vm1, %v2800_v51, %v2804_v52  ;;  %1223 = vrot.lane.b32.xlu0 %v1220_v15, %s2967_s1  ;;  %v1221_v38 = vmul.f32 %v1220_v15, %v3497_v49 }
0x13ec   :  { %1248 = vrot.lane.b32.xlu1 %v1245_v16, %s2967_s1  ;;  %v1246_v39 = vmul.f32 %v1245_v16, %v3499_v41 }
0x145d   :  { %v1224_v27 = vpop.permute.xlu0 %1223 }
0x145e   :  { %v1249_v35 = vpop.permute.xlu1 %1248  ;;  %v1226_v50 = vmul.f32 %v1224_v27, %v1220_v15 }
0x145f   :  { %v1251_v36 = vmul.f32 %v1249_v35, %v1245_v16 }
0x1460   :  { %1228 = vrot.lane.b32.xlu0 %v1226_v50, %s2967_s1 }
0x1461   :  { %1253 = vrot.lane.b32.xlu1 %v1251_v36, %s2967_s1 }
0x14d2   :  { %v1229_v40 = vpop.permute.xlu0 %1228 }
0x14d3   :  { %v1254_v42 = vpop.permute.xlu1 %1253  ;;  %v3620_v45 = vadd.f32 %v1229_v40, %v1221_v38 }
0x14d4   :  { %v3622_v48 = vadd.f32 %v1254_v42, %v1246_v39 }
0x14d5   :  { %2805 = vtanh.f32 %v3620_v45 }
0x14d6   :  { %2807 = vtanh.f32 %v3622_v48 }
0x14e2   :  { %v2806_v61 = vpop.eup %2805 }
0x14e3   :  { %v2808_v62 = vpop.eup %2807  ;;  %1234 = vrot.lane.b32.xlu0 %v2806_v61, %s2967_s1 }
0x14e4   :  { %1259 = vrot.lane.b32.xlu1 %v2808_v62, %s2967_s1 }
0x1555   :  { %v1235_v5 = vpop.permute.xlu0 %1234 }
0x1556   :  { %v1260_v49 = vpop.permute.xlu1 %1259  ;;  %v1237_v63 = vmul.f32 %v1235_v5, %v1220_v15 }
0x1557   :  { %v1262_v41 = vmul.f32 %v1260_v49, %v1245_v16 }
0x1558   :  { %1264 = vrot.lane.b32.xlu0 %v1237_v63, %s2968_s8 }
0x1559   :  { %1268 = vrot.lane.b32.xlu1 %v1262_v41, %s2970_s24 }
0x15ca   :  { %v1265_v1 = vpop.permute.xlu0 %1264 }
0x15cb   :  { %v1269_v2 = vpop.permute.xlu1 %1268 }
0x15cc   :  { %v1271_v20 = vsel %vm304_vm2, %v1265_v1, %v1269_v2 }
0x15cd   :  { %2597 = vmatmul.mubr.msk.f32.vlgmr.msra.gmra.mxu1 %vm317_vm3, %v1271_v20 }
0x15ce   :  { %1564 = vmatpush1.msra.mxu1 %v3512_v6  ;;  %1611 = vmatprep.mubr.f32.mxu1 %v2969_v34 }
0x15cf   :  { %1565 = vmatprep.subr.mxu1 %v3519_v46 }
0x15d0   :  { %1566 = vmatpush1.msra.mxu1 %v3525_v3 }
0x15d1   :  { %1567 = vmatprep.subr.mxu1 %v3531_v47 }
0x15d2   :  { %1568 = vmatpush1.msra.mxu1 %v3537_v9 }
0x15d3   :  { %1569 = vmatprep.subr.mxu1 %v3543_v8 }
0x15d4   :  { %1570 = vmatpush1.msra.mxu1 %v3549_v10 }
0x15d5   :  { %1571 = vmatprep.subr.mxu1 %v3555_v7 }
0x15d6   :  { %1572 = vmatpush1.msra.mxu1 %v3561_v12 }
0x15d7   :  { %1573 = vmatprep.subr.mxu1 %v3567_v0 }
0x15d8   :  { %1574 = vmatpush1.msra.mxu1 %v3573_v13 }
0x15d9   :  { %1575 = vmatprep.subr.mxu1 %v3579_v37 }
0x15da   :  { %1576 = vmatpush1.msra.mxu1 %v3585_v14 }
0x15db   :  { %1577 = vmatprep.subr.mxu1 %v3591_v18 }
0x15dc   :  { %1578 = vmatpush1.msra.mxu1 %v3650_v22 }
0x15dd   :  { %1835 = vmatprep.subr.mxu1 %v3598_v19 }
0x168d   :  { %v1341_v23 = vpop.f32.mrf.mxu1 }
0x168e   :  { %v1342_v33 = vadd.f32 %v1341_v23, %v3184_v43 }
0x168f   :  { %v1343_v25 = vpop.f32.mrf.mxu1 }
0x1690   :  { %v1348_v26 = vadd.f32 %v1342_v33, %v206_v24  ;;  %v1344_v28 = vadd.f32 %v1343_v25, %v3186_v44  ;;  %v211_v33 = vadd.f32 %v3604_v21, %v3338_v53 }
0x1692   :  { %v2598_v29 = vmul.f32 -1.442695, %v1348_v26  ;;  %v2599_v17 = vmul.f32 -1.442695, %v1344_v28 }
0x1694   :  { %2809 = vpow2.f32 %v2598_v29 }
0x1695   :  { %2811 = vpow2.f32 %v2599_v17 }
0x1696   :  { %2813 = vtanh.f32 %v1348_v26 }
0x1697   :  { %2815 = vtanh.f32 %v1344_v28 }
0x16a1   :  { %v2810_v30 = vpop.eup %2809 }
0x16a2   :  { %v2812_v4 = vpop.eup %2811  ;;  %v1353_v31 = vadd.f32 1.0, %v2810_v30 }
0x16a3   :  { %v1378_v51 = vadd.f32 1.0, %v2812_v4  ;;  %v2814_v32 = vpop.eup %2813 }
0x16a4   :  { %2817 = vrcp.f32 %v1353_v31  ;;  %v2816_v54 = vpop.eup %2815 }
0x16a5   :  { %2819 = vrcp.f32 %v1378_v51 }
0x16b1   :  { %v2818_v52 = vpop.eup %2817 }
0x16b2   :  { %v2820_v15 = vpop.eup %2819  ;;  %v1356_v16 = vsel %vm279_vm1, %v2814_v32, %v2818_v52 }
0x16b3   :  { %v1381_v27 = vsel %vm279_vm1, %v2816_v54, %v2820_v15  ;;  %1359 = vrot.lane.b32.xlu0 %v1356_v16, %s2967_s1  ;;  %v1357_v39 = vmul.f32 %v1356_v16, %v3620_v45 }
0x16b4   :  { %1384 = vrot.lane.b32.xlu1 %v1381_v27, %s2967_s1  ;;  %v1382_v40 = vmul.f32 %v1381_v27, %v3622_v48 }
0x1725   :  { %v1360_v35 = vpop.permute.xlu0 %1359 }
0x1726   :  { %v1385_v50 = vpop.permute.xlu1 %1384  ;;  %v1362_v36 = vmul.f32 %v1360_v35, %v1356_v16 }
0x1727   :  { %v1387_v38 = vmul.f32 %v1385_v50, %v1381_v27 }
0x1728   :  { %1364 = vrot.lane.b32.xlu0 %v1362_v36, %s2967_s1 }
0x1729   :  { %1389 = vrot.lane.b32.xlu1 %v1387_v38, %s2967_s1 }
0x179a   :  { %v1365_v42 = vpop.permute.xlu0 %1364 }
0x179b   :  { %v1390_v61 = vpop.permute.xlu1 %1389  ;;  %v3668_v62 = vadd.f32 %v1365_v42, %v1357_v39 }
0x179c   :  { %v3670_v5 = vadd.f32 %v1390_v61, %v1382_v40 }
0x179d   :  { %2821 = vtanh.f32 %v3668_v62 }
0x179e   :  { %2823 = vtanh.f32 %v3670_v5 }
0x17aa   :  { %v2822_v49 = vpop.eup %2821 }
0x17ab   :  { %v2824_v63 = vpop.eup %2823  ;;  %1370 = vrot.lane.b32.xlu0 %v2822_v49, %s2967_s1 }
0x17ac   :  { %1395 = vrot.lane.b32.xlu1 %v2824_v63, %s2967_s1 }
0x181d   :  { %v1371_v41 = vpop.permute.xlu0 %1370 }
0x181e   :  { %v1396_v45 = vpop.permute.xlu1 %1395  ;;  %v1373_v1 = vmul.f32 %v1371_v41, %v1356_v16 }
0x181f   :  { %v1398_v48 = vmul.f32 %v1396_v45, %v1381_v27 }
0x1820   :  { %1400 = vrot.lane.b32.xlu0 %v1373_v1, %s2968_s8 }
0x1821   :  { %1404 = vrot.lane.b32.xlu1 %v1398_v48, %s2970_s24 }
0x1892   :  { %v1401_v2 = vpop.permute.xlu0 %1400 }
0x1893   :  { %v1405_v20 = vpop.permute.xlu1 %1404 }
0x1894   :  { %v1407_v23 = vsel %vm304_vm2, %v1401_v2, %v1405_v20 }
0x1895   :  { %2600 = vmatmul.mubr.msk.f32.vlgmr.msra.gmra.mxu0 %vm317_vm3, %v1407_v23 }
0x1896   :  { %1700 = vmatpush1.msra.mxu0 %v3512_v6  ;;  %1747 = vmatprep.mubr.f32.mxu0 %v2969_v34 }
0x1897   :  { %1701 = vmatprep.subr.mxu0 %v3519_v46 }
0x1898   :  { %1702 = vmatpush1.msra.mxu0 %v3525_v3 }
0x1899   :  { %1703 = vmatprep.subr.mxu0 %v3531_v47 }
0x189a   :  { %1704 = vmatpush1.msra.mxu0 %v3537_v9 }
0x189b   :  { %1705 = vmatprep.subr.mxu0 %v3543_v8 }
0x189c   :  { %1706 = vmatpush1.msra.mxu0 %v3549_v10 }
0x189d   :  { %1707 = vmatprep.subr.mxu0 %v3555_v7 }
0x189e   :  { %1708 = vmatpush1.msra.mxu0 %v3561_v12 }
0x189f   :  { %1709 = vmatprep.subr.mxu0 %v3567_v0 }
0x18a0   :  { %1710 = vmatpush1.msra.mxu0 %v3573_v13 }
0x18a1   :  { %1711 = vmatprep.subr.mxu0 %v3579_v37 }
0x18a2   :  { %1712 = vmatpush1.msra.mxu0 %v3585_v14 }
0x18a3   :  { %1713 = vmatprep.subr.mxu0 %v3591_v18 }
0x18a4   :  { %1714 = vmatpush1.msra.mxu0 %v3650_v22 }
0x18a5   :  { %1971 = vmatprep.subr.mxu0 %v3598_v19 }
0x1955   :  { %v1477_v24 = vpop.f32.mrf.mxu0 }
0x1956   :  { %v1478_v25 = vadd.f32 %v1477_v24, %v3184_v43 }
0x1957   :  { %v1479_v26 = vpop.f32.mrf.mxu0 }
0x1958   :  { %v1484_v28 = vadd.f32 %v1478_v25, %v211_v33  ;;  %v1480_v29 = vadd.f32 %v1479_v26, %v3186_v44  ;;  %v216_v33 = vadd.f32 %v3604_v21, %v3344_v56 }
0x195a   :  { %v2601_v17 = vmul.f32 -1.442695, %v1484_v28  ;;  %v2602_v30 = vmul.f32 -1.442695, %v1480_v29 }
0x195c   :  { %2825 = vpow2.f32 %v2601_v17 }
0x195d   :  { %2827 = vpow2.f32 %v2602_v30 }
0x195e   :  { %2829 = vtanh.f32 %v1484_v28 }
0x195f   :  { %2831 = vtanh.f32 %v1480_v29 }
0x1969   :  { %v2826_v4 = vpop.eup %2825 }
0x196a   :  { %v2828_v31 = vpop.eup %2827  ;;  %v1489_v51 = vadd.f32 1.0, %v2826_v4 }
0x196b   :  { %v1514_v32 = vadd.f32 1.0, %v2828_v31  ;;  %v2830_v54 = vpop.eup %2829 }
0x196c   :  { %2833 = vrcp.f32 %v1489_v51  ;;  %v2832_v53 = vpop.eup %2831 }
0x196d   :  { %2835 = vrcp.f32 %v1514_v32 }
0x1979   :  { %v2834_v52 = vpop.eup %2833 }
0x197a   :  { %v2836_v15 = vpop.eup %2835  ;;  %v1492_v16 = vsel %vm279_vm1, %v2830_v54, %v2834_v52 }
0x197b   :  { %v1517_v27 = vsel %vm279_vm1, %v2832_v53, %v2836_v15  ;;  %1495 = vrot.lane.b32.xlu0 %v1492_v16, %s2967_s1  ;;  %v1493_v39 = vmul.f32 %v1492_v16, %v3668_v62 }
0x197c   :  { %1520 = vrot.lane.b32.xlu1 %v1517_v27, %s2967_s1  ;;  %v1518_v40 = vmul.f32 %v1517_v27, %v3670_v5 }
0x19ed   :  { %v1496_v35 = vpop.permute.xlu0 %1495 }
0x19ee   :  { %v1521_v50 = vpop.permute.xlu1 %1520  ;;  %v1498_v36 = vmul.f32 %v1496_v35, %v1492_v16 }
0x19ef   :  { %v1523_v38 = vmul.f32 %v1521_v50, %v1517_v27 }
0x19f0   :  { %1500 = vrot.lane.b32.xlu0 %v1498_v36, %s2967_s1 }
0x19f1   :  { %1525 = vrot.lane.b32.xlu1 %v1523_v38, %s2967_s1 }
0x1a62   :  { %v1501_v42 = vpop.permute.xlu0 %1500 }
0x1a63   :  { %v1526_v61 = vpop.permute.xlu1 %1525  ;;  %v3711_v49 = vadd.f32 %v1501_v42, %v1493_v39 }
0x1a64   :  { %v3713_v63 = vadd.f32 %v1526_v61, %v1518_v40 }
0x1a65   :  { %2837 = vtanh.f32 %v3711_v49 }
0x1a66   :  { %2839 = vtanh.f32 %v3713_v63 }
0x1a72   :  { %v2838_v41 = vpop.eup %2837 }
0x1a73   :  { %v2840_v45 = vpop.eup %2839  ;;  %1506 = vrot.lane.b32.xlu0 %v2838_v41, %s2967_s1 }
0x1a74   :  { %1531 = vrot.lane.b32.xlu1 %v2840_v45, %s2967_s1 }
0x1ae5   :  { %v1507_v1 = vpop.permute.xlu0 %1506 }
0x1ae6   :  { %v1532_v62 = vpop.permute.xlu1 %1531  ;;  %v1509_v48 = vmul.f32 %v1507_v1, %v1492_v16 }
0x1ae7   :  { %v1534_v5 = vmul.f32 %v1532_v62, %v1517_v27 }
0x1ae8   :  { %1536 = vrot.lane.b32.xlu0 %v1509_v48, %s2968_s8 }
0x1ae9   :  { %1540 = vrot.lane.b32.xlu1 %v1534_v5, %s2970_s24 }
0x1b5a   :  { %v1537_v2 = vpop.permute.xlu0 %1536 }
0x1b5b   :  { %v1541_v20 = vpop.permute.xlu1 %1540 }
0x1b5c   :  { %v1543_v23 = vsel %vm304_vm2, %v1537_v2, %v1541_v20 }
0x1b5d   :  { %2603 = vmatmul.mubr.msk.f32.vlgmr.msra.gmra.mxu1 %vm317_vm3, %v1543_v23 }
0x1b5e   :  { %1836 = vmatpush1.msra.mxu1 %v3512_v6  ;;  %1883 = vmatprep.mubr.f32.mxu1 %v2969_v34 }
0x1b5f   :  { %1837 = vmatprep.subr.mxu1 %v3519_v46 }
0x1b60   :  { %1838 = vmatpush1.msra.mxu1 %v3525_v3 }
0x1b61   :  { %1839 = vmatprep.subr.mxu1 %v3531_v47 }
0x1b62   :  { %1840 = vmatpush1.msra.mxu1 %v3537_v9 }
0x1b63   :  { %1841 = vmatprep.subr.mxu1 %v3543_v8 }
0x1b64   :  { %1842 = vmatpush1.msra.mxu1 %v3549_v10 }
0x1b65   :  { %1843 = vmatprep.subr.mxu1 %v3555_v7 }
0x1b66   :  { %1844 = vmatpush1.msra.mxu1 %v3561_v12 }
0x1b67   :  { %1845 = vmatprep.subr.mxu1 %v3567_v0 }
0x1b68   :  { %1846 = vmatpush1.msra.mxu1 %v3573_v13 }
0x1b69   :  { %1847 = vmatprep.subr.mxu1 %v3579_v37 }
0x1b6a   :  { %1848 = vmatpush1.msra.mxu1 %v3585_v14 }
0x1b6b   :  { %1849 = vmatprep.subr.mxu1 %v3591_v18 }
0x1b6c   :  { %1850 = vmatpush1.msra.mxu1 %v3650_v22 }
0x1b6d   :  { %2107 = vmatprep.subr.mxu1 %v3598_v19 }
0x1c1d   :  { %v1613_v24 = vpop.f32.mrf.mxu1 }
0x1c1e   :  { %v1614_v25 = vadd.f32 %v1613_v24, %v3184_v43  ;;  %v221_v24 = vadd.f32 %v3604_v21, %v3342_v55 }
0x1c1f   :  { %v1615_v26 = vpop.f32.mrf.mxu1 }
0x1c20   :  { %v1620_v28 = vadd.f32 %v1614_v25, %v216_v33  ;;  %v1616_v29 = vadd.f32 %v1615_v26, %v3186_v44 }
0x1c22   :  { %v2604_v17 = vmul.f32 -1.442695, %v1620_v28  ;;  %v2605_v30 = vmul.f32 -1.442695, %v1616_v29 }
0x1c24   :  { %2841 = vpow2.f32 %v2604_v17 }
0x1c25   :  { %2843 = vpow2.f32 %v2605_v30 }
0x1c26   :  { %2845 = vtanh.f32 %v1620_v28 }
0x1c27   :  { %2847 = vtanh.f32 %v1616_v29 }
0x1c31   :  { %v2842_v4 = vpop.eup %2841 }
0x1c32   :  { %v2844_v31 = vpop.eup %2843  ;;  %v1625_v51 = vadd.f32 1.0, %v2842_v4 }
0x1c33   :  { %v1650_v32 = vadd.f32 1.0, %v2844_v31  ;;  %v2846_v54 = vpop.eup %2845 }
0x1c34   :  { %2849 = vrcp.f32 %v1625_v51  ;;  %v2848_v56 = vpop.eup %2847 }
0x1c35   :  { %2851 = vrcp.f32 %v1650_v32 }
0x1c41   :  { %v2850_v53 = vpop.eup %2849 }
0x1c42   :  { %v2852_v52 = vpop.eup %2851  ;;  %v1628_v15 = vsel %vm279_vm1, %v2846_v54, %v2850_v53 }
0x1c43   :  { %v1653_v16 = vsel %vm279_vm1, %v2848_v56, %v2852_v52  ;;  %1631 = vrot.lane.b32.xlu0 %v1628_v15, %s2967_s1  ;;  %v1629_v38 = vmul.f32 %v1628_v15, %v3711_v49 }
0x1c44   :  { %1656 = vrot.lane.b32.xlu1 %v1653_v16, %s2967_s1  ;;  %v1654_v39 = vmul.f32 %v1653_v16, %v3713_v63 }
0x1cb5   :  { %v1632_v27 = vpop.permute.xlu0 %1631 }
0x1cb6   :  { %v1657_v35 = vpop.permute.xlu1 %1656  ;;  %v1634_v50 = vmul.f32 %v1632_v27, %v1628_v15 }
0x1cb7   :  { %v1659_v36 = vmul.f32 %v1657_v35, %v1653_v16 }
0x1cb8   :  { %1636 = vrot.lane.b32.xlu0 %v1634_v50, %s2967_s1 }
0x1cb9   :  { %1661 = vrot.lane.b32.xlu1 %v1659_v36, %s2967_s1 }
0x1d2a   :  { %v1637_v40 = vpop.permute.xlu0 %1636 }
0x1d2b   :  { %v1662_v42 = vpop.permute.xlu1 %1661  ;;  %v3754_v61 = vadd.f32 %v1637_v40, %v1629_v38 }
0x1d2c   :  { %v3756_v41 = vadd.f32 %v1662_v42, %v1654_v39 }
0x1d2d   :  { %2853 = vtanh.f32 %v3754_v61 }
0x1d2e   :  { %2855 = vtanh.f32 %v3756_v41 }
0x1d3a   :  { %v2854_v45 = vpop.eup %2853 }
0x1d3b   :  { %v2856_v1 = vpop.eup %2855  ;;  %1642 = vrot.lane.b32.xlu0 %v2854_v45, %s2967_s1 }
0x1d3c   :  { %1667 = vrot.lane.b32.xlu1 %v2856_v1, %s2967_s1 }
0x1dad   :  { %v1643_v62 = vpop.permute.xlu0 %1642 }
0x1dae   :  { %v1668_v49 = vpop.permute.xlu1 %1667  ;;  %v1645_v48 = vmul.f32 %v1643_v62, %v1628_v15 }
0x1daf   :  { %v1670_v63 = vmul.f32 %v1668_v49, %v1653_v16 }
0x1db0   :  { %1672 = vrot.lane.b32.xlu0 %v1645_v48, %s2968_s8 }
0x1db1   :  { %1676 = vrot.lane.b32.xlu1 %v1670_v63, %s2970_s24 }
0x1e22   :  { %v1673_v5 = vpop.permute.xlu0 %1672 }
0x1e23   :  { %v1677_v2 = vpop.permute.xlu1 %1676 }
0x1e24   :  { %v1679_v20 = vsel %vm304_vm2, %v1673_v5, %v1677_v2 }
0x1e25   :  { %2606 = vmatmul.mubr.msk.f32.vlgmr.msra.gmra.mxu0 %vm317_vm3, %v1679_v20  ;;  %v226_v20 = vadd.f32 %v3604_v21, %v3348_v58 }
0x1e26   :  { %1972 = vmatpush1.msra.mxu0 %v3512_v6  ;;  %2019 = vmatprep.mubr.f32.mxu0 %v2969_v34 }
0x1e27   :  { %1973 = vmatprep.subr.mxu0 %v3519_v46 }
0x1e28   :  { %1974 = vmatpush1.msra.mxu0 %v3525_v3 }
0x1e29   :  { %1975 = vmatprep.subr.mxu0 %v3531_v47 }
0x1e2a   :  { %1976 = vmatpush1.msra.mxu0 %v3537_v9 }
0x1e2b   :  { %1977 = vmatprep.subr.mxu0 %v3543_v8 }
0x1e2c   :  { %1978 = vmatpush1.msra.mxu0 %v3549_v10 }
0x1e2d   :  { %1979 = vmatprep.subr.mxu0 %v3555_v7 }
0x1e2e   :  { %1980 = vmatpush1.msra.mxu0 %v3561_v12 }
0x1e2f   :  { %1981 = vmatprep.subr.mxu0 %v3567_v0 }
0x1e30   :  { %1982 = vmatpush1.msra.mxu0 %v3573_v13 }
0x1e31   :  { %1983 = vmatprep.subr.mxu0 %v3579_v37 }
0x1e32   :  { %1984 = vmatpush1.msra.mxu0 %v3585_v14 }
0x1e33   :  { %1985 = vmatprep.subr.mxu0 %v3591_v18 }
0x1e34   :  { %1986 = vmatpush1.msra.mxu0 %v3650_v22 }
0x1e35   :  { %2243 = vmatprep.subr.mxu0 %v3598_v19 }
0x1ee5   :  { %v1749_v23 = vpop.f32.mrf.mxu0 }
0x1ee6   :  { %v1750_v33 = vadd.f32 %v1749_v23, %v3184_v43 }
0x1ee7   :  { %v1751_v25 = vpop.f32.mrf.mxu0 }
0x1ee8   :  { %v1756_v26 = vadd.f32 %v1750_v33, %v221_v24  ;;  %v1752_v28 = vadd.f32 %v1751_v25, %v3186_v44 }
0x1eea   :  { %v2607_v29 = vmul.f32 -1.442695, %v1756_v26  ;;  %v2608_v17 = vmul.f32 -1.442695, %v1752_v28 }
0x1eec   :  { %2857 = vpow2.f32 %v2607_v29 }
0x1eed   :  { %2859 = vpow2.f32 %v2608_v17 }
0x1eee   :  { %2861 = vtanh.f32 %v1756_v26 }
0x1eef   :  { %2863 = vtanh.f32 %v1752_v28 }
0x1ef9   :  { %v2858_v30 = vpop.eup %2857 }
0x1efa   :  { %v2860_v4 = vpop.eup %2859  ;;  %v1761_v31 = vadd.f32 1.0, %v2858_v30 }
0x1efb   :  { %v1786_v51 = vadd.f32 1.0, %v2860_v4  ;;  %v2862_v32 = vpop.eup %2861 }
0x1efc   :  { %2865 = vrcp.f32 %v1761_v31  ;;  %v2864_v55 = vpop.eup %2863 }
0x1efd   :  { %2867 = vrcp.f32 %v1786_v51 }
0x1f09   :  { %v2866_v54 = vpop.eup %2865 }
0x1f0a   :  { %v2868_v56 = vpop.eup %2867  ;;  %v1764_v53 = vsel %vm279_vm1, %v2862_v32, %v2866_v54 }
0x1f0b   :  { %v1789_v52 = vsel %vm279_vm1, %v2864_v55, %v2868_v56  ;;  %1767 = vrot.lane.b32.xlu0 %v1764_v53, %s2967_s1  ;;  %v1765_v50 = vmul.f32 %v1764_v53, %v3754_v61 }
0x1f0c   :  { %1792 = vrot.lane.b32.xlu1 %v1789_v52, %s2967_s1  ;;  %v1790_v36 = vmul.f32 %v1789_v52, %v3756_v41 }
0x1f7d   :  { %v1768_v15 = vpop.permute.xlu0 %1767 }
0x1f7e   :  { %v1793_v16 = vpop.permute.xlu1 %1792  ;;  %v1770_v27 = vmul.f32 %v1768_v15, %v1764_v53 }
0x1f7f   :  { %v1795_v35 = vmul.f32 %v1793_v16, %v1789_v52 }
0x1f80   :  { %1772 = vrot.lane.b32.xlu0 %v1770_v27, %s2967_s1 }
0x1f81   :  { %1797 = vrot.lane.b32.xlu1 %v1795_v35, %s2967_s1 }
0x1ff2   :  { %v1773_v38 = vpop.permute.xlu0 %1772 }
0x1ff3   :  { %v1798_v39 = vpop.permute.xlu1 %1797  ;;  %v3797_v40 = vadd.f32 %v1773_v38, %v1765_v50 }
0x1ff4   :  { %v3799_v42 = vadd.f32 %v1798_v39, %v1790_v36 }
0x1ff5   :  { %2869 = vtanh.f32 %v3797_v40 }
0x1ff6   :  { %2871 = vtanh.f32 %v3799_v42 }
0x2002   :  { %v2870_v45 = vpop.eup %2869 }
0x2003   :  { %v2872_v1 = vpop.eup %2871  ;;  %1778 = vrot.lane.b32.xlu0 %v2870_v45, %s2967_s1 }
0x2004   :  { %1803 = vrot.lane.b32.xlu1 %v2872_v1, %s2967_s1 }
0x2075   :  { %v1779_v62 = vpop.permute.xlu0 %1778 }
0x2076   :  { %v1804_v61 = vpop.permute.xlu1 %1803  ;;  %v1781_v49 = vmul.f32 %v1779_v62, %v1764_v53 }
0x2077   :  { %v1806_v41 = vmul.f32 %v1804_v61, %v1789_v52 }
0x2078   :  { %1808 = vrot.lane.b32.xlu0 %v1781_v49, %s2968_s8 }
0x2079   :  { %1812 = vrot.lane.b32.xlu1 %v1806_v41, %s2970_s24 }
0x20ea   :  { %v1809_v48 = vpop.permute.xlu0 %1808 }
0x20eb   :  { %v1813_v63 = vpop.permute.xlu1 %1812 }
0x20ec   :  { %v1815_v5 = vsel %vm304_vm2, %v1809_v48, %v1813_v63  ;;  %v231_v48 = vadd.f32 %v3604_v21, %v3346_v57 }
0x20ed   :  { %2609 = vmatmul.mubr.msk.f32.vlgmr.msra.gmra.mxu1 %vm317_vm3, %v1815_v5 }
0x20ee   :  { %2108 = vmatpush1.msra.mxu1 %v3512_v6  ;;  %2155 = vmatprep.mubr.f32.mxu1 %v2969_v34 }
0x20ef   :  { %2109 = vmatprep.subr.mxu1 %v3519_v46 }
0x20f0   :  { %2110 = vmatpush1.msra.mxu1 %v3525_v3 }
0x20f1   :  { %2111 = vmatprep.subr.mxu1 %v3531_v47 }
0x20f2   :  { %2112 = vmatpush1.msra.mxu1 %v3537_v9 }
0x20f3   :  { %2113 = vmatprep.subr.mxu1 %v3543_v8 }
0x20f4   :  { %2114 = vmatpush1.msra.mxu1 %v3549_v10 }
0x20f5   :  { %2115 = vmatprep.subr.mxu1 %v3555_v7 }
0x20f6   :  { %2116 = vmatpush1.msra.mxu1 %v3561_v12 }
0x20f7   :  { %2117 = vmatprep.subr.mxu1 %v3567_v0 }
0x20f8   :  { %2118 = vmatpush1.msra.mxu1 %v3573_v13 }
0x20f9   :  { %2119 = vmatprep.subr.mxu1 %v3579_v37 }
0x20fa   :  { %2120 = vmatpush1.msra.mxu1 %v3585_v14 }
0x20fb   :  { %2121 = vmatprep.subr.mxu1 %v3591_v18 }
0x20fc   :  { %2122 = vmatpush1.msra.mxu1 %v3650_v22 }
0x20fd   :  { %2379 = vmatprep.subr.mxu1 %v3598_v19 }
0x21ad   :  { %v1885_v2 = vpop.f32.mrf.mxu1 }
0x21ae   :  { %v1886_v23 = vadd.f32 %v1885_v2, %v3184_v43 }
0x21af   :  { %v1887_v24 = vpop.f32.mrf.mxu1 }
0x21b0   :  { %v1892_v33 = vadd.f32 %v1886_v23, %v226_v20  ;;  %v1888_v25 = vadd.f32 %v1887_v24, %v3186_v44 }
0x21b2   :  { %v2610_v26 = vmul.f32 -1.442695, %v1892_v33  ;;  %v2611_v28 = vmul.f32 -1.442695, %v1888_v25 }
0x21b4   :  { %2873 = vpow2.f32 %v2610_v26 }
0x21b5   :  { %2875 = vpow2.f32 %v2611_v28 }
0x21b6   :  { %2877 = vtanh.f32 %v1892_v33 }
0x21b7   :  { %2879 = vtanh.f32 %v1888_v25 }
0x21c1   :  { %v2874_v29 = vpop.eup %2873 }
0x21c2   :  { %v2876_v17 = vpop.eup %2875  ;;  %v1897_v30 = vadd.f32 1.0, %v2874_v29 }
0x21c3   :  { %v1922_v19 = vadd.f32 1.0, %v2876_v17  ;;  %v2878_v4 = vpop.eup %2877 }
0x21c4   :  { %2881 = vrcp.f32 %v1897_v30  ;;  %v2880_v58 = vpop.eup %2879 }
0x21c5   :  { %2883 = vrcp.f32 %v1922_v19 }
0x21d1   :  { %v2882_v31 = vpop.eup %2881 }
0x21d2   :  { %v2884_v51 = vpop.eup %2883  ;;  %v1900_v32 = vsel %vm279_vm1, %v2878_v4, %v2882_v31 }
0x21d3   :  { %v1925_v55 = vsel %vm279_vm1, %v2880_v58, %v2884_v51  ;;  %1903 = vrot.lane.b32.xlu0 %v1900_v32, %s2967_s1  ;;  %v1901_v15 = vmul.f32 %v1900_v32, %v3797_v40 }
0x21d4   :  { %1928 = vrot.lane.b32.xlu1 %v1925_v55, %s2967_s1  ;;  %v1926_v16 = vmul.f32 %v1925_v55, %v3799_v42 }
0x2245   :  { %v1904_v54 = vpop.permute.xlu0 %1903 }
0x2246   :  { %v1929_v56 = vpop.permute.xlu1 %1928  ;;  %v1906_v53 = vmul.f32 %v1904_v54, %v1900_v32 }
0x2247   :  { %v1931_v52 = vmul.f32 %v1929_v56, %v1925_v55 }
0x2248   :  { %1908 = vrot.lane.b32.xlu0 %v1906_v53, %s2967_s1 }
0x2249   :  { %1933 = vrot.lane.b32.xlu1 %v1931_v52, %s2967_s1 }
0x22ba   :  { %v1909_v27 = vpop.permute.xlu0 %1908 }
0x22bb   :  { %v1934_v35 = vpop.permute.xlu1 %1933  ;;  %v3840_v50 = vadd.f32 %v1909_v27, %v1901_v15 }
0x22bc   :  { %v3842_v36 = vadd.f32 %v1934_v35, %v1926_v16 }
0x22bd   :  { %2885 = vtanh.f32 %v3840_v50 }
0x22be   :  { %2887 = vtanh.f32 %v3842_v36 }
0x22ca   :  { %v2886_v38 = vpop.eup %2885 }
0x22cb   :  { %v2888_v39 = vpop.eup %2887  ;;  %1914 = vrot.lane.b32.xlu0 %v2886_v38, %s2967_s1 }
0x22cc   :  { %1939 = vrot.lane.b32.xlu1 %v2888_v39, %s2967_s1 }
0x233d   :  { %v1915_v45 = vpop.permute.xlu0 %1914 }
0x233e   :  { %v1940_v40 = vpop.permute.xlu1 %1939  ;;  %v1917_v1 = vmul.f32 %v1915_v45, %v1900_v32 }
0x233f   :  { %v1942_v42 = vmul.f32 %v1940_v40, %v1925_v55 }
0x2340   :  { %1944 = vrot.lane.b32.xlu0 %v1917_v1, %s2968_s8 }
0x2341   :  { %1948 = vrot.lane.b32.xlu1 %v1942_v42, %s2970_s24 }
0x23b2   :  { %v1945_v62 = vpop.permute.xlu0 %1944 }
0x23b3   :  { %v1949_v61 = vpop.permute.xlu1 %1948 }
0x23b4   :  { %v1951_v49 = vsel %vm304_vm2, %v1945_v62, %v1949_v61 }
0x23b5   :  { %2612 = vmatmul.mubr.msk.f32.vlgmr.msra.gmra.mxu0 %vm317_vm3, %v1951_v49 }
0x23b6   :  { %2244 = vmatpush1.msra.mxu0 %v3512_v6  ;;  %2291 = vmatprep.mubr.f32.mxu0 %v2969_v34 }
0x23b7   :  { %2245 = vmatprep.subr.mxu0 %v3519_v46 }
0x23b8   :  { %2246 = vmatpush1.msra.mxu0 %v3525_v3 }
0x23b9   :  { %2247 = vmatprep.subr.mxu0 %v3531_v47 }
0x23ba   :  { %2248 = vmatpush1.msra.mxu0 %v3537_v9 }
0x23bb   :  { %2249 = vmatprep.subr.mxu0 %v3543_v8 }
0x23bc   :  { %2250 = vmatpush1.msra.mxu0 %v3549_v10 }
0x23bd   :  { %2251 = vmatprep.subr.mxu0 %v3555_v7 }
0x23be   :  { %2252 = vmatpush1.msra.mxu0 %v3561_v12 }
0x23bf   :  { %2253 = vmatprep.subr.mxu0 %v3567_v0 }
0x23c0   :  { %2254 = vmatpush1.msra.mxu0 %v3573_v13 }
0x23c1   :  { %2255 = vmatprep.subr.mxu0 %v3579_v37 }
0x23c2   :  { %2256 = vmatpush1.msra.mxu0 %v3585_v14 }
0x23c3   :  { %2257 = vmatprep.subr.mxu0 %v3591_v18 }
0x23c4   :  { %2258 = vmatpush1.msra.mxu0 %v3650_v22 }
0x23c5   :  { %2673 = vmatprep.subr.mxu0 %v2969_v34 }
0x2475   :  { %v2021_v41 = vpop.f32.mrf.mxu0 }
0x2476   :  { %v2022_v63 = vadd.f32 %v2021_v41, %v3184_v43 }
0x2477   :  { %v2023_v5 = vpop.f32.mrf.mxu0 }
0x2478   :  { %v2028_v2 = vadd.f32 %v2022_v63, %v231_v48  ;;  %v2024_v20 = vadd.f32 %v2023_v5, %v3186_v44 }
0x247a   :  { %v2613_v23 = vmul.f32 -1.442695, %v2028_v2  ;;  %v2614_v24 = vmul.f32 -1.442695, %v2024_v20 }
0x247c   :  { %2889 = vpow2.f32 %v2613_v23 }
0x247d   :  { %2891 = vpow2.f32 %v2614_v24 }
0x247e   :  { %2893 = vtanh.f32 %v2028_v2 }
0x247f   :  { %2895 = vtanh.f32 %v2024_v20 }
0x2489   :  { %v2890_v33 = vpop.eup %2889 }
0x248a   :  { %v2892_v25 = vpop.eup %2891  ;;  %v2033_v26 = vadd.f32 1.0, %v2890_v33 }
0x248b   :  { %v2058_v28 = vadd.f32 1.0, %v2892_v25  ;;  %v2894_v29 = vpop.eup %2893 }
0x248c   :  { %2897 = vrcp.f32 %v2033_v26  ;;  %v2896_v57 = vpop.eup %2895 }
0x248d   :  { %2899 = vrcp.f32 %v2058_v28 }
0x2499   :  { %v2898_v17 = vpop.eup %2897 }
0x249a   :  { %v2900_v30 = vpop.eup %2899  ;;  %v2036_v19 = vsel %vm279_vm1, %v2894_v29, %v2898_v17 }
0x249b   :  { %v2061_v4 = vsel %vm279_vm1, %v2896_v57, %v2900_v30  ;;  %2039 = vrot.lane.b32.xlu0 %v2036_v19, %s2967_s1  ;;  %v2037_v55 = vmul.f32 %v2036_v19, %v3840_v50 }
0x249c   :  { %2064 = vrot.lane.b32.xlu1 %v2061_v4, %s2967_s1  ;;  %v2062_v54 = vmul.f32 %v2061_v4, %v3842_v36 }
0x250d   :  { %v2040_v58 = vpop.permute.xlu0 %2039 }
0x250e   :  { %v2065_v31 = vpop.permute.xlu1 %2064  ;;  %v2042_v51 = vmul.f32 %v2040_v58, %v2036_v19 }
0x250f   :  { %v2067_v32 = vmul.f32 %v2065_v31, %v2061_v4 }
0x2510   :  { %2044 = vrot.lane.b32.xlu0 %v2042_v51, %s2967_s1 }
0x2511   :  { %2069 = vrot.lane.b32.xlu1 %v2067_v32, %s2967_s1 }
0x2582   :  { %v2045_v56 = vpop.permute.xlu0 %2044 }
0x2583   :  { %v2070_v53 = vpop.permute.xlu1 %2069  ;;  %v3883_v52 = vadd.f32 %v2045_v56, %v2037_v55 }
0x2584   :  { %v3885_v15 = vadd.f32 %v2070_v53, %v2062_v54 }
0x2585   :  { %2901 = vtanh.f32 %v3883_v52 }
0x2586   :  { %2903 = vtanh.f32 %v3885_v15 }
0x2592   :  { %v2902_v16 = vpop.eup %2901 }
0x2593   :  { %v2904_v27 = vpop.eup %2903  ;;  %2050 = vrot.lane.b32.xlu0 %v2902_v16, %s2967_s1 }
0x2594   :  { %2075 = vrot.lane.b32.xlu1 %v2904_v27, %s2967_s1 }
0x2605   :  { %v2051_v35 = vpop.permute.xlu0 %2050 }
0x2606   :  { %v2076_v50 = vpop.permute.xlu1 %2075  ;;  %v2053_v38 = vmul.f32 %v2051_v35, %v2036_v19  ;;  %v2966_v19 = vld [vmem:[%s3983_s2] ss:$0 sm:$0xff] }
0x2607   :  { %v2078_v36 = vmul.f32 %v2076_v50, %v2061_v4  ;;  %v241_v4 = vadd.f32 %v2966_v19, %v3350_v59 }
0x2608   :  { %2080 = vrot.lane.b32.xlu0 %v2053_v38, %s2968_s8 }
0x2609   :  { %2084 = vrot.lane.b32.xlu1 %v2078_v36, %s2970_s24 }
0x267a   :  { %v2081_v39 = vpop.permute.xlu0 %2080 }
0x267b   :  { %v2085_v45 = vpop.permute.xlu1 %2084 }
0x267c   :  { %v2087_v40 = vsel %vm304_vm2, %v2081_v39, %v2085_v45 }
0x267d   :  { %2615 = vmatmul.mubr.msk.f32.vlgmr.msra.gmra.mxu1 %vm317_vm3, %v2087_v40 }
0x267e   :  { %2380 = vmatpush1.msra.mxu1 %v3512_v6  ;;  %2427 = vmatprep.mubr.f32.mxu1 %v2969_v34 }
0x267f   :  { %2381 = vmatprep.subr.mxu1 %v3519_v46  ;;  %v236_v46 = vadd.f32 %v3604_v21, %v3352_v60 }
0x2680   :  { %2382 = vmatpush1.msra.mxu1 %v3525_v3 }
0x2681   :  { %2383 = vmatprep.subr.mxu1 %v3531_v47 }
0x2682   :  { %2384 = vmatpush1.msra.mxu1 %v3537_v9 }
0x2683   :  { %2385 = vmatprep.subr.mxu1 %v3543_v8 }
0x2684   :  { %2386 = vmatpush1.msra.mxu1 %v3549_v10 }
0x2685   :  { %2387 = vmatprep.subr.mxu1 %v3555_v7 }
0x2686   :  { %2388 = vmatpush1.msra.mxu1 %v3561_v12 }
0x2687   :  { %2389 = vmatprep.subr.mxu1 %v3567_v0 }
0x2688   :  { %2390 = vmatpush1.msra.mxu1 %v3573_v13 }
0x2689   :  { %2391 = vmatprep.subr.mxu1 %v3579_v37 }
0x268a   :  { %2392 = vmatpush1.msra.mxu1 %v3585_v14 }
0x268b   :  { %2393 = vmatprep.subr.mxu1 %v3591_v18 }
0x268c   :  { %2394 = vmatpush1.msra.mxu1 %v3650_v22 }
0x273d   :  { %v2157_v6 = vpop.f32.mrf.mxu1 }
0x273e   :  { %v2158_v3 = vadd.f32 %v2157_v6, %v3184_v43 }
0x273f   :  { %v2159_v47 = vpop.f32.mrf.mxu1 }
0x2740   :  { %v2164_v9 = vadd.f32 %v2158_v3, %v236_v46  ;;  %v2160_v8 = vadd.f32 %v2159_v47, %v3186_v44 }
0x2742   :  { %v2616_v10 = vmul.f32 -1.442695, %v2164_v9  ;;  %v2617_v7 = vmul.f32 -1.442695, %v2160_v8 }
0x2744   :  { %2905 = vpow2.f32 %v2616_v10 }
0x2745   :  { %2907 = vpow2.f32 %v2617_v7 }
0x2746   :  { %2909 = vtanh.f32 %v2164_v9 }
0x2747   :  { %2911 = vtanh.f32 %v2160_v8 }
0x2751   :  { %v2906_v12 = vpop.eup %2905 }
0x2752   :  { %v2908_v0 = vpop.eup %2907  ;;  %v2169_v13 = vadd.f32 1.0, %v2906_v12 }
0x2753   :  { %v2194_v37 = vadd.f32 1.0, %v2908_v0  ;;  %v2910_v14 = vpop.eup %2909 }
0x2754   :  { %2913 = vrcp.f32 %v2169_v13  ;;  %v2912_v60 = vpop.eup %2911 }
0x2755   :  { %2915 = vrcp.f32 %v2194_v37 }
0x2761   :  { %v2914_v18 = vpop.eup %2913 }
0x2762   :  { %v2916_v21 = vpop.eup %2915  ;;  %v2172_v22 = vsel %vm279_vm1, %v2910_v14, %v2914_v18 }
0x2763   :  { %v2197_v1 = vsel %vm279_vm1, %v2912_v60, %v2916_v21  ;;  %2175 = vrot.lane.b32.xlu0 %v2172_v22, %s2967_s1  ;;  %v2173_v41 = vmul.f32 %v2172_v22, %v3883_v52 }
0x2764   :  { %2200 = vrot.lane.b32.xlu1 %v2197_v1, %s2967_s1  ;;  %v2198_v48 = vmul.f32 %v2197_v1, %v3885_v15 }
0x27d5   :  { %v2176_v42 = vpop.permute.xlu0 %2175 }
0x27d6   :  { %v2201_v62 = vpop.permute.xlu1 %2200  ;;  %v2178_v61 = vmul.f32 %v2176_v42, %v2172_v22 }
0x27d7   :  { %v2203_v49 = vmul.f32 %v2201_v62, %v2197_v1 }
0x27d8   :  { %2180 = vrot.lane.b32.xlu0 %v2178_v61, %s2967_s1 }
0x27d9   :  { %2205 = vrot.lane.b32.xlu1 %v2203_v49, %s2967_s1 }
0x284a   :  { %v2181_v63 = vpop.permute.xlu0 %2180 }
0x284b   :  { %v2206_v5 = vpop.permute.xlu1 %2205  ;;  %v2183_v2 = vadd.f32 %v2181_v63, %v2173_v41 }
0x284c   :  { %v2208_v20 = vadd.f32 %v2206_v5, %v2198_v48 }
0x284d   :  { %2917 = vtanh.f32 %v2183_v2 }
0x284e   :  { %2919 = vtanh.f32 %v2208_v20 }
0x285a   :  { %v2918_v23 = vpop.eup %2917 }
0x285b   :  { %v2920_v24 = vpop.eup %2919  ;;  %2186 = vrot.lane.b32.xlu0 %v2918_v23, %s2967_s1  ;;  %v2460_v23 = vld [vmem:[%s3986_s5 + $0x10] sm:$0xff] }
0x285c   :  { %2211 = vrot.lane.b32.xlu1 %v2920_v24, %s2967_s1  ;;  %v2458_v24 = vld [vmem:[%s3986_s5] sm:$0xff] }
0x28cd   :  { %v2187_v33 = vpop.permute.xlu0 %2186 }
0x28ce   :  { %v2212_v25 = vpop.permute.xlu1 %2211  ;;  %v2189_v26 = vmul.f32 %v2187_v33, %v2172_v22 }
0x28cf   :  { %v2214_v28 = vmul.f32 %v2212_v25, %v2197_v1 }
0x28d0   :  { %2216 = vrot.lane.b32.xlu0 %v2189_v26, %s2968_s8 }
0x28d1   :  { %2220 = vrot.lane.b32.xlu1 %v2214_v28, %s2970_s24 }
0x2942   :  { %v2217_v29 = vpop.permute.xlu0 %2216 }
0x2943   :  { %v2221_v57 = vpop.permute.xlu1 %2220 }
0x2944   :  { %v2223_v17 = vsel %vm304_vm2, %v2217_v29, %v2221_v57  ;;  %v2623_v29 = vld [vmem:[%s3987_s6] ss:$0 sm:$0xff] }
0x2945   :  { %2618 = vmatmul.mubr.msk.f32.vlgmr.msra.gmra.mxu0 %vm317_vm3, %v2223_v17 }
0x2946   :  { %2681 = vmatprep.mubr.msk.f32.mxu0 %vm2971_vm4, %v2969_v34 }
0x2a05   :  { %v2293_v30 = vpop.f32.mrf.mxu0 }
0x2a06   :  { %v2294_v58 = vadd.f32 %v2293_v30, %v3184_v43 }
0x2a07   :  { %v2295_v31 = vpop.f32.mrf.mxu0 }
0x2a08   :  { %v2300_v51 = vadd.f32 %v2294_v58, %v241_v4  ;;  %v2296_v32 = vadd.f32 %v2295_v31, %v3186_v44 }
0x2a0a   :  { %v2619_v55 = vmul.f32 -1.442695, %v2300_v51  ;;  %v2620_v54 = vmul.f32 -1.442695, %v2296_v32 }
0x2a0c   :  { %2921 = vpow2.f32 %v2619_v55 }
0x2a0d   :  { %2923 = vpow2.f32 %v2620_v54 }
0x2a0e   :  { %2925 = vtanh.f32 %v2300_v51 }
0x2a0f   :  { %2927 = vtanh.f32 %v2296_v32 }
0x2a19   :  { %v2922_v56 = vpop.eup %2921 }
0x2a1a   :  { %v2924_v53 = vpop.eup %2923  ;;  %v2305_v52 = vadd.f32 1.0, %v2922_v56 }
0x2a1b   :  { %v2330_v15 = vadd.f32 1.0, %v2924_v53  ;;  %v2926_v16 = vpop.eup %2925 }
0x2a1c   :  { %2929 = vrcp.f32 %v2305_v52  ;;  %v2928_v59 = vpop.eup %2927 }
0x2a1d   :  { %2931 = vrcp.f32 %v2330_v15 }
0x2a29   :  { %v2930_v27 = vpop.eup %2929 }
0x2a2a   :  { %v2932_v43 = vpop.eup %2931  ;;  %v2308_v35 = vsel %vm279_vm1, %v2926_v16, %v2930_v27 }
0x2a2b   :  { %v2333_v50 = vsel %vm279_vm1, %v2928_v59, %v2932_v43  ;;  %2311 = vrot.lane.b32.xlu0 %v2308_v35, %s2967_s1  ;;  %v2309_v40 = vmul.f32 %v2308_v35, %v2183_v2 }
0x2a2c   :  { %2336 = vrot.lane.b32.xlu1 %v2333_v50, %s2967_s1  ;;  %v2334_v6 = vmul.f32 %v2333_v50, %v2208_v20  ;;  %v2461_v20 = vld [vmem:[%s3986_s5 + $0x18] sm:$0xff] }
0x2a2d   :  { %2674 = vmatpush3.msra.mxu0 %v2461_v20 }
0x2a2e   :  { %2675 = vmatprep.subr.mxu0 %v2969_v34 }
0x2a2f   :  { %2676 = vmatpush3.msra.mxu0 %v2460_v23 }
0x2a30   :  { %2677 = vmatprep.subr.mxu0 %v2969_v34 }
0x2a31   :  { %2678 = vmatpush3.msra.mxu0 %v2459_v11 }
0x2a32   :  { %2679 = vmatprep.subr.mxu0 %v2969_v34 }
0x2a33   :  { %2680 = vmatpush3.msra.mxu0 %v2458_v24 }
0x2a9d   :  { %v2312_v38 = vpop.permute.xlu0 %2311 }
0x2a9e   :  { %v2337_v36 = vpop.permute.xlu1 %2336  ;;  %v2314_v39 = vmul.f32 %v2312_v38, %v2308_v35 }
0x2a9f   :  { %v2339_v45 = vmul.f32 %v2337_v36, %v2333_v50 }
0x2aa0   :  { %2316 = vrot.lane.b32.xlu0 %v2314_v39, %s2967_s1 }
0x2aa1   :  { %2341 = vrot.lane.b32.xlu1 %v2339_v45, %s2967_s1 }
0x2b12   :  { %v2317_v46 = vpop.permute.xlu0 %2316 }
0x2b13   :  { %v2342_v3 = vpop.permute.xlu1 %2341  ;;  %v2319_v47 = vadd.f32 %v2317_v46, %v2309_v40 }
0x2b14   :  { %v2344_v9 = vadd.f32 %v2342_v3, %v2334_v6 }
0x2b15   :  { %2933 = vtanh.f32 %v2319_v47 }
0x2b16   :  { %2935 = vtanh.f32 %v2344_v9 }
0x2b22   :  { %v2934_v8 = vpop.eup %2933 }
0x2b23   :  { %v2936_v10 = vpop.eup %2935  ;;  %2322 = vrot.lane.b32.xlu0 %v2934_v8, %s2967_s1 }
0x2b24   :  { %2347 = vrot.lane.b32.xlu1 %v2936_v10, %s2967_s1 }
0x2b95   :  { %v2323_v7 = vpop.permute.xlu0 %2322 }
0x2b96   :  { %v2348_v12 = vpop.permute.xlu1 %2347  ;;  %v2325_v0 = vmul.f32 %v2323_v7, %v2308_v35 }
0x2b97   :  { %v2350_v13 = vmul.f32 %v2348_v12, %v2333_v50 }
0x2b98   :  { %2352 = vrot.lane.b32.xlu0 %v2325_v0, %s2968_s8 }
0x2b99   :  { %2356 = vrot.lane.b32.xlu1 %v2350_v13, %s2970_s24 }
0x2c0a   :  { %v2353_v37 = vpop.permute.xlu0 %2352 }
0x2c0b   :  { %v2357_v14 = vpop.permute.xlu1 %2356 }
0x2c0c   :  { %v2359_v60 = vsel %vm304_vm2, %v2353_v37, %v2357_v14 }
0x2c0d   :  { %2621 = vmatmul.mubr.msk.f32.vlgmr.msra.gmra.mxu1 %vm317_vm3, %v2359_v60 }
0x2ccd   :  { %v2429_v18 = vpop.f32.mrf.mxu1 }
0x2ccf   :  { %v2430_v21 = vpop.f32.mrf.mxu1 }
0x2cd0   :  { %v2431_v22 = vadd.f32 %v2430_v21, %v3186_v44 }
0x2cd2   :  { %v2622_v1 = vmul.f32 -1.442695, %v2431_v22 }
0x2cd4   :  { %2937 = vpow2.f32 %v2622_v1 }
0x2cd5   :  { %2939 = vtanh.f32 %v2431_v22 }
0x2ce1   :  { %v2938_v42 = vpop.eup %2937 }
0x2ce2   :  { %v2437_v62 = vadd.f32 1.0, %v2938_v42  ;;  %v2940_v61 = vpop.eup %2939 }
0x2ce4   :  { %2941 = vrcp.f32 %v2437_v62 }
0x2cf1   :  { %v2942_v49 = vpop.eup %2941 }
0x2cf2   :  { %v2440_v41 = vsel %vm279_vm1, %v2940_v61, %v2942_v49 }
0x2cf3   :  { %2443 = vrot.lane.b32.xlu0 %v2440_v41, %s2967_s1  ;;  %v2441_v5 = vmul.f32 %v2440_v41, %v2344_v9 }
0x2d65   :  { %v2444_v48 = vpop.permute.xlu0 %2443 }
0x2d66   :  { %v2446_v63 = vmul.f32 %v2444_v48, %v2440_v41 }
0x2d68   :  { %2448 = vrot.lane.b32.xlu1 %v2446_v63, %s2967_s1 }
0x2dda   :  { %v2449_v2 = vpop.permute.xlu1 %2448 }
0x2ddb   :  { %v2451_v44 = vadd.f32 %v2449_v2, %v2441_v5 }
0x2ddd   :  { %2943 = vtanh.f32 %v2451_v44 }
0x2dea   :  { %v2944_v33 = vpop.eup %2943 }
0x2deb   :  { %2454 = vrot.lane.b32.xlu0 %v2944_v33, %s2967_s1 }
0x2e5d   :  { %v2455_v25 = vpop.permute.xlu0 %2454 }
0x2e5e   :  { %v2457_v26 = vmul.f32 %v2455_v25, %v2440_v41 }
0x2e60   :  { %2470 = vrot.lane.b32.xlu1 %v2457_v26, %s2968_s8 }
0x2ed2   :  { %v2471_v28 = vpop.permute.xlu1 %2470 }
0x2ed3   :  { %2682 = vmatmul.mubr.msk.f32.vlgmr.msra.gmra.mxu0 %vm304_vm2, %v2471_v28 }
0x2f93   :  { %v2540_v57 = vpop.f32.mrf.mxu0 }
0x2f94   :  { %v2541_v17 = vadd.f32 %v2623_v29, %v2540_v57 }
0x2f95   :  { %v2683_v30 = vpop.f32.mrf.mxu0 }
0x2f96   :  { %2544 = vmax.xlane.f32.xlu0 %v2541_v17 }
0x301f   :  { %v2545_v34 = vpop.xlane.xlu0 %2544 }
0x3020   :  { %v2546_v19 = vsub.f32 %v2541_v17, %v2545_v34 }
0x3022   :  { %v2547_v4 = vmul.f32 1.442695, %v2546_v19 }
0x3024   :  { %2945 = vpow2.f32 %v2547_v4 }
0x3031   :  { %v2946_v58 = vpop.eup %2945 }
0x3032   :  { %2549 = vadd.xlane.f32.xlu1 %v2946_v58 }
0x30bb   :  { %v2550_v31 = vpop.xlane.xlu1 %2549 }
0x30bc   :  { %2947 = vrcp.f32 %v2550_v31 }
0x30c9   :  { %v2948_v51 = vpop.eup %2947 }
0x30ca   :  { %v2552_v32 = vmul.f32 %v2948_v51, %v2946_v58 }
0x30cc   :  { %2553 = vst [vmem:[%s3988_s7] sm:$0xff] %v2552_v32 }

</bundles_post_ra>
